<compile_context>
chip_gen: v5e
topology: v5e:2x2
jax: 0.10.0
libtpu: 0.0.40
codegen_flags: <defaults>
</compile_context>

<pallas_src>
import jax
import jax.numpy as jnp
from jax import lax
from jax.experimental import pallas as pl
from jax.experimental.pallas import tpu as pltpu


# ---------------------------------------------------------------------------
# Kernel
# ---------------------------------------------------------------------------
def _make_kernel(HT, W, Cp, Cmp, Cop, single_block):
    """Build the kernel body with static tile sizes / halo flag baked in."""
    K2 = 3 * Cmp

    # Rows per conv2/conv3 sub-chunk: keep the live f32 accumulator small
    # (M*Cmp*4 bytes) while still feeding the MXU reasonably sized matmuls.
    r_chunk = 1
    for d in range(1, HT + 1):
        if HT % d == 0 and d * W <= 256:
            r_chunk = d
    n_chunk = HT // r_chunk

    def conv1(x2d, w1, b1):
        o = jnp.dot(x2d.astype(jnp.bfloat16), w1, preferred_element_type=jnp.float32)
        return jnp.maximum(o + b1, 0.0)

    def dx_expand(rows):
        # rows: (R, W, Cmp) f32 conv1 output -> (R, W, 3*Cmp) bf16 where lane
        # block dx holds the x-shifted (dx-1) copy with zero padding columns.
        R = rows.shape[0]
        rb = rows.astype(jnp.bfloat16)
        zc = jnp.zeros((R, 1, Cmp), jnp.bfloat16)
        left = jnp.concatenate([zc, rb[:, :W - 1, :]], axis=1)   # dx = 0
        right = jnp.concatenate([rb[:, 1:, :], zc], axis=1)      # dx = 2
        return jnp.concatenate([left, rb, right], axis=-1)

    def kernel(*refs):
        if single_block:
            (x_ref, w1_ref, b1_ref, w2_ref, b2_ref, w3_ref, b3_ref,
             o_ref, im2_ref) = refs
        else:
            (x_ref, x_hbm_ref, w1_ref, b1_ref, w2_ref, b2_ref, w3_ref, b3_ref,
             o_ref, im2_ref, halo_ref, halo_sem) = refs

            n = pl.program_id(0)
            hb = pl.program_id(1)
            nhb = pl.num_programs(1)
            H_total = x_hbm_ref.shape[1]

            # Start halo-row DMAs (x row above / below this H tile) so the HBM
            # transfers overlap with the interior conv1 compute.
            top_row = jnp.maximum(hb * HT - 1, 0)
            bot_row = jnp.minimum(hb * HT + HT, H_total - 1)
            top_cp = pltpu.make_async_copy(
                x_hbm_ref.at[pl.ds(n, 1), pl.ds(top_row, 1)],
                halo_ref.at[pl.ds(0, 1)], halo_sem.at[0])
            bot_cp = pltpu.make_async_copy(
                x_hbm_ref.at[pl.ds(n, 1), pl.ds(bot_row, 1)],
                halo_ref.at[pl.ds(1, 1)], halo_sem.at[1])
            top_cp.start()
            bot_cp.start()

        # ---- conv1 (1x1, BN scale folded) + ReLU on interior rows, then ----
        # ---- im2col-in-K expand into the bf16 scratch (rows 1..HT).      ----
        x2d = x_ref[...].reshape(HT * W, Cp)
        o1 = conv1(x2d, w1_ref[...], b1_ref[...]).reshape(HT, W, Cmp)
        im2_ref[1:HT + 1] = dx_expand(o1)

        zero_row = jnp.zeros((1, W, K2), jnp.bfloat16)
        if single_block:
            # The whole image is one block: both padding rows are just zeros
            # (scratch is not zero-initialised, so write them every step).
            im2_ref[0:1] = zero_row
            im2_ref[HT + 1:HT + 2] = zero_row
        else:
            # conv1 on the two halo rows (arrive via DMA); boundary rows get
            # zeros instead (guarded, so no write-then-overwrite).
            top_cp.wait()
            bot_cp.wait()
            oh = conv1(halo_ref[...].reshape(2 * W, Cp), w1_ref[...], b1_ref[...])
            oh = dx_expand(oh.reshape(2, W, Cmp))

            @pl.when(hb > 0)
            def _():
                im2_ref[0:1] = oh[0:1]

            @pl.when(hb == 0)
            def _():
                im2_ref[0:1] = zero_row

            @pl.when(hb < nhb - 1)
            def _():
                im2_ref[HT + 1:HT + 2] = oh[1:2]

            @pl.when(hb == nhb - 1)
            def _():
                im2_ref[HT + 1:HT + 2] = zero_row

        # ---- conv2 (3x3 as 3 matmuls with K=3*Cmp), conv3, residual, ReLU ----
        # Chunked over output rows so the live f32 accumulator stays bounded.
        for c in range(n_chunk):
            r0 = c * r_chunk
            acc = None
            for dy in range(3):
                tap = im2_ref[r0 + dy:r0 + dy + r_chunk].reshape(r_chunk * W, K2)
                d = jnp.dot(tap, w2_ref[dy], preferred_element_type=jnp.float32)
                acc = d if acc is None else acc + d
            o2 = jnp.maximum(acc + b2_ref[...], 0.0)

            o3 = jnp.dot(o2.astype(jnp.bfloat16), w3_ref[...],
                         preferred_element_type=jnp.float32)
            o3 = (o3 + b3_ref[...]).reshape(1, r_chunk, W, Cop)
            o3 = o3 + x_ref[:, r0:r0 + r_chunk]          # identity shortcut (re-read)
            o_ref[:, r0:r0 + r_chunk] = jnp.maximum(o3, 0.0).astype(o_ref.dtype)

    return kernel


# ---------------------------------------------------------------------------
# Wrappers
# ---------------------------------------------------------------------------
def _pick_h_tile(H, W, N, Cp, Cmp, Cop, w_bytes, vmem_budget):
    """Largest divisor of H whose per-step VMEM estimate fits the budget,
    keeping at least 2 parallel grid steps (v7x has 2 TensorCores)."""
    def need(ht, nblk):
        x_blk = ht * W * Cp * 4
        o_blk = ht * W * Cop * 4
        im2 = (ht + 2) * W * 3 * Cmp * 2
        halo = 0 if nblk == 1 else 2 * W * Cp * 4
        return 2 * x_blk + 2 * o_blk + im2 + 2 * w_bytes + halo

    divisors = [d for d in range(1, H + 1) if H % d == 0]
    fitting = [d for d in divisors if need(d, H // d) <= vmem_budget]
    if not fitting:
        return 1
    ht = max(fitting)
    if N * (H // ht) < 2:
        smaller = [d for d in fitting if N * (H // d) >= 2]
        if smaller:
            ht = max(smaller)
    return ht


def _bottleneck_nhwc(x_nhwc, kernel_params, h_tile_override=None):
    """Bottleneck on channel-padded NHWC input.  Returns channel-padded NHWC f32.
    Prefer this entry point across layers to avoid per-layer layout passes."""
    w1_k, b1_k, w2_k, b2_k, w3_k, b3_k = kernel_params
    N, H, W, Cp = x_nhwc.shape
    Cmp = w1_k.shape[1]
    Cop = w3_k.shape[1]
    assert Cp == Cop, "identity shortcut requires in_channels == out_channels"

    w_bytes = sum(int(a.size) * a.dtype.itemsize for a in kernel_params)

    # Per-generation VMEM capacity (v5e/v6e: 128 MiB, v7x: 64 MiB per core).
    try:
        cap = int(getattr(pltpu.get_tpu_info(), "vmem_capacity_bytes", 64 << 20))
    except Exception:
        cap = 64 << 20
    vmem_limit = int(cap * 0.80)
    tile_budget = int(vmem_limit * 0.75)      # headroom for compiler scratch

    if h_tile_override is not None:
        h_tile = int(h_tile_override)
        assert H % h_tile == 0, "h_tile_override must divide H"
    else:
        h_tile = _pick_h_tile(H, W, N, Cp, Cmp, Cop, w_bytes, tile_budget)

    n_hblk = H // h_tile
    single_block = (n_hblk == 1)

    kernel = _make_kernel(h_tile, W, Cp, Cmp, Cop, single_block)

    in_specs = [pl.BlockSpec((1, h_tile, W, Cp), lambda n, h: (n, h, 0, 0))]
    operands = [x_nhwc]
    if not single_block:
        in_specs.append(pl.BlockSpec(memory_space=pl.ANY))   # full x in HBM (halo)
        operands.append(x_nhwc)
    in_specs += [
        pl.BlockSpec((Cp, Cmp), lambda n, h: (0, 0)),             # w1 (BN folded)
        pl.BlockSpec((1, Cmp), lambda n, h: (0, 0)),              # b1
        pl.BlockSpec((3, 3 * Cmp, Cmp), lambda n, h: (0, 0, 0)),  # w2 (im2col-K pack)
        pl.BlockSpec((1, Cmp), lambda n, h: (0, 0)),              # b2
        pl.BlockSpec((Cmp, Cop), lambda n, h: (0, 0)),            # w3 (BN folded)
        pl.BlockSpec((1, Cop), lambda n, h: (0, 0)),              # b3
    ]
    operands += [w1_k, b1_k, w2_k, b2_k, w3_k, b3_k]

    scratch_shapes = [pltpu.VMEM((h_tile + 2, W, 3 * Cmp), jnp.bfloat16)]  # im2col
    if not single_block:
        scratch_shapes += [pltpu.VMEM((2, 1, W, Cp), jnp.float32),         # halo x rows
                           pltpu.SemaphoreType.DMA((2,))]

    grid_spec = pltpu.PrefetchScalarGridSpec(
        num_scalar_prefetch=0,
        grid=(N, n_hblk),
        in_specs=in_specs,
        out_specs=pl.BlockSpec((1, h_tile, W, Cop), lambda n, h: (n, h, 0, 0)),
        scratch_shapes=scratch_shapes,
    )
    return pl.pallas_call(
        kernel,
        out_shape=jax.ShapeDtypeStruct((N, H, W, Cop), jnp.float32),
        grid_spec=grid_spec,
        compiler_params=pltpu.CompilerParams(
            dimension_semantics=("parallel", "parallel"),
            vmem_limit_bytes=vmem_limit),
    )(*operands)


def bottleneck_forward(x_nchw, kernel_params, h_tile_override=None):
    """PyTorch-layout (NCHW f32) entry point.  For multi-layer pipelines call
    _bottleneck_nhwc directly with channel-padded NHWC activations to skip the
    transpose / pad / slice HBM round trips on every layer."""
    N, C, H, W = x_nchw.shape
    Cp = kernel_params[0].shape[0]
    x_nhwc = jnp.transpose(x_nchw, (0, 2, 3, 1))
    if Cp > C:
        x_nhwc = jnp.pad(x_nhwc, ((0, 0), (0, 0), (0, 0), (0, Cp - C)))
    out = _bottleneck_nhwc(x_nhwc, kernel_params, h_tile_override)
    return jnp.transpose(out[..., :C], (0, 3, 1, 2))


# ---------------------------------------------------------------------------
# Parameter construction (PyTorch-shaped, then repacked / padded / folded)
# ---------------------------------------------------------------------------
def _round_up(x, m):
    return (x + m - 1) // m * m


def make_params(key, in_channels, out_channels, expansion=4, eps=1e-5):
    mid = out_channels // expansion
    ks = jax.random.split(key, 15)

    def bn(kg, kb, km, kv, c):
        gamma = jax.random.uniform(kg, (c,), jnp.float32, 0.5, 1.5)
        beta = jax.random.normal(kb, (c,), jnp.float32) * 0.1
        rmean = jax.random.normal(km, (c,), jnp.float32) * 0.1
        rvar = jax.random.uniform(kv, (c,), jnp.float32, 0.5, 1.5)
        scale = gamma / jnp.sqrt(rvar + eps)
        bias = beta - rmean * scale
        return scale, bias

    # PyTorch-layout conv weights (OIHW), bias=False
    w1_pt = jax.random.normal(ks[0], (mid, in_channels, 1, 1), jnp.float32) * 0.1
    w2_pt = jax.random.normal(ks[1], (mid, mid, 3, 3), jnp.float32) * 0.1
    w3_pt = jax.random.normal(ks[2], (out_channels, mid, 1, 1), jnp.float32) * 0.1

    s1, b1 = bn(ks[3], ks[4], ks[5], ks[6], mid)
    s2, b2 = bn(ks[7], ks[8], ks[9], ks[10], mid)
    s3, b3 = bn(ks[11], ks[12], ks[13], ks[14], out_channels)

    Cp = _round_up(in_channels, 128)
    Cmp = _round_up(mid, 128)
    Cop = _round_up(out_channels, 128)

    def pad2(a, r, c):
        return jnp.pad(a, ((0, r - a.shape[0]), (0, c - a.shape[1])))

    # Fold BN scale into conv weights, pad channels to lane multiples, cast to bf16.
    # TODO(synk): at tiny real widths (mid=4) the 128-channel padding is >95% zero
    #             FLOPs; fine for realistic ResNet widths (>=64).
    w1_k = jnp.transpose(w1_pt[:, :, 0, 0], (1, 0)) * s1[None, :]         # (Cin, mid)
    w1_k = pad2(w1_k, Cp, Cmp).astype(jnp.bfloat16)

    # conv2 packed for im2col-in-K: (dy, dx*Cmp + cin, cout)
    w2_f = jnp.transpose(w2_pt, (2, 3, 1, 0)) * s2[None, None, None, :]   # (3,3,in,out)
    w2_f = jnp.pad(w2_f, ((0, 0), (0, 0), (0, Cmp - mid), (0, Cmp - mid)))
    w2_k = w2_f.reshape(3, 3 * Cmp, Cmp).astype(jnp.bfloat16)

    w3_k = jnp.transpose(w3_pt[:, :, 0, 0], (1, 0)) * s3[None, :]         # (mid, Cout)
    w3_k = pad2(w3_k, Cmp, Cop).astype(jnp.bfloat16)

    b1_k = jnp.pad(b1, (0, Cmp - mid))[None, :].astype(jnp.float32)
    b2_k = jnp.pad(b2, (0, Cmp - mid))[None, :].astype(jnp.float32)
    b3_k = jnp.pad(b3, (0, Cop - out_channels))[None, :].astype(jnp.float32)

    kernel_params = (w1_k, b1_k, w2_k, b2_k, w3_k, b3_k)
    pt_params = (w1_pt, s1, b1, w2_pt, s2, b2, w3_pt, s3, b3)
    return kernel_params, pt_params


def bottleneck_ref(x_nchw, pt_params):
    """Pure-JAX f32 NCHW reference matching the PyTorch forward (eval-mode BN)."""
    w1, s1, b1, w2, s2, b2, w3, s3, b3 = pt_params

    def conv(x, w, pad):
        return lax.conv_general_dilated(
            x, w, window_strides=(1, 1), padding=pad,
            dimension_numbers=('NCHW', 'OIHW', 'NCHW'))

    def bn(x, s, b):
        return x * s[None, :, None, None] + b[None, :, None, None]

    o = jnp.maximum(bn(conv(x_nchw, w1, 'VALID'), s1, b1), 0.0)
    o = jnp.maximum(bn(conv(o, w2, ((1, 1), (1, 1))), s2, b2), 0.0)
    o = bn(conv(o, w3, 'VALID'), s3, b3)
    return jnp.maximum(o + x_nchw, 0.0)


if __name__ == "__main__":
    key = jax.random.PRNGKey(0)
    k_x, k_p = jax.random.split(key)

    N, C, H, W = 2, 16, 16, 16      # in_channels == out_channels, expansion=4 -> mid=4
    x = jax.random.normal(k_x, (N, C, H, W), jnp.float32)

    kernel_params, pt_params = make_params(k_p, in_channels=C, out_channels=C)
    ref = jax.block_until_ready(bottleneck_ref(x, pt_params))

    # Auto-tiled path: whole image per row-block -> halo machinery compiled out.
    out = jax.block_until_ready(bottleneck_forward(x, kernel_params))
    assert out.shape == ref.shape
    # bf16 matmul inputs (f32 accumulation) -> loosen tolerance vs. the f32 reference.
    err = float(jnp.max(jnp.abs(out - ref)))
    assert jnp.allclose(out, ref, atol=5e-2, rtol=5e-2), f"max abs err {err}"

    # Multi-block path: exercises the halo DMA / boundary handling.
    out2 = jax.block_until_ready(bottleneck_forward(x, kernel_params, h_tile_override=8))
    err2 = float(jnp.max(jnp.abs(out2 - ref)))
    assert jnp.allclose(out2, ref, atol=5e-2, rtol=5e-2), f"max abs err {err2}"

    print("KERNEL_OK")
</pallas_src>

<mosaic_0001>
module attributes {stable_mosaic.version = 11 : i64} {
  func.func @kernel(%arg0: i32, %arg1: i32, %arg2: memref<1x16x16x128xf32, #tpu.memory_space<vmem>>, %arg3: memref<128x128xbf16, #tpu.memory_space<vmem>>, %arg4: memref<1x128xf32, #tpu.memory_space<vmem>>, %arg5: memref<3x384x128xbf16, #tpu.memory_space<vmem>>, %arg6: memref<1x128xf32, #tpu.memory_space<vmem>>, %arg7: memref<128x128xbf16, #tpu.memory_space<vmem>>, %arg8: memref<1x128xf32, #tpu.memory_space<vmem>>, %arg9: memref<1x16x16x128xf32, #tpu.memory_space<vmem>>, %arg10: memref<18x16x384xbf16, #tpu.memory_space<vmem>>) attributes {dimension_semantics = [#tpu.dimension_semantics<parallel>, #tpu.dimension_semantics<parallel>], iteration_bounds = array<i64: 2, 1>, scalar_prefetch = 0 : i64, scratch_operands = 1 : i64, tpu.core_type = #tpu.core_type<tc>, window_params = [{transform_indices = @transform_0, window_bounds = array<i64: 1, 16, 16, 128>}, {pipeline_mode = #tpu.pipeline_mode<synchronous>, transform_indices = @transform_1, window_bounds = array<i64: 128, 128>}, {pipeline_mode = #tpu.pipeline_mode<synchronous>, transform_indices = @transform_2, window_bounds = array<i64: 1, 128>}, {pipeline_mode = #tpu.pipeline_mode<synchronous>, transform_indices = @transform_3, window_bounds = array<i64: 3, 384, 128>}, {pipeline_mode = #tpu.pipeline_mode<synchronous>, transform_indices = @transform_4, window_bounds = array<i64: 1, 128>}, {pipeline_mode = #tpu.pipeline_mode<synchronous>, transform_indices = @transform_5, window_bounds = array<i64: 128, 128>}, {pipeline_mode = #tpu.pipeline_mode<synchronous>, transform_indices = @transform_6, window_bounds = array<i64: 1, 128>}, {transform_indices = @transform_7, window_bounds = array<i64: 1, 16, 16, 128>}]} {
    %c0 = arith.constant 0 : index
    %c0_0 = arith.constant 0 : index
    %c0_1 = arith.constant 0 : index
    %c0_2 = arith.constant 0 : index
    %0 = vector.load %arg2[%c0, %c0_0, %c0_1, %c0_2] : memref<1x16x16x128xf32, #tpu.memory_space<vmem>>, vector<1x16x16x128xf32>
    %1 = vector.shape_cast %0 : vector<1x16x16x128xf32> to vector<256x128xf32>
    %c0_3 = arith.constant 0 : index
    %c0_4 = arith.constant 0 : index
    %2 = vector.load %arg3[%c0_3, %c0_4] : memref<128x128xbf16, #tpu.memory_space<vmem>>, vector<128x128xbf16>
    %c0_5 = arith.constant 0 : index
    %c0_6 = arith.constant 0 : index
    %3 = vector.load %arg4[%c0_5, %c0_6] : memref<1x128xf32, #tpu.memory_space<vmem>>, vector<1x128xf32>
    %4 = arith.truncf %1 : vector<256x128xf32> to vector<256x128xbf16>
    %cst = arith.constant dense<0.000000e+00> : vector<256x128xf32>
    %5 = tpu.matmul %4, %2, %cst {dimension_numbers = #tpu.dot_dimension_numbers<[1], [0], [0], [1], [0, 0, 1, 1], [], []>} : vector<256x128xbf16>, vector<128x128xbf16>, vector<256x128xf32> -> vector<256x128xf32>
    %6 = vector.broadcast %3 : vector<1x128xf32> to vector<256x128xf32>
    %7 = arith.addf %5, %6 : vector<256x128xf32>
    %cst_7 = arith.constant 0.000000e+00 : f32
    %8 = vector.broadcast %cst_7 : f32 to vector<256x128xf32>
    %9 = arith.maximumf %7, %8 : vector<256x128xf32>
    %10 = vector.shape_cast %9 : vector<256x128xf32> to vector<16x16x128xf32>
    %11 = arith.truncf %10 : vector<16x16x128xf32> to vector<16x16x128xbf16>
    %cst_8 = arith.constant 0.000000e+00 : bf16
    %12 = vector.broadcast %cst_8 : bf16 to vector<16x1x128xbf16>
    %13 = vector.extract_strided_slice %11 {offsets = [0, 0, 0], sizes = [16, 15, 128], strides = [1, 1, 1]} : vector<16x16x128xbf16> to vector<16x15x128xbf16>
    %14 = tpu.concatenate %12, %13 in 1 : vector<16x1x128xbf16>, vector<16x15x128xbf16> -> vector<16x16x128xbf16>
    %15 = vector.extract_strided_slice %11 {offsets = [0, 1, 0], sizes = [16, 15, 128], strides = [1, 1, 1]} : vector<16x16x128xbf16> to vector<16x15x128xbf16>
    %16 = tpu.concatenate %15, %12 in 1 : vector<16x15x128xbf16>, vector<16x1x128xbf16> -> vector<16x16x128xbf16>
    %17 = tpu.concatenate %14, %11, %16 in 2 : vector<16x16x128xbf16>, vector<16x16x128xbf16>, vector<16x16x128xbf16> -> vector<16x16x384xbf16>
    %c1 = arith.constant 1 : index
    %c0_9 = arith.constant 0 : index
    %c0_10 = arith.constant 0 : index
    %18 = vector.load %arg10[%c1, %c0_9, %c0_10] : memref<18x16x384xbf16, #tpu.memory_space<vmem>>, vector<16x16x384xbf16>
    tpu.vector_store %arg10[%c1, %c0_9, %c0_10], %17 {strides = array<i32>} : memref<18x16x384xbf16, #tpu.memory_space<vmem>>, vector<16x16x384xbf16>,
    %cst_11 = arith.constant 0.000000e+00 : bf16
    %19 = vector.broadcast %cst_11 : bf16 to vector<1x16x384xbf16>
    %c0_12 = arith.constant 0 : index
    %c0_13 = arith.constant 0 : index
    %c0_14 = arith.constant 0 : index
    %20 = vector.load %arg10[%c0_12, %c0_13, %c0_14] : memref<18x16x384xbf16, #tpu.memory_space<vmem>>, vector<1x16x384xbf16>
    tpu.vector_store %arg10[%c0_12, %c0_13, %c0_14], %19 {strides = array<i32>} : memref<18x16x384xbf16, #tpu.memory_space<vmem>>, vector<1x16x384xbf16>,
    %c17 = arith.constant 17 : index
    %c0_15 = arith.constant 0 : index
    %c0_16 = arith.constant 0 : index
    %21 = vector.load %arg10[%c17, %c0_15, %c0_16] : memref<18x16x384xbf16, #tpu.memory_space<vmem>>, vector<1x16x384xbf16>
    tpu.vector_store %arg10[%c17, %c0_15, %c0_16], %19 {strides = array<i32>} : memref<18x16x384xbf16, #tpu.memory_space<vmem>>, vector<1x16x384xbf16>,
    %c0_17 = arith.constant 0 : index
    %c0_18 = arith.constant 0 : index
    %c0_19 = arith.constant 0 : index
    %22 = vector.load %arg10[%c0_17, %c0_18, %c0_19] : memref<18x16x384xbf16, #tpu.memory_space<vmem>>, vector<16x16x384xbf16>
    %23 = vector.shape_cast %22 : vector<16x16x384xbf16> to vector<256x384xbf16>
    %c0_20 = arith.constant 0 : index
    %c0_21 = arith.constant 0 : index
    %c0_22 = arith.constant 0 : index
    %24 = vector.load %arg5[%c0_20, %c0_21, %c0_22] : memref<3x384x128xbf16, #tpu.memory_space<vmem>>, vector<1x384x128xbf16>
    %25 = vector.shape_cast %24 : vector<1x384x128xbf16> to vector<384x128xbf16>
    %cst_23 = arith.constant dense<0.000000e+00> : vector<256x128xf32>
    %26 = tpu.matmul %23, %25, %cst_23 {dimension_numbers = #tpu.dot_dimension_numbers<[1], [0], [0], [1], [0, 0, 1, 1], [], []>} : vector<256x384xbf16>, vector<384x128xbf16>, vector<256x128xf32> -> vector<256x128xf32>
    %c1_24 = arith.constant 1 : index
    %c0_25 = arith.constant 0 : index
    %c0_26 = arith.constant 0 : index
    %27 = vector.load %arg10[%c1_24, %c0_25, %c0_26] : memref<18x16x384xbf16, #tpu.memory_space<vmem>>, vector<16x16x384xbf16>
    %28 = vector.shape_cast %27 : vector<16x16x384xbf16> to vector<256x384xbf16>
    %c1_27 = arith.constant 1 : index
    %c0_28 = arith.constant 0 : index
    %c0_29 = arith.constant 0 : index
    %29 = vector.load %arg5[%c1_27, %c0_28, %c0_29] : memref<3x384x128xbf16, #tpu.memory_space<vmem>>, vector<1x384x128xbf16>
    %30 = vector.shape_cast %29 : vector<1x384x128xbf16> to vector<384x128xbf16>
    %cst_30 = arith.constant dense<0.000000e+00> : vector<256x128xf32>
    %31 = tpu.matmul %28, %30, %cst_30 {dimension_numbers = #tpu.dot_dimension_numbers<[1], [0], [0], [1], [0, 0, 1, 1], [], []>} : vector<256x384xbf16>, vector<384x128xbf16>, vector<256x128xf32> -> vector<256x128xf32>
    %32 = arith.addf %26, %31 : vector<256x128xf32>
    %c2 = arith.constant 2 : index
    %c0_31 = arith.constant 0 : index
    %c0_32 = arith.constant 0 : index
    %33 = vector.load %arg10[%c2, %c0_31, %c0_32] : memref<18x16x384xbf16, #tpu.memory_space<vmem>>, vector<16x16x384xbf16>
    %34 = vector.shape_cast %33 : vector<16x16x384xbf16> to vector<256x384xbf16>
    %c2_33 = arith.constant 2 : index
    %c0_34 = arith.constant 0 : index
    %c0_35 = arith.constant 0 : index
    %35 = vector.load %arg5[%c2_33, %c0_34, %c0_35] : memref<3x384x128xbf16, #tpu.memory_space<vmem>>, vector<1x384x128xbf16>
    %36 = vector.shape_cast %35 : vector<1x384x128xbf16> to vector<384x128xbf16>
    %cst_36 = arith.constant dense<0.000000e+00> : vector<256x128xf32>
    %37 = tpu.matmul %34, %36, %cst_36 {dimension_numbers = #tpu.dot_dimension_numbers<[1], [0], [0], [1], [0, 0, 1, 1], [], []>} : vector<256x384xbf16>, vector<384x128xbf16>, vector<256x128xf32> -> vector<256x128xf32>
    %38 = arith.addf %32, %37 : vector<256x128xf32>
    %c0_37 = arith.constant 0 : index
    %c0_38 = arith.constant 0 : index
    %39 = vector.load %arg6[%c0_37, %c0_38] : memref<1x128xf32, #tpu.memory_space<vmem>>, vector<1x128xf32>
    %40 = vector.broadcast %39 : vector<1x128xf32> to vector<256x128xf32>
    %41 = arith.addf %38, %40 : vector<256x128xf32>
    %cst_39 = arith.constant 0.000000e+00 : f32
    %42 = vector.broadcast %cst_39 : f32 to vector<256x128xf32>
    %43 = arith.maximumf %41, %42 : vector<256x128xf32>
    %44 = arith.truncf %43 : vector<256x128xf32> to vector<256x128xbf16>
    %c0_40 = arith.constant 0 : index
    %c0_41 = arith.constant 0 : index
    %45 = vector.load %arg7[%c0_40, %c0_41] : memref<128x128xbf16, #tpu.memory_space<vmem>>, vector<128x128xbf16>
    %cst_42 = arith.constant dense<0.000000e+00> : vector<256x128xf32>
    %46 = tpu.matmul %44, %45, %cst_42 {dimension_numbers = #tpu.dot_dimension_numbers<[1], [0], [0], [1], [0, 0, 1, 1], [], []>} : vector<256x128xbf16>, vector<128x128xbf16>, vector<256x128xf32> -> vector<256x128xf32>
    %c0_43 = arith.constant 0 : index
    %c0_44 = arith.constant 0 : index
    %47 = vector.load %arg8[%c0_43, %c0_44] : memref<1x128xf32, #tpu.memory_space<vmem>>, vector<1x128xf32>
    %48 = vector.broadcast %47 : vector<1x128xf32> to vector<256x128xf32>
    %49 = arith.addf %46, %48 : vector<256x128xf32>
    %50 = vector.shape_cast %49 : vector<256x128xf32> to vector<1x16x16x128xf32>
    %c0_45 = arith.constant 0 : index
    %c0_46 = arith.constant 0 : index
    %c0_47 = arith.constant 0 : index
    %c0_48 = arith.constant 0 : index
    %51 = vector.load %arg2[%c0_45, %c0_46, %c0_47, %c0_48] : memref<1x16x16x128xf32, #tpu.memory_space<vmem>>, vector<1x16x16x128xf32>
    %52 = arith.addf %50, %51 : vector<1x16x16x128xf32>
    %cst_49 = arith.constant 0.000000e+00 : f32
    %53 = vector.broadcast %cst_49 : f32 to vector<1x16x16x128xf32>
    %54 = arith.maximumf %52, %53 : vector<1x16x16x128xf32>
    %c0_50 = arith.constant 0 : index
    %c0_51 = arith.constant 0 : index
    %c0_52 = arith.constant 0 : index
    %c0_53 = arith.constant 0 : index
    %55 = vector.load %arg9[%c0_50, %c0_51, %c0_52, %c0_53] : memref<1x16x16x128xf32, #tpu.memory_space<vmem>>, vector<1x16x16x128xf32>
    tpu.vector_store %arg9[%c0_50, %c0_51, %c0_52, %c0_53], %54 {strides = array<i32>} : memref<1x16x16x128xf32, #tpu.memory_space<vmem>>, vector<1x16x16x128xf32>,
    return
  }
  func.func @transform_0(%arg0: i32, %arg1: i32) -> (i32, i32, i32, i32) {
    %c0_i32 = arith.constant 0 : i32
    %c0_i32_0 = arith.constant 0 : i32
    %c0_i32_1 = arith.constant 0 : i32
    return %arg0, %arg1, %c0_i32, %c0_i32_0 : i32, i32, i32, i32
  }
  func.func @transform_1(%arg0: i32, %arg1: i32) -> (i32, i32) {
    %c0_i32 = arith.constant 0 : i32
    %c0_i32_0 = arith.constant 0 : i32
    %c0_i32_1 = arith.constant 0 : i32
    return %c0_i32, %c0_i32_0 : i32, i32
  }
  func.func @transform_2(%arg0: i32, %arg1: i32) -> (i32, i32) {
    %c0_i32 = arith.constant 0 : i32
    %c0_i32_0 = arith.constant 0 : i32
    %c0_i32_1 = arith.constant 0 : i32
    return %c0_i32, %c0_i32_0 : i32, i32
  }
  func.func @transform_3(%arg0: i32, %arg1: i32) -> (i32, i32, i32) {
    %c0_i32 = arith.constant 0 : i32
    %c0_i32_0 = arith.constant 0 : i32
    %c0_i32_1 = arith.constant 0 : i32
    %c0_i32_2 = arith.constant 0 : i32
    return %c0_i32, %c0_i32_0, %c0_i32_1 : i32, i32, i32
  }
  func.func @transform_4(%arg0: i32, %arg1: i32) -> (i32, i32) {
    %c0_i32 = arith.constant 0 : i32
    %c0_i32_0 = arith.constant 0 : i32
    %c0_i32_1 = arith.constant 0 : i32
    return %c0_i32, %c0_i32_0 : i32, i32
  }
  func.func @transform_5(%arg0: i32, %arg1: i32) -> (i32, i32) {
    %c0_i32 = arith.constant 0 : i32
    %c0_i32_0 = arith.constant 0 : i32
    %c0_i32_1 = arith.constant 0 : i32
    return %c0_i32, %c0_i32_0 : i32, i32
  }
  func.func @transform_6(%arg0: i32, %arg1: i32) -> (i32, i32) {
    %c0_i32 = arith.constant 0 : i32
    %c0_i32_0 = arith.constant 0 : i32
    %c0_i32_1 = arith.constant 0 : i32
    return %c0_i32, %c0_i32_0 : i32, i32
  }
  func.func @transform_7(%arg0: i32, %arg1: i32) -> (i32, i32, i32, i32) {
    %c0_i32 = arith.constant 0 : i32
    %c0_i32_0 = arith.constant 0 : i32
    %c0_i32_1 = arith.constant 0 : i32
    return %arg0, %arg1, %c0_i32, %c0_i32_0 : i32, i32, i32, i32
  }
}

</mosaic_0001>

<bundles_post_ra>
// kernel: tpu_custom_call.1
= control target key start
LH: loop header
LB: loop body
LE: loop exit
PB: predicated region body
PF: predicated region fallthrough
CT: control target
= control target key end

     0   :  { %s6800_s0 = inlined_call_operand.hbm [shape: f32[2,16,16,128], index: 0, kind: input, shape index: {}]   ;;  %s6801_s1 = inlined_call_operand.hbm [shape: bf16[128,128], index: 1, kind: input, shape index: {}]   ;;  %s6802_s2 = inlined_call_operand.vmem [shape: f32[1,128], index: 2, kind: input, shape index: {}]   ;;  %s6803_s3 = inlined_call_operand.hbm [shape: bf16[3,384,128], index: 3, kind: input, shape index: {}]   ;;  %s6804_s4 = inlined_call_operand.vmem [shape: f32[1,128], index: 4, kind: input, shape index: {}]   ;;  %s6805_s5 = inlined_call_operand.hbm [shape: bf16[128,128], index: 5, kind: input, shape index: {}]   ;;  %s6806_s6 = inlined_call_operand.vmem [shape: f32[1,128], index: 6, kind: input, shape index: {}]   ;;  %s6807_s7 = inlined_call_operand.hbm [shape: f32[2,16,16,128], index: 7, kind: output, shape index: {}]  }
   0x1   :  { %6811 = sst [smem:[#allocation29_spill]] %s6801_s1 }
   0x2   :  { %6812 = sst [smem:[#allocation30_spill]] %s6803_s3 }
   0x3   :  { %6813 = sst [smem:[#allocation31_spill]] %s6805_s5 }
   0x4   :  { %12 = vsyncpa [#allocation4], 0 }
   0x5   :  { %14 = vsyncpa [#allocation4 + $0x1], 0 }
   0x6   :  { %15 = vsyncpa [#allocation7], 0 }
   0x7   :  { %16 = vsyncpa [#allocation10], 0 }
   0x8   :  { %17 = vsyncpa [#allocation5], 0 }
   0x9   :  { %19 = vsyncpa [#allocation5 + $0x1], 0  ;;  %s5681_s24 = smov 0   ;;  %s5683_s25 = smov 0  }
   0xa   :  { %s5685_s26 = smov 0   ;;  %s5687_s27 = smov 0  }
   0xb   :  { %s5689_s28 = smov 0   ;;  %s5691_s29 = smov 0  }
   0xc LB: > { %6814 = sst [smem:[#allocation16_spill]] %s5629_s29  ;;  %s4108_s30 = sadd.s32 4294967295, %s5629_s29   ;;  %s5629_s29 = sphi %s5691_s29, %s25_s29   ;;  %s5625_s28 = sphi %s5689_s28, %s6869_s28   ;;  %s5621_s27 = sphi %s5687_s27, %s6868_s27   ;;  %s5617_s26 = sphi %s5685_s26, %s6867_s26   ;;  %s5613_s25 = sphi %s5683_s25, %s6866_s25   ;;  %s5609_s24 = sphi %s5681_s24, %s6865_s24  }
   0xd   : > { %s4109_s8 = sadd.s32 4294967294, %s5629_s29   ;;  %p59_p0 = scmp.ne.s32.totalorder %s5613_s25, %s5609_s24 }
   0xe   : > { %p5715_p1 = scmp.eq.s32.totalorder %s4108_s30, 0  ;;  %p5719_p2 = scmp.eq.s32.totalorder %s4108_s30, 1 }
   0xf   : > { %p217_p3 = scmp.eq.s32.totalorder %s4109_s8, 1  ;;  %p4110_p5 = scmp.ge.s32.totalorder %s5629_s29, 1 }
  0x10   : > { %p5725_p4 = por %p5715_p1, %p59_p0  ;;  %p224_p7 = scmp.lt.s32.totalorder %s5629_s29, 3 }
  0x11   : > { %p5730_p6 = por %p217_p3, %p59_p0  ;;  %s6819_s1 = sld [smem:[#allocation29_spill]] }
  0x12   : > { %p5738_p8 = pnand %p4110_p5, %p224_p7  ;;  %s5631_s17 = smov [#allocation6]  }
  0x13   : > { %s237_s18 = sshll.u32 %s5631_s17, 4  ;;  %p4114_p11 = scmp.ge.s32.totalorder %s5629_s29, 2  ;;  %s238_s18 = int_to_ptr.vmem [resolvable:$true] %s237_s18 }
  0x14   : > { %p5331_p9 = pneg %p5738_p8  ;;  %s6822_s3 = sld [smem:[#allocation30_spill]] }
  0x15   : > { %s5632_s23 = smov 64   ;;  %s5633_s30 = smov 4  }
  0x16   : > { %p5746_p10 = pnand %p5331_p9, %p5715_p1  ;;  %s5634_s8 = smov [#allocation8]  }
  0x17   : > { %s235_s15 = sshll.u32 %s6819_s1, 4  ;;  %s254_s13 = sshll.u32 %s5634_s8, 4  ;;  %s236_s15 = int_to_ptr.hbm [resolvable:$true] %s235_s15  ;;  %s255_s13 = int_to_ptr.vmem [resolvable:$true] %s254_s13 }
  0x18   : > { %5334 = dma.hbm_to_vmem [thread:$0]  (!%p5746_p10), %s236_s15, 1024, %s238_s18, [#allocation7], %s5632_s23, %s5632_s23, %s5633_s30  }
  0x19   : > { %s6823_s5 = sld [smem:[#allocation31_spill]]  ;;  %s5635_s20 = smov [#allocation9]  }
  0x1a   : > { %s252_s22 = sshll.u32 %s6822_s3, 4  ;;  %s271_s21 = sshll.u32 %s5635_s20, 4  ;;  %s253_s22 = int_to_ptr.hbm [resolvable:$true] %s252_s22  ;;  %s272_s21 = int_to_ptr.vmem [resolvable:$true] %s271_s21 }
  0x1b   : > { %5337 = dma.hbm_to_vmem [thread:$0]  (!%p5746_p10), %s253_s22, 9216, %s255_s13, [#allocation7], %s5632_s23, %s5632_s23, %s5633_s30  }
  0x1c   : > { %s37_s15 = sadd.s32 1, %s5625_s28  ;;  %s46_s18 = sadd.s32 1, %s5617_s26 }
  0x1d   : > { %p39_p12 = scmp.ge.s32.totalorder %s37_s15, 2  ;;  %p53_p13 = scmp.ne.s32.totalorder %s5617_s26, %s5613_s25 }
  0x1e   : > { %p54_p0 = scmp.eq.s32.totalorder %s5629_s29, 0  ;;  %p5352_p7 = scmp.lt.s32.totalorder %s5629_s29, 2 }
  0x1f   : > { %s269_s1 = sshll.u32 %s6823_s5, 4  ;;  %s6871_s15 = smov (%p39_p12, %s37_s15), 0  ;;  %s270_s1 = int_to_ptr.hbm [resolvable:$true] %s269_s1 }
  0x20   : > { %5340 = dma.hbm_to_vmem [thread:$0]  (!%p5746_p10), %s270_s1, 1024, %s272_s21, [#allocation10], %s5632_s23, %s5632_s23, %s5633_s30  }
  0x21   : > { %6824 = sst [smem:[#allocation17_spill]] %s6871_s15  ;;  %p5770_p3 = por %p54_p0, %p53_p13 }
  0x22   : > { %p5776_p5 = por %p5719_p2, %p53_p13  ;;  %s41_s19 = ssub.s32 %s5625_s28, %s6871_s15 }
  0x23   : > { %p44_p9 = scmp.eq.s32.totalorder %s41_s19, 0  ;;  %s288_s1 = sand.u32 1, %s5617_s26  }
  0x24   : > { %s4115_s23 = sshll.u32 %s288_s1, 8  ;;  %s5057_s13 = sshll.u32 %s5625_s28, 8 }
  0x25   : > { %s5785_s30 = scalar_select %p44_p9, %s5617_s26, %s46_s18  }
  0x26   : > { %s300_s20 = scalar_lea.hbm %s6800_s0, %s5057_s13  ;;  %s292_s21 = scalar_lea.vmem [#allocation3], %s4115_s23 }
  0x27   : > { %s303_s3 = sshll.u32 %s292_s21, 4  ;;  %s301_s10 = sshll.u32 %s300_s20, 4  ;;  %s304_s3 = int_to_ptr.vmem [resolvable:$true] %s303_s3  ;;  %s302_s10 = int_to_ptr.hbm [resolvable:$true] %s301_s10 }
  0x28   : > { %p5342_p2 = pnand %p5352_p7, %p5770_p3  ;;  %s289_s5 = scalar_lea.sflag [#allocation4], %s288_s1 }
  0x29   : > { %s5636_s15 = smov 128   ;;  %s5637_s29 = smov 8  }
  0x2a   : > { %5344 = dma.hbm_to_vmem [thread:$0]  (!%p5342_p2), %s302_s10, 4096, %s304_s3, %s289_s5, %s5636_s15, %s5636_s15, %s5637_s29  }
  0x2b   : > { %315 = sbr.rel (%p5738_p8) target bundleno = 1240 (0x4d8), region = 48 }
  0x30   : > { %s5796_s18 = sand.u32 1, %s5613_s25  }
  0x31   : > { %s4119_s19 = sshll.u32 %s5796_s18, 8  ;;  %s318_s23 = scalar_lea.sflag [#allocation4], %s5796_s18 }
  0x32   : > { %s5802_s13 = scalar_lea.vmem [#allocation3], %s4119_s19 }
  0x33   : > { %5592 = dma.done.wait (%p5725_p4), %s318_s23, 4096  }
  0x34   : > { %5594 = vsyncadd (%p5725_p4), %s318_s23, 4294963200 }
  0x35   : > { %5596 = dma.done.wait (%p5715_p1), [#allocation7], 10240  }
  0x36   : > { %5598 = vsyncadd (%p5715_p1), [#allocation7], 4294957056 }
  0x37   : > { %5600 = dma.done.wait (%p5715_p1), [#allocation10], 1024  }
  0x38   : > { %5602 = vsyncadd (%p5715_p1), [#allocation10], 4294966272  ;;  %v5065_v0 = vld [vmem:[#allocation6 + $0x38] sm:$0xff]  ;;  %v5064_v1 = vld [vmem:[#allocation6 + $0x30] sm:$0xff]  ;;  %vm848_vm0 = vcmask 1040384   ;;  %vm915_vm2 = vcmask 1047552  }
  0x39   : > { %487 = vmatpush.bf16.msra.mxu0 %v5065_v0  ;;  %5291 = vmatpush.bf16.msra.mxu3 %v5065_v0  ;;  %v5063_v2 = vld [vmem:[#allocation6 + $0x28] sm:$0xff]  ;;  %v5062_v3 = vld [vmem:[#allocation6 + $0x20] sm:$0xff]  ;;  %v5061_v4 = vld [vmem:[#allocation6 + $0x18] sm:$0xff]  ;;  %vm849_vm1 = vsmask.f32 256  ;;  %s6634_s1 = scalar_lea.vmem [#allocation11], %s4119_s19 }
  0x3a   : > { %v5060_v5 = vld [vmem:[#allocation6 + $0x10] sm:$0xff]  ;;  %v5059_v6 = vld [vmem:[#allocation6 + $0x8] sm:$0xff]  ;;  %v5058_v7 = vld [vmem:[#allocation6] sm:$0xff]  ;;  %vm916_vm3 = vsmask.f32 7424  ;;  %s5290_s14 = sshll.u32 %s5621_s27, 8 }
  0x3b   : > { %v371_v8 = vld [vmem:[%s5802_s13] sm:$0xff]  ;;  %v372_v9 = vld [vmem:[%s5802_s13 + $0x8] sm:$0xff]  ;;  %v373_v14 = vld [vmem:[%s5802_s13 + $0x10] sm:$0xff]  ;;  %s3988_s21 = scalar_lea.hbm %s6807_s7, %s5290_s14  ;;  %s3989_s10 = sshll.u32 %s6634_s1, 4  ;;  %s3990_s10 = int_to_ptr.vmem [resolvable:$true] %s3989_s10 }
  0x3c   : > { %v395_v10 = vld [vmem:[%s5802_s13 + $0xc0] sm:$0xff]  ;;  %v396_v11 = vld [vmem:[%s5802_s13 + $0xc8] sm:$0xff]  ;;  %v420_v12 = vpack.c.bf16 %v372_v9, %v371_v8  ;;  %v374_v15 = vld [vmem:[%s5802_s13 + $0x18] sm:$0xff]  ;;  %s3991_s19 = sshll.u32 %s3988_s21, 4  ;;  %s3974_s23 = scalar_lea.sflag [#allocation5], %s5796_s18  ;;  %s3992_s19 = int_to_ptr.hbm [resolvable:$true] %s3991_s19 }
  0x3d   : > { %488 = vmatpush.bf16.msra.mxu0 %v5064_v1  ;;  %5292 = vmatpush.bf16.msra.mxu3 %v5064_v1  ;;  %v432_v13 = vpack.c.bf16 %v396_v11, %v395_v10  ;;  %v397_v16 = vld [vmem:[%s5802_s13 + $0xd0] sm:$0xff]  ;;  %v398_v17 = vld [vmem:[%s5802_s13 + $0xd8] sm:$0xff]  ;;  %v421_v18 = vpack.c.bf16 %v374_v15, %v373_v14  ;;  %v375_v20 = vld [vmem:[%s5802_s13 + $0x20] sm:$0xff]  ;;  %s5553_s27 = sshra.s32 %s3992_s19, 4  ;;  %s5554_s27 = int_to_ptr.hbm [resolvable:$true] %s5553_s27 }
  0x3e   : > { %v433_v19 = vpack.c.bf16 %v398_v17, %v397_v16  ;;  %v376_v21 = vld [vmem:[%s5802_s13 + $0x28] sm:$0xff]  ;;  %v399_v22 = vld [vmem:[%s5802_s13 + $0xe0] sm:$0xff]  ;;  %v377_v26 = vld [vmem:[%s5802_s13 + $0x30] sm:$0xff]  ;;  %s5555_s3 = scalar_lea.hbm %s5554_s27, 256  ;;  %p5560_p10 = scmp.lt.s32.totalorder %s5554_s27, %s6807_s7 }
  0x3f   : > { %v400_v23 = vld [vmem:[%s5802_s13 + $0xe8] sm:$0xff]  ;;  %v422_v24 = vpack.c.bf16 %v376_v21, %v375_v20  ;;  %v378_v27 = vld [vmem:[%s5802_s13 + $0x38] sm:$0xff]  ;;  %v401_v28 = vld [vmem:[%s5802_s13 + $0xf0] sm:$0xff]  ;;  %p5556_p1 = scmp.ne.s32.totalorder %s5554_s27, %s5555_s3 }
  0x40   : > { %v434_v25 = vpack.c.bf16 %v400_v23, %v399_v22  ;;  %v402_v29 = vld [vmem:[%s5802_s13 + $0xf8] sm:$0xff]  ;;  %v423_v30 = vpack.c.bf16 %v378_v27, %v377_v26  ;;  %v379_v32 = vld [vmem:[%s5802_s13 + $0x40] sm:$0xff]  ;;  %v380_v33 = vld [vmem:[%s5802_s13 + $0x48] sm:$0xff] }
  0x41   : > { %489 = vmatpush.bf16.msra.mxu0 %v5063_v2  ;;  %5293 = vmatpush.bf16.msra.mxu3 %v5063_v2  ;;  %v435_v31 = vpack.c.bf16 %v402_v29, %v401_v28  ;;  %v424_v34 = vpack.c.bf16 %v380_v33, %v379_v32  ;;  %v381_v35 = vld [vmem:[%s5802_s13 + $0x50] sm:$0xff]  ;;  %v382_v36 = vld [vmem:[%s5802_s13 + $0x58] sm:$0xff]  ;;  %v383_v38 = vld [vmem:[%s5802_s13 + $0x60] sm:$0xff]  ;;  %p5557_p4 = pnand %p5556_p1, %p5776_p5 }
  0x42   : > { %v425_v37 = vpack.c.bf16 %v382_v36, %v381_v35  ;;  %v384_v39 = vld [vmem:[%s5802_s13 + $0x68] sm:$0xff]  ;;  %v5193_v41 = vld [vmem:[#allocation8 + $0xf8] sm:$0xff]  ;;  %v385_v43 = vld [vmem:[%s5802_s13 + $0x70] sm:$0xff] }
  0x43   : > { %v426_v40 = vpack.c.bf16 %v384_v39, %v383_v38  ;;  %v5201_v42 = vld [vmem:[#allocation8 + $0x138] sm:$0xff]  ;;  %1857 = vmatpush.bf16.msra.mxu1 %v5193_v41  ;;  %v5192_v45 = vld [vmem:[#allocation8 + $0xf0] sm:$0xff]  ;;  %v5191_v48 = vld [vmem:[#allocation8 + $0xe8] sm:$0xff]  ;;  %p5558_p8 = pneg %p5557_p4 }
  0x44   : > { %v386_v44 = vld [vmem:[%s5802_s13 + $0x78] sm:$0xff]  ;;  %1946 = vmatpush.bf16.msra.mxu2 %v5201_v42  ;;  %v5840_v46 = vld [vmem:[#allocation8 + $0x130] sm:$0xff]  ;;  %v5843_v49 = vld [vmem:[#allocation8 + $0x128] sm:$0xff] }
  0x45   : > { %490 = vmatpush.bf16.msra.mxu0 %v5062_v3  ;;  %5294 = vmatpush.bf16.msra.mxu3 %v5062_v3  ;;  %v427_v47 = vpack.c.bf16 %v386_v44, %v385_v43  ;;  %v5190_v50 = vld [vmem:[#allocation8 + $0xe0] sm:$0xff]  ;;  %v388_v53 = vld [vmem:[%s5802_s13 + $0x88] sm:$0xff]  ;;  %v5189_v54 = vld [vmem:[#allocation8 + $0xd8] sm:$0xff] }
  0x46   : > { %v5846_v51 = vld [vmem:[#allocation8 + $0x120] sm:$0xff]  ;;  %v5851_v55 = vld [vmem:[#allocation8 + $0x118] sm:$0xff]  ;;  %v5857_v56 = vld [vmem:[%s6802_s2] ss:$0 sm:$0xff] }
  0x47   : > { %1858 = vmatpush.bf16.msra.mxu1 %v5192_v45  ;;  %v387_v52 = vld [vmem:[%s5802_s13 + $0x80] sm:$0xff]  ;;  %v5188_v59 = vld [vmem:[#allocation8 + $0xd0] sm:$0xff]  ;;  %v5187_v62 = vld [vmem:[#allocation8 + $0xc8] sm:$0xff] }
  0x48   : > { %1947 = vmatpush.bf16.msra.mxu2 %v5840_v46  ;;  %v428_v57 = vpack.c.bf16 %v388_v53, %v387_v52  ;;  %v5859_v60 = vld [vmem:[#allocation8 + $0x110] sm:$0xff]  ;;  %v5863_v63 = vld [vmem:[#allocation8 + $0x108] sm:$0xff]  ;;  %v5121_v3 = vld [vmem:[#allocation8 + $0x38] sm:$0xff] }
  0x49   : > { %491 = vmatpush.bf16.msra.mxu0 %v5061_v4  ;;  %5295 = vmatpush.bf16.msra.mxu3 %v5061_v4  ;;  %v5120_v11 = vld [vmem:[#allocation8 + $0x30] sm:$0xff]  ;;  %v5119_v21 = vld [vmem:[#allocation8 + $0x28] sm:$0xff]  ;;  %vm5886_vm4 = vmand %vm848_vm0, %vm849_vm1 }
  0x4a   : > { %vm5891_vm5 = vmand %vm915_vm2, %vm916_vm3 }
  0x4b   : > { %1859 = vmatpush.bf16.msra.mxu1 %v5191_v48 }
  0x4c   : > { %1948 = vmatpush.bf16.msra.mxu2 %v5843_v49 }
  0x4d   : > { %492 = vmatpush.bf16.msra.mxu0 %v5060_v5  ;;  %5296 = vmatpush.bf16.msra.mxu3 %v5060_v5  ;;  %v5186_v5 = vld [vmem:[#allocation8 + $0xc0] sm:$0xff] }
  0x4f   : > { %1860 = vmatpush.bf16.msra.mxu1 %v5190_v50 }
  0x50   : > { %1949 = vmatpush.bf16.msra.mxu2 %v5846_v51 }
  0x51   : > { %493 = vmatpush.bf16.msra.mxu0 %v5059_v6  ;;  %5297 = vmatpush.bf16.msra.mxu3 %v5059_v6  ;;  %v5867_v6 = vld [vmem:[#allocation8 + $0x100] sm:$0xff] }
  0x53   : > { %1861 = vmatpush.bf16.msra.mxu1 %v5189_v54 }
  0x54   : > { %1950 = vmatpush.bf16.msra.mxu2 %v5851_v55 }
  0x55   : > { %494 = vmatpush.bf16.msra.mxu0 %v5058_v7  ;;  %5298 = vmatpush.bf16.msra.mxu3 %v5058_v7 }
  0x57   : > { %1862 = vmatpush.bf16.msra.mxu1 %v5188_v59 }
  0x58   : > { %495 = vmatmul.bf16.vlgmr.msra.gmra.mxu0 %v420_v12  ;;  %555 = vmatmul.bf16.vlgmr.msra.gmra.mxu3 %v432_v13  ;;  %v389_v12 = vld [vmem:[%s5802_s13 + $0x90] sm:$0xff]  ;;  %v390_v13 = vld [vmem:[%s5802_s13 + $0x98] sm:$0xff] }
  0x59   : > { %5299 = vmatpush.bf16.msrb.mxu3 %v5193_v41  ;;  %1951 = vmatpush.bf16.msra.mxu2 %v5859_v60  ;;  %v429_v20 = vpack.c.bf16 %v390_v13, %v389_v12  ;;  %v5117_v41 = vld [vmem:[#allocation8 + $0x18] sm:$0xff]  ;;  %v5115_v13 = vld [vmem:[#allocation8 + $0x8] sm:$0xff] }
  0x5a   : > { %2524 = vmatpush.bf16.msrb.mxu0 %v5121_v3 }
  0x5b   : > { %1863 = vmatpush.bf16.msra.mxu1 %v5187_v62 }
  0x5d   : > { %5300 = vmatpush.bf16.msrb.mxu3 %v5192_v45  ;;  %1952 = vmatpush.bf16.msra.mxu2 %v5863_v63 }
  0x5e   : > { %2525 = vmatpush.bf16.msrb.mxu0 %v5120_v11 }
  0x5f   : > { %1864 = vmatpush.bf16.msra.mxu1 %v5186_v5 }
  0x61   : > { %5301 = vmatpush.bf16.msrb.mxu3 %v5191_v48  ;;  %1953 = vmatpush.bf16.msra.mxu2 %v5867_v6 }
  0x62   : > { %2526 = vmatpush.bf16.msrb.mxu0 %v5119_v21 }
  0x65   : > { %5302 = vmatpush.bf16.msrb.mxu3 %v5190_v50 }
  0x68   : > { %500 = vmatmul.bf16.gmra.mxu0 %v421_v18  ;;  %560 = vmatmul.bf16.gmra.mxu3 %v433_v19 }
  0x69   : > { %5303 = vmatpush.bf16.msrb.mxu3 %v5189_v54 }
  0x6d   : > { %5304 = vmatpush.bf16.msrb.mxu3 %v5188_v59  ;;  %v392_v59 = vld [vmem:[%s5802_s13 + $0xa8] sm:$0xff] }
  0x71   : > { %5305 = vmatpush.bf16.msrb.mxu3 %v5187_v62 }
  0x75   : > { %5306 = vmatpush.bf16.msrb.mxu3 %v5186_v5 }
  0x78   : > { %505 = vmatmul.bf16.gmra.mxu0 %v422_v24  ;;  %565 = vmatmul.bf16.gmra.mxu3 %v434_v25 }
  0x79   : > { %5307 = vmatpush.bf16.msra.mxu3 %v5201_v42 }
  0x7d   : > { %5308 = vmatpush.bf16.msra.mxu3 %v5840_v46 }
  0x81   : > { %5309 = vmatpush.bf16.msra.mxu3 %v5843_v49 }
  0x85   : > { %5310 = vmatpush.bf16.msra.mxu3 %v5846_v51  ;;  %v391_v51 = vld [vmem:[%s5802_s13 + $0xa0] sm:$0xff] }
  0x88   : > { %510 = vmatmul.bf16.gmra.mxu0 %v423_v30  ;;  %570 = vmatmul.bf16.gmra.mxu3 %v435_v31  ;;  %v5118_v30 = vld [vmem:[#allocation8 + $0x20] sm:$0xff] }
  0x89   : > { %2527 = vmatpush.bf16.msrb.mxu0 %v5118_v30  ;;  %5311 = vmatpush.bf16.msra.mxu3 %v5851_v55 }
  0x8d   : > { %2528 = vmatpush.bf16.msrb.mxu0 %v5117_v41  ;;  %5312 = vmatpush.bf16.msra.mxu3 %v5859_v60 }
  0x91   : > { %5313 = vmatpush.bf16.msra.mxu3 %v5863_v63 }
  0x95   : > { %5314 = vmatpush.bf16.msra.mxu3 %v5867_v6 }
  0x98   : > { %515 = vmatmul.bf16.gmra.mxu0 %v424_v34 }
  0xa8   : > { %520 = vmatmul.bf16.gmra.mxu0 %v425_v37 }
  0xb8   : > { %525 = vmatmul.bf16.gmra.mxu0 %v426_v40 }
  0xc8   : > { %530 = vmatmul.bf16.gmra.mxu0 %v427_v47 }
  0xd5   : > { %v496_v58 = vpop.f32.mrf.mxu0 }
  0xd6   : > { %v497_v61 = vadd.f32 %v5857_v56, %v496_v58 }
  0xd8   : > { %535 = vmatmul.bf16.gmra.mxu0 %v428_v57  ;;  %v576_v1 = vmax.f32 %v497_v61, 0.0  ;;  %v5116_v61 = vld [vmem:[#allocation8 + $0x10] sm:$0xff] }
  0xd9   : > { %2529 = vmatpush.bf16.msrb.mxu0 %v5116_v61 }
  0xda   : > { %v5871_v9 = vpack.c.bf16 %v576_v1, %v576_v1 }
  0xdb   : > { %v556_v0 = vpop.f32.mrf.mxu3 }
  0xdc   : > { %v557_v2 = vadd.f32 %v5857_v56, %v556_v0  ;;  %v672_v17 = vunpack.c.l.b16 %v5871_v9  ;;  %v430_v9 = vpack.c.bf16 %v392_v59, %v391_v51 }
  0xdd   : > { %v498_v4 = vpop.f32.mrf.mxu0  ;;  %2530 = vmatpush.bf16.msrb.mxu0 %v5115_v13 }
  0xde   : > { %v499_v7 = vadd.f32 %v5857_v56, %v498_v4  ;;  %v600_v8 = vmax.f32 %v557_v2, 0.0 }
  0xe0   : > { %v577_v10 = vmax.f32 %v499_v7, 0.0  ;;  %v5875_v15 = vpack.c.bf16 %v600_v8, %v600_v8 }
  0xe2   : > { %v609_v14 = vpack.c.bf16 %v577_v10, %v577_v10  ;;  %v696_v25 = vunpack.c.l.b16 %v5875_v15 }
  0xe3   : > { %v558_v16 = vpop.f32.mrf.mxu3 }
  0xe4   : > { %v673_v18 = vunpack.c.l.b16 %v609_v14  ;;  %v559_v19 = vadd.f32 %v5857_v56, %v558_v16 }
  0xe5   : > { %v501_v22 = vpop.f32.mrf.mxu0 }
  0xe6   : > { %v704_v23 = vpack.c.b16 %v673_v18, %v672_v17  ;;  %v601_v24 = vmax.f32 %v559_v19, 0.0  ;;  %v502_v29 = vadd.f32 %v5857_v56, %v501_v22 }
  0xe8   : > { %v721_v26 = vshrl.u32 %v704_v23, 16  ;;  %v724_v27 = vshll.u32 %v704_v23, 16  ;;  %v5881_v28 = vpack.c.bf16 %v601_v24, %v601_v24  ;;  %540 = vmatmul.bf16.gmra.mxu0 %v429_v20  ;;  %v578_v40 = vmax.f32 %v502_v29, 0.0 }
  0xea   : > { %v723_v31 = vrot.slane %v721_v26, 7  ;;  %v867_v33 = vrot.slane %v724_v27, 1  ;;  %v697_v34 = vunpack.c.l.b16 %v5881_v28  ;;  %v5903_v57 = vpack.c.bf16 %v578_v40, %v578_v40 }
  0xeb   : > { %v561_v36 = vpop.f32.mrf.mxu3  ;;  %v5638_v28 = vmov 0  }
  0xec   : > { %v726_v37 = vor.u32 %v724_v27, %v723_v31  ;;  %v868_v38 = vor.u32 %v867_v33, %v721_v26  ;;  %v716_v39 = vpack.c.b16 %v697_v34, %v696_v25  ;;  %v562_v42 = vadd.f32 %v5857_v56, %v561_v36  ;;  %1223 = vst [vmem:[#allocation2] sm:$0xff] %v5638_v28  ;;  %v5129_v31 = vld [vmem:[#allocation8 + $0x78] sm:$0xff]  ;;  %v5114_v33 = vld [vmem:[#allocation8] sm:$0xff] }
  0xed   : > { %v503_v43 = vpop.f32.mrf.mxu0  ;;  %v674_v19 = vunpack.c.l.b16 %v5903_v57  ;;  %1225 = vst [vmem:[#allocation2 + $0xc] sm:$0xff] %v5638_v28  ;;  %2613 = vmatpush.bf16.msrb.mxu1 %v5129_v31  ;;  %2531 = vmatpush.bf16.msrb.mxu0 %v5114_v33 }
  0xee   : > { %v851_v44 = vsel %vm5886_vm4, 0, %v726_v37  ;;  %v918_v45 = vsel %vm5891_vm5, %v868_v38, 0  ;;  %v805_v46 = vshrl.u32 %v716_v39, 16  ;;  %v808_v47 = vshll.u32 %v716_v39, 16  ;;  %1224 = vst [vmem:[#allocation2 + $0x8] sm:$0xf] %v5638_v28 }
  0xef   : > { %v966_v48 = vunpack.c.l.b16 %v851_v44  ;;  %v967_v49 = vunpack.c.l.b16 %v918_v45  ;;  %v968_v50 = vunpack.c.h.b16 %v851_v44  ;;  %v969_v52 = vunpack.c.h.b16 %v918_v45  ;;  %1226 = vst [vmem:[#allocation2 + $0x14] sm:$0xf] %v5638_v28 }
  0xf0   : > { %v807_v53 = vrot.slane %v805_v46, 7  ;;  %v891_v54 = vrot.slane %v808_v47, 1  ;;  %v504_v58 = vadd.f32 %v5857_v56, %v503_v43  ;;  %v602_v2 = vmax.f32 %v562_v42, 0.0  ;;  %1228 = vst [vmem:[#allocation2 + $0x198] sm:$0xff] %v5638_v28 }
  0xf1   : > { %v1030_v62 = vpack.c.b16 %v672_v17, %v966_v48  ;;  %v1031_v0 = vpack.c.b16 %v967_v49, %v967_v49  ;;  %v1032_v1 = vpack.c.b16 %v673_v18, %v968_v50  ;;  %v1033_v3 = vpack.c.b16 %v969_v52, %v969_v52  ;;  %1229 = vst [vmem:[#allocation2 + $0x1a0] sm:$0xf] %v5638_v28 }
  0xf2   : > { %v810_v4 = vor.u32 %v808_v47, %v807_v53  ;;  %v892_v5 = vor.u32 %v891_v54, %v805_v46  ;;  %v579_v7 = vmax.f32 %v504_v58, 0.0  ;;  %v5917_v20 = vpack.c.bf16 %v602_v2, %v602_v2  ;;  %1230 = vst [vmem:[#allocation2 + $0x1a4] sm:$0xff] %v5638_v28 }
  0xf3   : > { %1159 = vst [vmem:[#allocation2 + $0x18] sm:$0xff] %v1030_v62  ;;  %v563_v8 = vpop.f32.mrf.mxu3  ;;  %v393_v62 = vld [vmem:[%s5802_s13 + $0xb0] sm:$0xff] }
  0xf4   : > { %1160 = vst [vmem:[#allocation2 + $0x20] sm:$0xf] %v1031_v0  ;;  %v863_v10 = vsel %vm5886_vm4, 0, %v810_v4  ;;  %v930_v11 = vsel %vm5891_vm5, %v892_v5, 0  ;;  %v5913_v12 = vpack.c.bf16 %v579_v7, %v579_v7  ;;  %v564_v22 = vadd.f32 %v5857_v56, %v563_v8  ;;  %v394_v0 = vld [vmem:[%s5802_s13 + $0xb8] sm:$0xff] }
  0xf5   : > { %1161 = vst [vmem:[#allocation2 + $0x24] sm:$0xff] %v1032_v1  ;;  %v1014_v55 = vunpack.c.l.b16 %v863_v10  ;;  %v1015_v14 = vunpack.c.l.b16 %v930_v11  ;;  %v1016_v16 = vunpack.c.h.b16 %v863_v10  ;;  %v1017_v17 = vunpack.c.h.b16 %v930_v11  ;;  %v506_v18 = vpop.f32.mrf.mxu0 }
  0xf6   : > { %1162 = vst [vmem:[#allocation2 + $0x2c] sm:$0xf] %v1033_v3  ;;  %v675_v21 = vunpack.c.l.b16 %v5913_v12  ;;  %v507_v27 = vadd.f32 %v5857_v56, %v506_v18  ;;  %v603_v30 = vmax.f32 %v564_v22, 0.0  ;;  %v698_v15 = vunpack.c.l.b16 %v5917_v20 }
  0xf7   : > { %v1078_v23 = vpack.c.b16 %v696_v25, %v1014_v55  ;;  %v1079_v24 = vpack.c.b16 %v1015_v14, %v1015_v14  ;;  %v1080_v26 = vpack.c.b16 %v697_v34, %v1016_v16  ;;  %v1081_v60 = vpack.c.b16 %v1017_v17, %v1017_v17  ;;  %1231 = vst [vmem:[#allocation2 + $0x1ac] sm:$0xf] %v5638_v28 }
  0xf8   : > { %v705_v29 = vpack.c.b16 %v675_v21, %v674_v19  ;;  %545 = vmatmul.bf16.gmra.mxu0 %v430_v9  ;;  %v5932_v36 = vpack.c.bf16 %v603_v30, %v603_v30  ;;  %v580_v38 = vmax.f32 %v507_v27, 0.0  ;;  %v431_v16 = vpack.c.bf16 %v394_v0, %v393_v62 }
  0xf9   : > { %1207 = vst [vmem:[#allocation2 + $0x138] sm:$0xff] %v1078_v23 }
  0xfa   : > { %1208 = vst [vmem:[#allocation2 + $0x140] sm:$0xf] %v1079_v24  ;;  %v728_v25 = vshrl.u32 %v705_v29, 16  ;;  %v731_v34 = vshll.u32 %v705_v29, 16  ;;  %v4158_v37 = vld [vmem:[#allocation2 + $0x18] sm:$0xf]  ;;  %v699_v43 = vunpack.c.l.b16 %v5932_v36  ;;  %v5944_v53 = vpack.c.bf16 %v580_v38, %v580_v38 }
  0xfb   : > { %1209 = vst [vmem:[#allocation2 + $0x144] sm:$0xff] %v1080_v26  ;;  %v566_v39 = vpop.f32.mrf.mxu3  ;;  %v5138_v40 = vld [vmem:[#allocation2 + $0x1c] sm:$0xf] }
  0xfc   : > { %1210 = vst [vmem:[#allocation2 + $0x14c] sm:$0xf] %v1081_v60  ;;  %v730_v41 = vrot.slane %v728_v25, 7  ;;  %v869_v42 = vrot.slane %v731_v34, 1  ;;  %v5139_v63 = vld [vmem:[#allocation2 + $0x20] sm:$0xf0]  ;;  %v567_v44 = vadd.f32 %v5857_v56, %v566_v39  ;;  %v717_v50 = vpack.c.b16 %v699_v43, %v698_v15 }
  0xfd   : > { %v508_v45 = vpop.f32.mrf.mxu0  ;;  %v4159_v46 = vor.u32 %v5139_v63, %v4158_v37  ;;  %v4160_v47 = vld [vmem:[#allocation2 + $0x24] sm:$0xf0]  ;;  %v676_v24 = vunpack.c.l.b16 %v5944_v53 }
  0xfe   : > { %v733_v48 = vor.u32 %v731_v34, %v730_v41  ;;  %v870_v49 = vor.u32 %v869_v42, %v728_v25  ;;  %v509_v52 = vadd.f32 %v5857_v56, %v508_v45  ;;  %v604_v54 = vmax.f32 %v567_v44, 0.0 }
  0xff   : > { %1865 = vmatmul.bf16.vlgmr.msra.gmra.mxu1 %v4159_v46  ;;  %v4163_v58 = vor.u32 %v5138_v40, %v4160_v47  ;;  %v812_v59 = vshrl.u32 %v717_v50, 16  ;;  %v815_v61 = vshll.u32 %v717_v50, 16 }
 0x100   : > { %v852_v6 = vsel %vm5886_vm4, 0, %v733_v48  ;;  %v919_v51 = vsel %vm5891_vm5, %v870_v49, 0  ;;  %v4302_v5 = vld [vmem:[#allocation2 + $0x138] sm:$0xf]  ;;  %v581_v9 = vmax.f32 %v509_v52, 0.0  ;;  %v5963_v26 = vpack.c.bf16 %v604_v54, %v604_v54 }
 0x101   : > { %v970_v1 = vunpack.c.l.b16 %v852_v6  ;;  %v971_v2 = vunpack.c.l.b16 %v919_v51  ;;  %v972_v3 = vunpack.c.h.b16 %v852_v6  ;;  %v973_v4 = vunpack.c.h.b16 %v919_v51  ;;  %1954 = vmatmul.bf16.vlgmr.msra.gmra.mxu2 %v4163_v58 }
 0x102   : > { %v814_v7 = vrot.slane %v812_v59, 7  ;;  %v893_v8 = vrot.slane %v815_v61, 1  ;;  %v5175_v10 = vld [vmem:[#allocation2 + $0x140] sm:$0xf0]  ;;  %v5960_v23 = vpack.c.bf16 %v581_v9, %v581_v9  ;;  %v700_v40 = vunpack.c.l.b16 %v5963_v26 }
 0x103   : > { %v1034_v11 = vpack.c.b16 %v674_v19, %v970_v1  ;;  %v1035_v13 = vpack.c.b16 %v971_v2, %v971_v2  ;;  %v1036_v55 = vpack.c.b16 %v675_v21, %v972_v3  ;;  %v568_v14 = vpop.f32.mrf.mxu3  ;;  %v1037_v17 = vpack.c.b16 %v973_v4, %v973_v4  ;;  %v5128_v1 = vld [vmem:[#allocation8 + $0x70] sm:$0xff] }
 0x104   : > { %v817_v18 = vor.u32 %v815_v61, %v814_v7  ;;  %v894_v22 = vor.u32 %v893_v8, %v812_v59  ;;  %v569_v57 = vadd.f32 %v5857_v56, %v568_v14  ;;  %v4303_v19 = vor.u32 %v5175_v10, %v4302_v5  ;;  %v4446_v2 = vld [vmem:[#allocation2] sm:$0xf]  ;;  %v5067_v8 = vld [vmem:[#allocation2 + $0x8] sm:$0xf0]  ;;  %2614 = vmatpush.bf16.msrb.mxu1 %v5128_v1 }
 0x105   : > { %1163 = vst [vmem:[#allocation2 + $0x30] sm:$0xff] %v1034_v11  ;;  %v511_v27 = vpop.f32.mrf.mxu0  ;;  %v677_v28 = vunpack.c.l.b16 %v5960_v23 }
 0x106   : > { %1164 = vst [vmem:[#allocation2 + $0x38] sm:$0xf] %v1035_v13  ;;  %v864_v12 = vsel %vm5886_vm4, 0, %v817_v18  ;;  %v931_v21 = vsel %vm5891_vm5, %v894_v22, 0  ;;  %v512_v60 = vadd.f32 %v5857_v56, %v511_v27  ;;  %1925 = vmatmul.bf16.vlgmr.msrb.gmra.mxu3 %v4303_v19  ;;  %v605_v34 = vmax.f32 %v569_v57, 0.0 }
 0x107   : > { %1165 = vst [vmem:[#allocation2 + $0x3c] sm:$0xff] %v1036_v55  ;;  %v1018_v29 = vunpack.c.l.b16 %v864_v12  ;;  %v1019_v30 = vunpack.c.l.b16 %v931_v21  ;;  %v1020_v31 = vunpack.c.h.b16 %v864_v12  ;;  %v1021_v33 = vunpack.c.h.b16 %v931_v21 }
 0x108   : > { %1166 = vst [vmem:[#allocation2 + $0x44] sm:$0xf] %v1037_v17  ;;  %v706_v25 = vpack.c.b16 %v677_v28, %v676_v24  ;;  %550 = vmatmul.bf16.gmra.mxu0 %v431_v16  ;;  %v5981_v44 = vpack.c.bf16 %v605_v34, %v605_v34  ;;  %v582_v45 = vmax.f32 %v512_v60, 0.0  ;;  %v4447_v27 = vor.u32 %v5067_v8, %v4446_v2 }
 0x109   : > { %v1082_v37 = vpack.c.b16 %v698_v15, %v1018_v29  ;;  %v1083_v38 = vpack.c.b16 %v1019_v30, %v1019_v30  ;;  %v1084_v39 = vpack.c.b16 %v699_v43, %v1020_v31  ;;  %v1085_v41 = vpack.c.b16 %v1021_v33, %v1021_v33 }
 0x10a   : > { %v735_v42 = vshrl.u32 %v706_v25, 16  ;;  %v738_v63 = vshll.u32 %v706_v25, 16  ;;  %v701_v20 = vunpack.c.l.b16 %v5981_v44  ;;  %v5990_v59 = vpack.c.bf16 %v582_v45, %v582_v45 }
 0x10b   : > { %1211 = vst [vmem:[#allocation2 + $0x150] sm:$0xff] %v1082_v37  ;;  %v571_v46 = vpop.f32.mrf.mxu3 }
 0x10c   : > { %1212 = vst [vmem:[#allocation2 + $0x158] sm:$0xf] %v1083_v38  ;;  %v737_v47 = vrot.slane %v735_v42, 7  ;;  %v871_v48 = vrot.slane %v738_v63, 1  ;;  %v4170_v15 = vld [vmem:[#allocation2 + $0x30] sm:$0xf]  ;;  %v572_v36 = vadd.f32 %v5857_v56, %v571_v46  ;;  %v718_v54 = vpack.c.b16 %v701_v20, %v700_v40 }
 0x10d   : > { %1213 = vst [vmem:[#allocation2 + $0x15c] sm:$0xff] %v1084_v39  ;;  %v513_v43 = vpop.f32.mrf.mxu0  ;;  %v5141_v49 = vld [vmem:[#allocation2 + $0x34] sm:$0xf]  ;;  %v678_v31 = vunpack.c.l.b16 %v5990_v59 }
 0x10e   : > { %1214 = vst [vmem:[#allocation2 + $0x164] sm:$0xf] %v1085_v41  ;;  %v740_v50 = vor.u32 %v738_v63, %v737_v47  ;;  %v872_v52 = vor.u32 %v871_v48, %v735_v42  ;;  %v514_v58 = vadd.f32 %v5857_v56, %v513_v43  ;;  %v5142_v6 = vld [vmem:[#allocation2 + $0x38] sm:$0xf0]  ;;  %v4172_v51 = vld [vmem:[#allocation2 + $0x3c] sm:$0xf0] }
 0x10f   : > { %v606_v61 = vmax.f32 %v572_v36, 0.0  ;;  %v4171_v62 = vor.u32 %v5142_v6, %v4170_v15  ;;  %v4175_v0 = vor.u32 %v5141_v49, %v4172_v51  ;;  %v819_v5 = vshrl.u32 %v718_v54, 16 }
 0x110   : > { %v853_v3 = vsel %vm5886_vm4, 0, %v740_v50  ;;  %v920_v4 = vsel %vm5891_vm5, %v872_v52, 0  ;;  %v822_v7 = vshll.u32 %v718_v54, 16  ;;  %v583_v16 = vmax.f32 %v514_v58, 0.0 }
 0x111   : > { %v974_v9 = vunpack.c.l.b16 %v853_v3  ;;  %v975_v10 = vunpack.c.l.b16 %v920_v4  ;;  %v976_v11 = vunpack.c.h.b16 %v853_v3  ;;  %v977_v13 = vunpack.c.h.b16 %v920_v4  ;;  %1870 = vmatmul.bf16.gmra.mxu1 %v4171_v62  ;;  %1959 = vmatmul.bf16.gmra.mxu2 %v4175_v0 }
 0x112   : > { %v821_v55 = vrot.slane %v819_v5, 7  ;;  %v895_v14 = vrot.slane %v822_v7, 1  ;;  %v4314_v17 = vld [vmem:[#allocation2 + $0x150] sm:$0xf]  ;;  %v6000_v29 = vpack.c.bf16 %v583_v16, %v583_v16  ;;  %v6003_v33 = vpack.c.bf16 %v606_v61, %v606_v61  ;;  %v5070_v16 = vld [vmem:[#allocation2 + $0x20] sm:$0xf0] }
 0x113   : > { %v1038_v18 = vpack.c.b16 %v676_v24, %v974_v9  ;;  %v1039_v22 = vpack.c.b16 %v975_v10, %v975_v10  ;;  %v1040_v57 = vpack.c.b16 %v677_v28, %v976_v11  ;;  %v573_v19 = vpop.f32.mrf.mxu3  ;;  %v1041_v12 = vpack.c.b16 %v977_v13, %v977_v13 }
 0x114   : > { %v824_v21 = vor.u32 %v822_v7, %v821_v55  ;;  %v896_v60 = vor.u32 %v895_v14, %v819_v5  ;;  %v5178_v30 = vld [vmem:[#allocation2 + $0x158] sm:$0xf0]  ;;  %v574_v53 = vadd.f32 %v5857_v56, %v573_v19  ;;  %v679_v34 = vunpack.c.l.b16 %v6000_v29  ;;  %v4458_v14 = vld [vmem:[#allocation2 + $0x18] sm:$0xf] }
 0x115   : > { %1167 = vst [vmem:[#allocation2 + $0x48] sm:$0xff] %v1038_v18  ;;  %v4315_v24 = vor.u32 %v5178_v30, %v4314_v17  ;;  %v516_v25 = vpop.f32.mrf.mxu0  ;;  %v702_v15 = vunpack.c.l.b16 %v6003_v33 }
 0x116   : > { %1168 = vst [vmem:[#allocation2 + $0x50] sm:$0xf] %v1039_v22  ;;  %v865_v23 = vsel %vm5886_vm4, 0, %v824_v21  ;;  %v932_v28 = vsel %vm5891_vm5, %v896_v60, 0  ;;  %v517_v37 = vadd.f32 %v5857_v56, %v516_v25  ;;  %v707_v63 = vpack.c.b16 %v679_v34, %v678_v31 }
 0x117   : > { %1169 = vst [vmem:[#allocation2 + $0x54] sm:$0xff] %v1040_v57  ;;  %v1022_v38 = vunpack.c.l.b16 %v865_v23  ;;  %v1023_v39 = vunpack.c.l.b16 %v932_v28  ;;  %v1024_v41 = vunpack.c.h.b16 %v865_v23  ;;  %v1025_v42 = vunpack.c.h.b16 %v932_v28  ;;  %1930 = vmatmul.bf16.gmra.mxu3 %v4315_v24 }
 0x118   : > { %1170 = vst [vmem:[#allocation2 + $0x5c] sm:$0xf] %v1041_v12  ;;  %v607_v45 = vmax.f32 %v574_v53, 0.0  ;;  %2532 = vmatmul.bf16.vlgmr.msrb.gmra.mxu0 %v4447_v27  ;;  %v742_v43 = vshrl.u32 %v707_v63, 16  ;;  %v745_v49 = vshll.u32 %v707_v63, 16  ;;  %v584_v52 = vmax.f32 %v517_v37, 0.0 }
 0x119   : > { %v1086_v46 = vpack.c.b16 %v700_v40, %v1022_v38  ;;  %v1087_v47 = vpack.c.b16 %v1023_v39, %v1023_v39  ;;  %v1088_v48 = vpack.c.b16 %v701_v20, %v1024_v41  ;;  %v1089_v36 = vpack.c.b16 %v1025_v42, %v1025_v42  ;;  %v5127_v38 = vld [vmem:[#allocation8 + $0x68] sm:$0xff] }
 0x11a   : > { %v6019_v50 = vpack.c.bf16 %v607_v45, %v607_v45  ;;  %v744_v54 = vrot.slane %v742_v43, 7  ;;  %v873_v58 = vrot.slane %v745_v49, 1  ;;  %v6025_v2 = vpack.c.bf16 %v584_v52, %v584_v52  ;;  %2615 = vmatpush.bf16.msrb.mxu1 %v5127_v38 }
 0x11b   : > { %1215 = vst [vmem:[#allocation2 + $0x168] sm:$0xff] %v1086_v46  ;;  %v4459_v28 = vor.u32 %v5070_v16, %v4458_v14  ;;  %v5073_v14 = vld [vmem:[#allocation2 + $0x38] sm:$0xf0] }
 0x11c   : > { %1216 = vst [vmem:[#allocation2 + $0x170] sm:$0xf] %v1087_v47  ;;  %v703_v6 = vunpack.c.l.b16 %v6019_v50  ;;  %v4182_v26 = vld [vmem:[#allocation2 + $0x48] sm:$0xf]  ;;  %v5144_v51 = vld [vmem:[#allocation2 + $0x4c] sm:$0xf]  ;;  %v747_v44 = vor.u32 %v745_v49, %v744_v54  ;;  %v874_v20 = vor.u32 %v873_v58, %v742_v43  ;;  %v680_v24 = vunpack.c.l.b16 %v6025_v2 }
 0x11d   : > { %1217 = vst [vmem:[#allocation2 + $0x174] sm:$0xff] %v1088_v48  ;;  %v518_v40 = vpop.f32.mrf.mxu0  ;;  %v4190_v35 = vld [vmem:[#allocation2 + $0x50] sm:$0xf] }
 0x11e   : > { %1218 = vst [vmem:[#allocation2 + $0x17c] sm:$0xf] %v1089_v36  ;;  %v719_v61 = vpack.c.b16 %v703_v6, %v702_v15  ;;  %v519_v62 = vadd.f32 %v5857_v56, %v518_v40  ;;  %v5145_v0 = vld [vmem:[#allocation2 + $0x50] sm:$0xf0]  ;;  %v4184_v1 = vld [vmem:[#allocation2 + $0x54] sm:$0xf0] }
 0x11f   : > { %v4183_v3 = vor.u32 %v5145_v0, %v4182_v26  ;;  %v4187_v4 = vor.u32 %v5144_v51, %v4184_v1  ;;  %v854_v5 = vsel %vm5886_vm4, 0, %v747_v44  ;;  %v921_v7 = vsel %vm5891_vm5, %v874_v20, 0 }
 0x120   : > { %v826_v8 = vshrl.u32 %v719_v61, 16  ;;  %v829_v9 = vshll.u32 %v719_v61, 16  ;;  %v978_v10 = vunpack.c.l.b16 %v854_v5  ;;  %v979_v11 = vunpack.c.l.b16 %v921_v7 }
 0x121   : > { %v980_v13 = vunpack.c.h.b16 %v854_v5  ;;  %v981_v55 = vunpack.c.h.b16 %v921_v7  ;;  %1875 = vmatmul.bf16.gmra.mxu1 %v4183_v3  ;;  %1964 = vmatmul.bf16.gmra.mxu2 %v4187_v4  ;;  %v585_v22 = vmax.f32 %v519_v62, 0.0 }
 0x122   : > { %v828_v17 = vrot.slane %v826_v8, 7  ;;  %v897_v18 = vrot.slane %v829_v9, 1  ;;  %v4326_v57 = vld [vmem:[#allocation2 + $0x168] sm:$0xf]  ;;  %v1042_v19 = vpack.c.b16 %v678_v31, %v978_v10  ;;  %v1043_v27 = vpack.c.b16 %v979_v11, %v979_v11 }
 0x123   : > { %v1044_v12 = vpack.c.b16 %v679_v34, %v980_v13  ;;  %v1045_v21 = vpack.c.b16 %v981_v55, %v981_v55  ;;  %v617_v30 = vpack.c.bf16 %v585_v22, %v585_v22  ;;  %v4470_v55 = vld [vmem:[#allocation2 + $0x30] sm:$0xf] }
 0x124   : > { %v831_v60 = vor.u32 %v829_v9, %v828_v17  ;;  %v898_v29 = vor.u32 %v897_v18, %v826_v8  ;;  %v5181_v53 = vld [vmem:[#allocation2 + $0x170] sm:$0xf0]  ;;  %1171 = vst [vmem:[#allocation2 + $0x60] sm:$0xff] %v1042_v19 }
 0x125   : > { %v4327_v25 = vor.u32 %v5181_v53, %v4326_v57  ;;  %v521_v23 = vpop.f32.mrf.mxu0  ;;  %1172 = vst [vmem:[#allocation2 + $0x68] sm:$0xf] %v1043_v27  ;;  %v681_v31 = vunpack.c.l.b16 %v617_v30 }
 0x126   : > { %v866_v37 = vsel %vm5886_vm4, 0, %v831_v60  ;;  %v933_v59 = vsel %vm5891_vm5, %v898_v29, 0  ;;  %v522_v34 = vadd.f32 %v5857_v56, %v521_v23  ;;  %1173 = vst [vmem:[#allocation2 + $0x6c] sm:$0xff] %v1044_v12  ;;  %v4471_v12 = vor.u32 %v5073_v14, %v4470_v55  ;;  %v5209_v14 = vld [vmem:[#allocation8 + $0x178] sm:$0xff] }
 0x127   : > { %v1026_v39 = vunpack.c.l.b16 %v866_v37  ;;  %v1027_v41 = vunpack.c.l.b16 %v933_v59  ;;  %v1028_v42 = vunpack.c.h.b16 %v866_v37  ;;  %v1029_v63 = vunpack.c.h.b16 %v933_v59  ;;  %1935 = vmatmul.bf16.gmra.mxu3 %v4327_v25  ;;  %1174 = vst [vmem:[#allocation2 + $0x74] sm:$0xf] %v1045_v21  ;;  %v5126_v21 = vld [vmem:[#allocation8 + $0x60] sm:$0xff] }
 0x128   : > { %v708_v45 = vpack.c.b16 %v681_v31, %v680_v24  ;;  %2537 = vmatmul.bf16.gmra.mxu0 %v4459_v28  ;;  %v586_v50 = vmax.f32 %v522_v34, 0.0  ;;  %2616 = vmatpush.bf16.msrb.mxu1 %v5126_v21 }
 0x129   : > { %v1090_v46 = vpack.c.b16 %v702_v15, %v1026_v39  ;;  %v1091_v47 = vpack.c.b16 %v1027_v41, %v1027_v41  ;;  %v1092_v48 = vpack.c.b16 %v703_v6, %v1028_v42  ;;  %v1093_v36 = vpack.c.b16 %v1029_v63, %v1029_v63  ;;  %2035 = vmatpush.bf16.msrb.mxu3 %v5209_v14 }
 0x12a   : > { %v749_v43 = vshrl.u32 %v708_v45, 16  ;;  %v752_v49 = vshll.u32 %v708_v45, 16  ;;  %v618_v1 = vpack.c.bf16 %v586_v50, %v586_v50 }
 0x12b   : > { %1219 = vst [vmem:[#allocation2 + $0x180] sm:$0xff] %v1090_v46  ;;  %v4194_v58 = vld [vmem:[#allocation2 + $0x60] sm:$0xf]  ;;  %v5147_v40 = vld [vmem:[#allocation2 + $0x64] sm:$0xf] }
 0x12c   : > { %1220 = vst [vmem:[#allocation2 + $0x188] sm:$0xf] %v1091_v47  ;;  %v751_v52 = vrot.slane %v749_v43, 7  ;;  %v875_v54 = vrot.slane %v752_v49, 1  ;;  %v682_v17 = vunpack.c.l.b16 %v618_v1 }
 0x12d   : > { %1221 = vst [vmem:[#allocation2 + $0x18c] sm:$0xff] %v1092_v48  ;;  %v523_v26 = vpop.f32.mrf.mxu0  ;;  %v5148_v15 = vld [vmem:[#allocation2 + $0x68] sm:$0xf0]  ;;  %v4196_v20 = vld [vmem:[#allocation2 + $0x6c] sm:$0xf0] }
 0x12e   : > { %1222 = vst [vmem:[#allocation2 + $0x194] sm:$0xf] %v1093_v36  ;;  %v754_v51 = vor.u32 %v752_v49, %v751_v52  ;;  %v876_v44 = vor.u32 %v875_v54, %v749_v43  ;;  %v524_v33 = vadd.f32 %v5857_v56, %v523_v26  ;;  %v4195_v6 = vor.u32 %v5148_v15, %v4194_v58 }
 0x12f   : > { %v4199_v61 = vor.u32 %v5147_v40, %v4196_v20  ;;  %v5174_v40 = vld [vmem:[#allocation2 + $0x13c] sm:$0xf] }
 0x130   : > { %v855_v62 = vsel %vm5886_vm4, 0, %v754_v51  ;;  %v922_v0 = vsel %vm5891_vm5, %v876_v44, 0  ;;  %v587_v2 = vmax.f32 %v524_v33, 0.0  ;;  %v4304_v51 = vld [vmem:[#allocation2 + $0x144] sm:$0xf0] }
 0x131   : > { %v982_v3 = vunpack.c.l.b16 %v855_v62  ;;  %v983_v4 = vunpack.c.l.b16 %v922_v0  ;;  %v984_v5 = vunpack.c.h.b16 %v855_v62  ;;  %v985_v7 = vunpack.c.h.b16 %v922_v0  ;;  %1880 = vmatmul.bf16.gmra.mxu1 %v4195_v6  ;;  %1969 = vmatmul.bf16.gmra.mxu2 %v4199_v61  ;;  %v4482_v44 = vld [vmem:[#allocation2 + $0x48] sm:$0xf]  ;;  %v5076_v33 = vld [vmem:[#allocation2 + $0x50] sm:$0xf0] }
 0x132   : > { %v619_v8 = vpack.c.bf16 %v587_v2, %v587_v2  ;;  %v4338_v9 = vld [vmem:[#allocation2 + $0x180] sm:$0xf]  ;;  %v4307_v6 = vor.u32 %v5174_v40, %v4304_v51  ;;  %v4483_v0 = vor.u32 %v5076_v33, %v4482_v44 }
 0x133   : > { %v1046_v10 = vpack.c.b16 %v680_v24, %v982_v3  ;;  %v1047_v11 = vpack.c.b16 %v983_v4, %v983_v4  ;;  %v1048_v13 = vpack.c.b16 %v681_v31, %v984_v5  ;;  %v1049_v16 = vpack.c.b16 %v985_v7, %v985_v7 }
 0x134   : > { %v683_v18 = vunpack.c.l.b16 %v619_v8  ;;  %v5184_v22 = vld [vmem:[#allocation2 + $0x188] sm:$0xf0] }
 0x135   : > { %1175 = vst [vmem:[#allocation2 + $0x78] sm:$0xff] %v1046_v10  ;;  %v4339_v57 = vor.u32 %v5184_v22, %v4338_v9  ;;  %v526_v19 = vpop.f32.mrf.mxu0 }
 0x136   : > { %1176 = vst [vmem:[#allocation2 + $0x80] sm:$0xf] %v1047_v11  ;;  %v709_v27 = vpack.c.b16 %v683_v18, %v682_v17  ;;  %v527_v30 = vadd.f32 %v5857_v56, %v526_v19 }
 0x137   : > { %1177 = vst [vmem:[#allocation2 + $0x84] sm:$0xff] %v1048_v13  ;;  %1940 = vmatmul.bf16.gmra.mxu3 %v4339_v57 }
 0x138   : > { %1178 = vst [vmem:[#allocation2 + $0x8c] sm:$0xf] %v1049_v16  ;;  %v756_v60 = vshrl.u32 %v709_v27, 16  ;;  %v759_v29 = vshll.u32 %v709_v27, 16  ;;  %2542 = vmatmul.bf16.gmra.mxu0 %v4471_v12  ;;  %v588_v28 = vmax.f32 %v527_v30, 0.0 }
 0x13a   : > { %v758_v53 = vrot.slane %v756_v60, 7  ;;  %v877_v24 = vrot.slane %v759_v29, 1  ;;  %v620_v48 = vpack.c.bf16 %v588_v28, %v588_v28 }
 0x13c   : > { %v761_v25 = vor.u32 %v759_v29, %v758_v53  ;;  %v878_v23 = vor.u32 %v877_v24, %v756_v60  ;;  %v4206_v59 = vld [vmem:[#allocation2 + $0x78] sm:$0xf]  ;;  %v5150_v31 = vld [vmem:[#allocation2 + $0x7c] sm:$0xf]  ;;  %v684_v15 = vunpack.c.l.b16 %v620_v48  ;;  %v5208_v53 = vld [vmem:[#allocation8 + $0x170] sm:$0xff] }
 0x13d   : > { %v528_v37 = vpop.f32.mrf.mxu0  ;;  %2036 = vmatpush.bf16.msrb.mxu3 %v5208_v53  ;;  %v5124_v53 = vld [vmem:[#allocation8 + $0x50] sm:$0xff] }
 0x13e   : > { %v856_v34 = vsel %vm5886_vm4, 0, %v761_v25  ;;  %v923_v38 = vsel %vm5891_vm5, %v878_v23, 0  ;;  %v529_v39 = vadd.f32 %v5857_v56, %v528_v37  ;;  %v5151_v41 = vld [vmem:[#allocation2 + $0x80] sm:$0xf0]  ;;  %v4208_v42 = vld [vmem:[#allocation2 + $0x84] sm:$0xf0] }
 0x13f   : > { %v986_v63 = vunpack.c.l.b16 %v856_v34  ;;  %v987_v45 = vunpack.c.l.b16 %v923_v38  ;;  %v988_v46 = vunpack.c.h.b16 %v856_v34  ;;  %v989_v47 = vunpack.c.h.b16 %v923_v38  ;;  %v5079_v34 = vld [vmem:[#allocation2 + $0x68] sm:$0xf0] }
 0x140   : > { %v589_v36 = vmax.f32 %v529_v39, 0.0  ;;  %v4207_v43 = vor.u32 %v5151_v41, %v4206_v59  ;;  %v4211_v49 = vor.u32 %v5150_v31, %v4208_v42  ;;  %v5177_v59 = vld [vmem:[#allocation2 + $0x154] sm:$0xf]  ;;  %v4316_v31 = vld [vmem:[#allocation2 + $0x15c] sm:$0xf0] }
 0x141   : > { %v1050_v50 = vpack.c.b16 %v682_v17, %v986_v63  ;;  %v1051_v52 = vpack.c.b16 %v987_v45, %v987_v45  ;;  %v1052_v54 = vpack.c.b16 %v683_v18, %v988_v46  ;;  %v1053_v58 = vpack.c.b16 %v989_v47, %v989_v47  ;;  %v5207_v63 = vld [vmem:[#allocation8 + $0x168] sm:$0xff]  ;;  %v5125_v47 = vld [vmem:[#allocation8 + $0x58] sm:$0xff] }
 0x142   : > { %v621_v26 = vpack.c.bf16 %v589_v36, %v589_v36  ;;  %1885 = vmatmul.bf16.gmra.mxu1 %v4207_v43  ;;  %1974 = vmatmul.bf16.gmra.mxu2 %v4211_v49  ;;  %v4319_v41 = vor.u32 %v5177_v59, %v4316_v31  ;;  %v6061_v43 = vld [vmem:[%s6802_s2] ss:$0 sm:$0xff] }
 0x143   : > { %1179 = vst [vmem:[#allocation2 + $0x90] sm:$0xff] %v1050_v50  ;;  %2617 = vmatpush.bf16.msrb.mxu1 %v5125_v47  ;;  %2037 = vmatpush.bf16.msrb.mxu3 %v5207_v63  ;;  %v5206_v50 = vld [vmem:[#allocation8 + $0x160] sm:$0xff] }
 0x144   : > { %1180 = vst [vmem:[#allocation2 + $0x98] sm:$0xf] %v1051_v52  ;;  %v685_v20 = vunpack.c.l.b16 %v621_v26 }
 0x145   : > { %1181 = vst [vmem:[#allocation2 + $0x9c] sm:$0xff] %v1052_v54  ;;  %v531_v61 = vpop.f32.mrf.mxu0 }
 0x146   : > { %1182 = vst [vmem:[#allocation2 + $0xa4] sm:$0xf] %v1053_v58  ;;  %v710_v62 = vpack.c.b16 %v685_v20, %v684_v15  ;;  %v532_v3 = vadd.f32 %v5857_v56, %v531_v61  ;;  %v5205_v61 = vld [vmem:[#allocation8 + $0x158] sm:$0xff] }
 0x147   : > { %2014 = vmatmul.bf16.vlgmr.msra.gmra.mxu3 %v4307_v6  ;;  %2618 = vmatpush.bf16.msrb.mxu1 %v5124_v53 }
 0x148   : > { %v763_v1 = vshrl.u32 %v710_v62, 16  ;;  %v766_v2 = vshll.u32 %v710_v62, 16  ;;  %2547 = vmatmul.bf16.gmra.mxu0 %v4483_v0  ;;  %v590_v11 = vmax.f32 %v532_v3, 0.0  ;;  %2038 = vmatpush.bf16.msrb.mxu3 %v5206_v50 }
 0x14a   : > { %v765_v4 = vrot.slane %v763_v1, 7  ;;  %v879_v5 = vrot.slane %v766_v2, 1  ;;  %v4218_v7 = vld [vmem:[#allocation2 + $0x90] sm:$0xf]  ;;  %v5153_v8 = vld [vmem:[#allocation2 + $0x94] sm:$0xf]  ;;  %v622_v29 = vpack.c.bf16 %v590_v11, %v590_v11 }
 0x14c   : > { %v768_v9 = vor.u32 %v766_v2, %v765_v4  ;;  %v880_v10 = vor.u32 %v879_v5, %v763_v1  ;;  %v5154_v13 = vld [vmem:[#allocation2 + $0x98] sm:$0xf0]  ;;  %v4220_v55 = vld [vmem:[#allocation2 + $0x9c] sm:$0xf0]  ;;  %v686_v38 = vunpack.c.l.b16 %v622_v29  ;;  %2039 = vmatpush.bf16.msrb.mxu3 %v5205_v61  ;;  %v4518_v61 = vld [vmem:[#allocation2 + $0x90] sm:$0xf] }
 0x14d   : > { %v533_v16 = vpop.f32.mrf.mxu0  ;;  %v4219_v17 = vor.u32 %v5154_v13, %v4218_v7  ;;  %v4223_v19 = vor.u32 %v5153_v8, %v4220_v55  ;;  %v5204_v55 = vld [vmem:[#allocation8 + $0x150] sm:$0xff] }
 0x14e   : > { %v857_v18 = vsel %vm5886_vm4, 0, %v768_v9  ;;  %v924_v22 = vsel %vm5891_vm5, %v880_v10, 0  ;;  %v534_v57 = vadd.f32 %v5857_v56, %v533_v16  ;;  %v4494_v56 = vld [vmem:[#allocation2 + $0x60] sm:$0xf] }
 0x14f   : > { %v990_v27 = vunpack.c.l.b16 %v857_v18  ;;  %v991_v12 = vunpack.c.l.b16 %v924_v22  ;;  %v992_v21 = vunpack.c.h.b16 %v857_v18  ;;  %v993_v60 = vunpack.c.h.b16 %v924_v22  ;;  %v4328_v18 = vld [vmem:[#allocation2 + $0x174] sm:$0xf0] }
 0x150   : > { %v591_v30 = vmax.f32 %v534_v57, 0.0  ;;  %v4495_v46 = vor.u32 %v5079_v34, %v4494_v56  ;;  %v4506_v22 = vld [vmem:[#allocation2 + $0x78] sm:$0xf]  ;;  %v5082_v57 = vld [vmem:[#allocation2 + $0x80] sm:$0xf0]  ;;  %2040 = vmatpush.bf16.msrb.mxu3 %v5204_v55 }
 0x151   : > { %v1054_v24 = vpack.c.b16 %v684_v15, %v990_v27  ;;  %v1055_v25 = vpack.c.b16 %v991_v12, %v991_v12  ;;  %v1056_v23 = vpack.c.b16 %v685_v20, %v992_v21  ;;  %v1057_v28 = vpack.c.b16 %v993_v60, %v993_v60  ;;  %v5203_v60 = vld [vmem:[#allocation8 + $0x148] sm:$0xff] }
 0x152   : > { %v623_v37 = vpack.c.bf16 %v591_v30, %v591_v30  ;;  %1890 = vmatmul.bf16.gmra.mxu1 %v4219_v17  ;;  %1979 = vmatmul.bf16.gmra.mxu2 %v4223_v19  ;;  %v5180_v17 = vld [vmem:[#allocation2 + $0x16c] sm:$0xf]  ;;  %v4507_v30 = vor.u32 %v5082_v57, %v4506_v22 }
 0x153   : > { %1183 = vst [vmem:[#allocation2 + $0xa8] sm:$0xff] %v1054_v24  ;;  %v4331_v12 = vor.u32 %v5180_v17, %v4328_v18 }
 0x154   : > { %1184 = vst [vmem:[#allocation2 + $0xb0] sm:$0xf] %v1055_v25  ;;  %v687_v39 = vunpack.c.l.b16 %v623_v37  ;;  %2041 = vmatpush.bf16.msrb.mxu3 %v5203_v60 }
 0x155   : > { %1185 = vst [vmem:[#allocation2 + $0xb4] sm:$0xff] %v1056_v23  ;;  %v536_v42 = vpop.f32.mrf.mxu0 }
 0x156   : > { %1186 = vst [vmem:[#allocation2 + $0xbc] sm:$0xf] %v1057_v28  ;;  %v711_v45 = vpack.c.b16 %v687_v39, %v686_v38  ;;  %v537_v49 = vadd.f32 %v6061_v43, %v536_v42  ;;  %v5202_v28 = vld [vmem:[#allocation8 + $0x140] sm:$0xff] }
 0x157   : > { %2019 = vmatmul.bf16.gmra.mxu3 %v4319_v41 }
 0x158   : > { %v770_v48 = vshrl.u32 %v711_v45, 16  ;;  %v773_v36 = vshll.u32 %v711_v45, 16  ;;  %2552 = vmatmul.bf16.gmra.mxu0 %v4495_v46  ;;  %v592_v44 = vmax.f32 %v537_v49, 0.0  ;;  %2042 = vmatpush.bf16.msrb.mxu3 %v5202_v28 }
 0x15a   : > { %v772_v52 = vrot.slane %v770_v48, 7  ;;  %v881_v54 = vrot.slane %v773_v36, 1  ;;  %v4230_v58 = vld [vmem:[#allocation2 + $0xa8] sm:$0xf]  ;;  %v5156_v26 = vld [vmem:[#allocation2 + $0xac] sm:$0xf]  ;;  %v624_v8 = vpack.c.bf16 %v592_v44, %v592_v44 }
 0x15c   : > { %v775_v40 = vor.u32 %v773_v36, %v772_v52  ;;  %v882_v51 = vor.u32 %v881_v54, %v770_v48  ;;  %v5157_v33 = vld [vmem:[#allocation2 + $0xb0] sm:$0xf0]  ;;  %v4232_v15 = vld [vmem:[#allocation2 + $0xb4] sm:$0xf0]  ;;  %v688_v19 = vunpack.c.l.b16 %v624_v8 }
 0x15d   : > { %v538_v20 = vpop.f32.mrf.mxu0  ;;  %v4231_v6 = vor.u32 %v5157_v33, %v4230_v58  ;;  %v4235_v2 = vor.u32 %v5156_v26, %v4232_v15 }
 0x15e   : > { %v858_v62 = vsel %vm5886_vm4, 0, %v775_v40  ;;  %v925_v0 = vsel %vm5891_vm5, %v882_v51, 0  ;;  %v539_v1 = vadd.f32 %v6061_v43, %v538_v20  ;;  %v5183_v20 = vld [vmem:[#allocation2 + $0x184] sm:$0xf] }
 0x15f   : > { %v994_v3 = vunpack.c.l.b16 %v858_v62  ;;  %v995_v4 = vunpack.c.l.b16 %v925_v0  ;;  %v996_v5 = vunpack.c.h.b16 %v858_v62  ;;  %v997_v7 = vunpack.c.h.b16 %v925_v0  ;;  %v5085_v62 = vld [vmem:[#allocation2 + $0x98] sm:$0xf0] }
 0x160   : > { %v593_v9 = vmax.f32 %v539_v1, 0.0 }
 0x161   : > { %v1058_v10 = vpack.c.b16 %v686_v38, %v994_v3  ;;  %v1059_v11 = vpack.c.b16 %v995_v4, %v995_v4  ;;  %v1060_v13 = vpack.c.b16 %v687_v39, %v996_v5  ;;  %v1061_v14 = vpack.c.b16 %v997_v7, %v997_v7 }
 0x162   : > { %v625_v16 = vpack.c.bf16 %v593_v9, %v593_v9  ;;  %1895 = vmatmul.bf16.gmra.mxu1 %v4231_v6  ;;  %1984 = vmatmul.bf16.gmra.mxu2 %v4235_v2  ;;  %v4340_v6 = vld [vmem:[#allocation2 + $0x18c] sm:$0xf0]  ;;  %v4519_v5 = vor.u32 %v5085_v62, %v4518_v61 }
 0x163   : > { %1187 = vst [vmem:[#allocation2 + $0xc0] sm:$0xff] %v1058_v10  ;;  %v4343_v2 = vor.u32 %v5183_v20, %v4340_v6 }
 0x164   : > { %1188 = vst [vmem:[#allocation2 + $0xc8] sm:$0xf] %v1059_v11  ;;  %v689_v27 = vunpack.c.l.b16 %v625_v16 }
 0x165   : > { %1189 = vst [vmem:[#allocation2 + $0xcc] sm:$0xff] %v1060_v13  ;;  %v541_v21 = vpop.f32.mrf.mxu0 }
 0x166   : > { %1190 = vst [vmem:[#allocation2 + $0xd4] sm:$0xf] %v1061_v14  ;;  %v712_v29 = vpack.c.b16 %v689_v27, %v688_v19  ;;  %v542_v23 = vadd.f32 %v6061_v43, %v541_v21 }
 0x167   : > { %2024 = vmatmul.bf16.gmra.mxu3 %v4331_v12 }
 0x168   : > { %v777_v24 = vshrl.u32 %v712_v29, 16  ;;  %v780_v25 = vshll.u32 %v712_v29, 16  ;;  %2557 = vmatmul.bf16.gmra.mxu0 %v4507_v30  ;;  %v594_v39 = vmax.f32 %v542_v23, 0.0 }
 0x16a   : > { %v779_v37 = vrot.slane %v777_v24, 7  ;;  %v883_v59 = vrot.slane %v780_v25, 1  ;;  %v4242_v31 = vld [vmem:[#allocation2 + $0xc0] sm:$0xf]  ;;  %v5159_v56 = vld [vmem:[#allocation2 + $0xc4] sm:$0xf]  ;;  %v626_v58 = vpack.c.bf16 %v594_v39, %v594_v39 }
 0x16b   : > { %v5140_v39 = vld [vmem:[#allocation2 + $0x28] sm:$0xf0] }
 0x16c   : > { %v782_v34 = vor.u32 %v780_v25, %v779_v37  ;;  %v884_v38 = vor.u32 %v883_v59, %v777_v24  ;;  %v5160_v41 = vld [vmem:[#allocation2 + $0xc8] sm:$0xf0]  ;;  %v4244_v42 = vld [vmem:[#allocation2 + $0xcc] sm:$0xf0]  ;;  %v690_v0 = vunpack.c.l.b16 %v626_v58 }
 0x16d   : > { %v543_v63 = vpop.f32.mrf.mxu0  ;;  %v4243_v45 = vor.u32 %v5160_v41, %v4242_v31  ;;  %v4247_v36 = vor.u32 %v5159_v56, %v4244_v42  ;;  %v4530_v41 = vld [vmem:[#allocation2 + $0xa8] sm:$0xf]  ;;  %v5088_v42 = vld [vmem:[#allocation2 + $0xb0] sm:$0xf0] }
 0x16e   : > { %v859_v46 = vsel %vm5886_vm4, 0, %v782_v34  ;;  %v926_v47 = vsel %vm5891_vm5, %v884_v38, 0  ;;  %v544_v48 = vadd.f32 %v6061_v43, %v543_v63  ;;  %v4166_v38 = vld [vmem:[#allocation2 + $0x20] sm:$0xf]  ;;  %v5137_v58 = vld [vmem:[#allocation8 + $0xb8] sm:$0xff] }
 0x16f   : > { %v998_v49 = vunpack.c.l.b16 %v859_v46  ;;  %v999_v50 = vunpack.c.l.b16 %v926_v47  ;;  %v1000_v52 = vunpack.c.h.b16 %v859_v46  ;;  %v1001_v54 = vunpack.c.h.b16 %v926_v47  ;;  %2702 = vmatpush.bf16.msrb.mxu2 %v5137_v58 }
 0x170   : > { %v595_v26 = vmax.f32 %v544_v48, 0.0 }
 0x171   : > { %v1062_v40 = vpack.c.b16 %v688_v19, %v998_v49  ;;  %v1063_v51 = vpack.c.b16 %v999_v50, %v999_v50  ;;  %v1064_v44 = vpack.c.b16 %v689_v27, %v1000_v52  ;;  %v1065_v33 = vpack.c.b16 %v1001_v54, %v1001_v54  ;;  %v5123_v54 = vld [vmem:[#allocation8 + $0x48] sm:$0xff] }
 0x172   : > { %v627_v15 = vpack.c.bf16 %v595_v26, %v595_v26  ;;  %1900 = vmatmul.bf16.gmra.mxu1 %v4243_v45  ;;  %1989 = vmatmul.bf16.gmra.mxu2 %v4247_v36  ;;  %v4167_v36 = vor.u32 %v5140_v39, %v4166_v38  ;;  %v4531_v52 = vor.u32 %v5088_v42, %v4530_v41  ;;  %v5133_v39 = vld [vmem:[#allocation8 + $0x98] sm:$0xff] }
 0x173   : > { %1191 = vst [vmem:[#allocation2 + $0xd8] sm:$0xff] %v1062_v40  ;;  %2619 = vmatpush.bf16.msrb.mxu1 %v5123_v54 }
 0x174   : > { %1192 = vst [vmem:[#allocation2 + $0xe0] sm:$0xf] %v1063_v51  ;;  %v691_v1 = vunpack.c.l.b16 %v627_v15 }
 0x175   : > { %1193 = vst [vmem:[#allocation2 + $0xe4] sm:$0xff] %v1064_v44  ;;  %v546_v3 = vpop.f32.mrf.mxu0  ;;  %v5122_v44 = vld [vmem:[#allocation8 + $0x40] sm:$0xff] }
 0x176   : > { %1194 = vst [vmem:[#allocation2 + $0xec] sm:$0xf] %v1065_v33  ;;  %v713_v4 = vpack.c.b16 %v691_v1, %v690_v0  ;;  %v547_v9 = vadd.f32 %v6061_v43, %v546_v3  ;;  %v5136_v33 = vld [vmem:[#allocation8 + $0xb0] sm:$0xff] }
 0x177   : > { %2029 = vmatmul.bf16.gmra.mxu3 %v4343_v2  ;;  %2620 = vmatpush.bf16.msrb.mxu1 %v5122_v44 }
 0x178   : > { %v784_v7 = vshrl.u32 %v713_v4, 16  ;;  %v787_v8 = vshll.u32 %v713_v4, 16  ;;  %2562 = vmatmul.bf16.gmra.mxu0 %v4519_v5  ;;  %v596_v17 = vmax.f32 %v547_v9, 0.0  ;;  %2703 = vmatpush.bf16.msrb.mxu2 %v5136_v33 }
 0x17a   : > { %v786_v10 = vrot.slane %v784_v7, 7  ;;  %v885_v11 = vrot.slane %v787_v8, 1  ;;  %v4254_v13 = vld [vmem:[#allocation2 + $0xd8] sm:$0xf]  ;;  %v5162_v55 = vld [vmem:[#allocation2 + $0xdc] sm:$0xf]  ;;  %v6081_v23 = vpack.c.bf16 %v596_v17, %v596_v17 }
 0x17c   : > { %v789_v14 = vor.u32 %v787_v8, %v786_v10  ;;  %v886_v16 = vor.u32 %v885_v11, %v784_v7  ;;  %v1866_v18 = vpop.f32.mrf.mxu1  ;;  %v5163_v22 = vld [vmem:[#allocation2 + $0xe0] sm:$0xf0]  ;;  %v4256_v57 = vld [vmem:[#allocation2 + $0xe4] sm:$0xf0]  ;;  %v692_v63 = vunpack.c.l.b16 %v6081_v23  ;;  %v5135_v10 = vld [vmem:[#allocation8 + $0xa8] sm:$0xff] }
 0x17d   : > { %v548_v19 = vpop.f32.mrf.mxu0  ;;  %v4255_v27 = vor.u32 %v5163_v22, %v4254_v13  ;;  %v4259_v29 = vor.u32 %v5162_v55, %v4256_v57  ;;  %2704 = vmatpush.bf16.msrb.mxu2 %v5135_v10  ;;  %v4542_v23 = vld [vmem:[#allocation2 + $0xc0] sm:$0xf]  ;;  %v5273_v10 = vld [vmem:[#allocation8 + $0x1f8] sm:$0xff] }
 0x17e   : > { %v860_v12 = vsel %vm5886_vm4, 0, %v789_v14  ;;  %v927_v21 = vsel %vm5891_vm5, %v886_v16, 0  ;;  %v549_v60 = vadd.f32 %v6061_v43, %v548_v19  ;;  %3394 = vmatpush.bf16.msra.mxu0 %v5273_v10  ;;  %v5152_v10 = vld [vmem:[#allocation2 + $0x88] sm:$0xf0] }
 0x17f   : > { %v1002_v30 = vunpack.c.l.b16 %v860_v12  ;;  %v1003_v53 = vunpack.c.l.b16 %v927_v21  ;;  %v1004_v24 = vunpack.c.h.b16 %v860_v12  ;;  %v1005_v25 = vunpack.c.h.b16 %v927_v21 }
 0x180   : > { %v597_v28 = vmax.f32 %v549_v60, 0.0 }
 0x181   : > { %v1066_v37 = vpack.c.b16 %v690_v0, %v1002_v30  ;;  %v1067_v59 = vpack.c.b16 %v1003_v53, %v1003_v53  ;;  %v1068_v31 = vpack.c.b16 %v691_v1, %v1004_v24  ;;  %v1069_v56 = vpack.c.b16 %v1005_v25, %v1005_v25  ;;  %v5143_v25 = vld [vmem:[#allocation2 + $0x40] sm:$0xf0] }
 0x182   : > { %v629_v34 = vpack.c.bf16 %v597_v28, %v597_v28  ;;  %1905 = vmatmul.bf16.gmra.mxu1 %v4255_v27  ;;  %1994 = vmatmul.bf16.gmra.mxu2 %v4259_v29  ;;  %v5134_v29 = vld [vmem:[#allocation8 + $0xa0] sm:$0xff]  ;;  %v5091_v28 = vld [vmem:[#allocation2 + $0xc8] sm:$0xf0] }
 0x183   : > { %1195 = vst [vmem:[#allocation2 + $0xf0] sm:$0xff] %v1066_v37  ;;  %2705 = vmatpush.bf16.msrb.mxu2 %v5134_v29 }
 0x184   : > { %1196 = vst [vmem:[#allocation2 + $0xf8] sm:$0xf] %v1067_v59  ;;  %v693_v45 = vunpack.c.l.b16 %v629_v34  ;;  %v1955_v46 = vpop.f32.mrf.mxu2  ;;  %v1868_v47 = vpop.f32.mrf.mxu1 }
 0x185   : > { %1197 = vst [vmem:[#allocation2 + $0xfc] sm:$0xff] %v1068_v31  ;;  %v6084_v48 = vadd.f32 %v1955_v46, %v1866_v18  ;;  %v551_v49 = vpop.f32.mrf.mxu0 }
 0x186   : > { %1198 = vst [vmem:[#allocation2 + $0x104] sm:$0xf] %v1069_v56  ;;  %v714_v50 = vpack.c.b16 %v693_v45, %v692_v63  ;;  %v552_v51 = vadd.f32 %v6061_v43, %v551_v49 }
 0x187   : > { %2043 = vmatmul.bf16.vlgmr.msrb.gmra.mxu3 %v4167_v36  ;;  %2706 = vmatpush.bf16.msrb.mxu2 %v5133_v39  ;;  %v5132_v36 = vld [vmem:[#allocation8 + $0x90] sm:$0xff] }
 0x188   : > { %v791_v26 = vshrl.u32 %v714_v50, 16  ;;  %v794_v40 = vshll.u32 %v714_v50, 16  ;;  %2567 = vmatmul.bf16.gmra.mxu0 %v4531_v52  ;;  %v598_v2 = vmax.f32 %v552_v51, 0.0 }
 0x189   : > { %v6087_v6 = vpop.f32.mrf.mxu3 }
 0x18a   : > { %v793_v15 = vrot.slane %v791_v26, 7  ;;  %v887_v20 = vrot.slane %v794_v40, 1  ;;  %v4266_v61 = vld [vmem:[#allocation2 + $0xf0] sm:$0xf]  ;;  %v5165_v62 = vld [vmem:[#allocation2 + $0xf4] sm:$0xf]  ;;  %v6096_v19 = vpack.c.bf16 %v598_v2, %v598_v2 }
 0x18b   : > { %2707 = vmatpush.bf16.msrb.mxu2 %v5132_v36 }
 0x18c   : > { %v796_v0 = vor.u32 %v794_v40, %v793_v15  ;;  %v888_v1 = vor.u32 %v887_v20, %v791_v26  ;;  %v1957_v3 = vpop.f32.mrf.mxu2  ;;  %v5166_v4 = vld [vmem:[#allocation2 + $0xf8] sm:$0xf0]  ;;  %v4268_v5 = vld [vmem:[#allocation2 + $0xfc] sm:$0xf0]  ;;  %v694_v37 = vunpack.c.l.b16 %v6096_v19 }
 0x18d   : > { %v6089_v7 = vadd.f32 %v1957_v3, %v1868_v47  ;;  %v553_v8 = vpop.f32.mrf.mxu0  ;;  %v4267_v9 = vor.u32 %v5166_v4, %v4266_v61  ;;  %v4271_v16 = vor.u32 %v5165_v62, %v4268_v5  ;;  %v5131_v61 = vld [vmem:[#allocation8 + $0x88] sm:$0xff] }
 0x18e   : > { %v861_v11 = vsel %vm5886_vm4, 0, %v796_v0  ;;  %v928_v13 = vsel %vm5891_vm5, %v888_v1, 0  ;;  %v1871_v55 = vpop.f32.mrf.mxu1  ;;  %v554_v14 = vadd.f32 %v6061_v43, %v553_v8  ;;  %v4178_v43 = vld [vmem:[#allocation2 + $0x38] sm:$0xf] }
 0x18f   : > { %v1006_v17 = vunpack.c.l.b16 %v861_v11  ;;  %v1007_v18 = vunpack.c.l.b16 %v928_v13  ;;  %v1008_v22 = vunpack.c.h.b16 %v861_v11  ;;  %v1009_v57 = vunpack.c.h.b16 %v928_v13  ;;  %2708 = vmatpush.bf16.msrb.mxu2 %v5131_v61  ;;  %v5068_v61 = vld [vmem:[#allocation2 + $0x10] sm:$0xf0] }
 0x190   : > { %v599_v27 = vmax.f32 %v554_v14, 0.0  ;;  %v4179_v34 = vor.u32 %v5143_v25, %v4178_v43  ;;  %v5130_v14 = vld [vmem:[#allocation8 + $0x80] sm:$0xff] }
 0x191   : > { %v1070_v12 = vpack.c.b16 %v692_v63, %v1006_v17  ;;  %v1071_v21 = vpack.c.b16 %v1007_v18, %v1007_v18  ;;  %v1072_v60 = vpack.c.b16 %v693_v45, %v1008_v22  ;;  %v1073_v30 = vpack.c.b16 %v1009_v57, %v1009_v57  ;;  %v6098_v24 = vpop.f32.mrf.mxu3  ;;  %v5265_v45 = vld [vmem:[#allocation8 + $0x1b8] sm:$0xff]  ;;  %v5146_v17 = vld [vmem:[#allocation2 + $0x58] sm:$0xf0]  ;;  %v4554_v22 = vld [vmem:[#allocation2 + $0xd8] sm:$0xf] }
 0x192   : > { %v631_v53 = vpack.c.bf16 %v599_v27, %v599_v27  ;;  %1910 = vmatmul.bf16.gmra.mxu1 %v4267_v9  ;;  %1999 = vmatmul.bf16.gmra.mxu2 %v4271_v16  ;;  %v4543_v63 = vor.u32 %v5091_v28, %v4542_v23  ;;  %v5281_v18 = vld [vmem:[#allocation8 + $0x238] sm:$0xff]  ;;  %v5094_v57 = vld [vmem:[#allocation2 + $0xe0] sm:$0xf0] }
 0x193   : > { %1199 = vst [vmem:[#allocation2 + $0x108] sm:$0xff] %v1070_v12  ;;  %3305 = vmatpush.bf16.msra.mxu3 %v5265_v45  ;;  %3483 = vmatpush.bf16.msra.mxu1 %v5281_v18  ;;  %v4191_v12 = vor.u32 %v5146_v17, %v4190_v35  ;;  %v4555_v29 = vor.u32 %v5094_v57, %v4554_v22  ;;  %v4566_v45 = vld [vmem:[#allocation2 + $0xf0] sm:$0xf] }
 0x194   : > { %1200 = vst [vmem:[#allocation2 + $0x110] sm:$0xf] %v1071_v21  ;;  %v695_v59 = vunpack.c.l.b16 %v631_v53  ;;  %v1960_v31 = vpop.f32.mrf.mxu2  ;;  %2709 = vmatpush.bf16.msrb.mxu2 %v5130_v14 }
 0x195   : > { %1201 = vst [vmem:[#allocation2 + $0x114] sm:$0xff] %v1072_v60  ;;  %v6101_v56 = vadd.f32 %v1960_v31, %v1871_v55  ;;  %v6103_v38 = vpop.f32.mrf.mxu0 }
 0x196   : > { %1202 = vst [vmem:[#allocation2 + $0x11c] sm:$0xf] %v1073_v30  ;;  %v715_v41 = vpack.c.b16 %v695_v59, %v694_v37  ;;  %v1873_v42 = vpop.f32.mrf.mxu1 }
 0x197   : > { %2048 = vmatmul.bf16.gmra.mxu3 %v4179_v34 }
 0x198   : > { %v798_v46 = vshrl.u32 %v715_v41, 16  ;;  %v801_v47 = vshll.u32 %v715_v41, 16  ;;  %2572 = vmatmul.bf16.gmra.mxu0 %v4543_v63  ;;  %v5149_v63 = vld [vmem:[#allocation2 + $0x70] sm:$0xf0] }
 0x19a   : > { %v800_v49 = vrot.slane %v798_v46, 7  ;;  %v889_v50 = vrot.slane %v801_v47, 1  ;;  %v6105_v52 = vpop.f32.mrf.mxu3  ;;  %v4278_v54 = vld [vmem:[#allocation2 + $0x108] sm:$0xf]  ;;  %v5168_v58 = vld [vmem:[#allocation2 + $0x10c] sm:$0xf] }
 0x19c   : > { %v803_v26 = vor.u32 %v801_v47, %v800_v49  ;;  %v890_v40 = vor.u32 %v889_v50, %v798_v46  ;;  %v1962_v51 = vpop.f32.mrf.mxu2  ;;  %v5169_v44 = vld [vmem:[#allocation2 + $0x110] sm:$0xf0]  ;;  %v4280_v33 = vld [vmem:[#allocation2 + $0x114] sm:$0xf0]  ;;  %v5097_v46 = vld [vmem:[#allocation2 + $0xf8] sm:$0xf0] }
 0x19d   : > { %v6107_v15 = vadd.f32 %v1962_v51, %v1873_v42  ;;  %v6109_v20 = vpop.f32.mrf.mxu0  ;;  %v4279_v2 = vor.u32 %v5169_v44, %v4278_v54  ;;  %v4283_v3 = vor.u32 %v5168_v58, %v4280_v33  ;;  %v4202_v42 = vld [vmem:[#allocation2 + $0x68] sm:$0xf]  ;;  %v4567_v58 = vor.u32 %v5097_v46, %v4566_v45  ;;  %v5066_v51 = vld [vmem:[#allocation2 + $0x4] sm:$0xf]  ;;  %v4448_v44 = vld [vmem:[#allocation2 + $0xc] sm:$0xf0] }
 0x19e   : > { %v862_v62 = vsel %vm5886_vm4, 0, %v803_v26  ;;  %v929_v0 = vsel %vm5891_vm5, %v890_v40, 0  ;;  %v1876_v1 = vpop.f32.mrf.mxu1  ;;  %v4203_v49 = vor.u32 %v5149_v63, %v4202_v42  ;;  %v5264_v26 = vld [vmem:[#allocation8 + $0x1b0] sm:$0xff]  ;;  %v4454_v33 = vld [vmem:[#allocation2 + $0x8] sm:$0xf] }
 0x19f   : > { %v1010_v4 = vunpack.c.l.b16 %v862_v62  ;;  %v1011_v5 = vunpack.c.l.b16 %v929_v0  ;;  %v1012_v8 = vunpack.c.h.b16 %v862_v62  ;;  %v1013_v9 = vunpack.c.h.b16 %v929_v0  ;;  %3306 = vmatpush.bf16.msra.mxu3 %v5264_v26  ;;  %v4226_v42 = vld [vmem:[#allocation2 + $0x98] sm:$0xf]  ;;  %v5155_v63 = vld [vmem:[#allocation2 + $0xa0] sm:$0xf0] }
 0x1a1   : > { %v1074_v11 = vpack.c.b16 %v694_v37, %v1010_v4  ;;  %v1075_v13 = vpack.c.b16 %v1011_v5, %v1011_v5  ;;  %v1076_v55 = vpack.c.b16 %v695_v59, %v1012_v8  ;;  %v1077_v16 = vpack.c.b16 %v1013_v9, %v1013_v9  ;;  %v5272_v5 = vld [vmem:[#allocation8 + $0x1f0] sm:$0xff] }
 0x1a2   : > { %1915 = vmatmul.bf16.gmra.mxu1 %v4279_v2  ;;  %2004 = vmatmul.bf16.gmra.mxu2 %v4283_v3  ;;  %v6115_v32 = vpop.f32.mrf.mxu3  ;;  %v4451_v2 = vor.u32 %v5066_v51, %v4448_v44  ;;  %v4455_v3 = vor.u32 %v5068_v61, %v4454_v33  ;;  %v4214_v9 = vld [vmem:[#allocation2 + $0x80] sm:$0xf]  ;;  %v5263_v44 = vld [vmem:[#allocation8 + $0x1a8] sm:$0xff] }
 0x1a3   : > { %1203 = vst [vmem:[#allocation2 + $0x120] sm:$0xff] %v1074_v11  ;;  %3395 = vmatpush.bf16.msra.mxu0 %v5272_v5  ;;  %v5280_v11 = vld [vmem:[#allocation8 + $0x230] sm:$0xff]  ;;  %3307 = vmatpush.bf16.msra.mxu3 %v5263_v44 }
 0x1a4   : > { %1204 = vst [vmem:[#allocation2 + $0x128] sm:$0xf] %v1075_v13  ;;  %v1965_v19 = vpop.f32.mrf.mxu2  ;;  %v4578_v13 = vld [vmem:[#allocation2 + $0x108] sm:$0xf]  ;;  %3484 = vmatpush.bf16.msra.mxu1 %v5280_v11 }
 0x1a5   : > { %1205 = vst [vmem:[#allocation2 + $0x12c] sm:$0xff] %v1076_v55  ;;  %v6117_v27 = vadd.f32 %v1965_v19, %v1876_v1  ;;  %v6119_v21 = vpop.f32.mrf.mxu0  ;;  %v5100_v55 = vld [vmem:[#allocation2 + $0x110] sm:$0xf0] }
 0x1a6   : > { %1206 = vst [vmem:[#allocation2 + $0x134] sm:$0xf] %v1077_v16  ;;  %v1878_v60 = vpop.f32.mrf.mxu1  ;;  %v4215_v16 = vor.u32 %v5152_v10, %v4214_v9  ;;  %v4579_v18 = vor.u32 %v5100_v55, %v4578_v13  ;;  %v5271_v10 = vld [vmem:[#allocation8 + $0x1e8] sm:$0xff] }
 0x1a7   : > { %2053 = vmatmul.bf16.gmra.mxu3 %v4191_v12  ;;  %v5069_v12 = vld [vmem:[#allocation2 + $0x1c] sm:$0xf]  ;;  %3396 = vmatpush.bf16.msra.mxu0 %v5271_v10 }
 0x1a8   : > { %2577 = vmatmul.bf16.gmra.mxu0 %v4555_v29 }
 0x1aa   : > { %v6121_v30 = vpop.f32.mrf.mxu3  ;;  %v4290_v53 = vld [vmem:[#allocation2 + $0x120] sm:$0xf]  ;;  %v5171_v43 = vld [vmem:[#allocation2 + $0x124] sm:$0xf] }
 0x1ab   : > { %v4590_v45 = vld [vmem:[#allocation2 + $0x120] sm:$0xf] }
 0x1ac   : > { %v1967_v25 = vpop.f32.mrf.mxu2  ;;  %v5172_v23 = vld [vmem:[#allocation2 + $0x128] sm:$0xf0]  ;;  %v4292_v28 = vld [vmem:[#allocation2 + $0x12c] sm:$0xf0] }
 0x1ad   : > { %v6123_v37 = vadd.f32 %v1967_v25, %v1878_v60  ;;  %v6125_v59 = vpop.f32.mrf.mxu0  ;;  %v4291_v34 = vor.u32 %v5172_v23, %v4290_v53  ;;  %v4295_v39 = vor.u32 %v5171_v43, %v4292_v28  ;;  %v4460_v53 = vld [vmem:[#allocation2 + $0x24] sm:$0xf0]  ;;  %v4466_v43 = vld [vmem:[#allocation2 + $0x20] sm:$0xf]  ;;  %v5071_v25 = vld [vmem:[#allocation2 + $0x28] sm:$0xf0] }
 0x1ae   : > { %v1881_v31 = vpop.f32.mrf.mxu1  ;;  %v5103_v46 = vld [vmem:[#allocation2 + $0x128] sm:$0xf0] }
 0x1af   : > { %v4591_v26 = vor.u32 %v5103_v46, %v4590_v45  ;;  %v4484_v45 = vld [vmem:[#allocation2 + $0x54] sm:$0xf0]  ;;  %v4490_v46 = vld [vmem:[#allocation2 + $0x50] sm:$0xf] }
 0x1b2   : > { %1920 = vmatmul.bf16.gmra.mxu1 %v4291_v34  ;;  %2009 = vmatmul.bf16.gmra.mxu2 %v4295_v39  ;;  %v6127_v41 = vpop.f32.mrf.mxu3  ;;  %v4467_v34 = vor.u32 %v5071_v25, %v4466_v43 }
 0x1b4   : > { %v1970_v47 = vpop.f32.mrf.mxu2 }
 0x1b5   : > { %v6129_v36 = vadd.f32 %v1970_v47, %v1881_v31  ;;  %v6131_v50 = vpop.f32.mrf.mxu0  ;;  %v4463_v31 = vor.u32 %v5069_v12, %v4460_v53  ;;  %v5106_v12 = vld [vmem:[#allocation2 + $0x140] sm:$0xf0] }
 0x1b6   : > { %v1883_v54 = vpop.f32.mrf.mxu1 }
 0x1b7   : > { %2058 = vmatmul.bf16.gmra.mxu3 %v4203_v49  ;;  %v4227_v49 = vor.u32 %v5155_v63, %v4226_v42 }
 0x1b8   : > { %2582 = vmatmul.bf16.gmra.mxu0 %v4567_v58 }
 0x1ba   : > { %v6133_v40 = vpop.f32.mrf.mxu3 }
 0x1bc   : > { %v1972_v62 = vpop.f32.mrf.mxu2 }
 0x1bd   : > { %v6135_v0 = vadd.f32 %v1972_v62, %v1883_v54  ;;  %v6137_v1 = vpop.f32.mrf.mxu0 }
 0x1bf   : > { %v1886_v4 = vpop.f32.mrf.mxu1 }
 0x1c2   : > { %2621 = vmatmul.bf16.vlgmr.msrb.gmra.mxu1 %v4451_v2  ;;  %2710 = vmatmul.bf16.vlgmr.msrb.gmra.mxu2 %v4455_v3  ;;  %v6139_v8 = vpop.f32.mrf.mxu3  ;;  %v4472_v2 = vld [vmem:[#allocation2 + $0x3c] sm:$0xf0]  ;;  %v4478_v3 = vld [vmem:[#allocation2 + $0x38] sm:$0xf] }
 0x1c5   : > { %v1975_v14 = vpop.f32.mrf.mxu2  ;;  %v6141_v35 = vpop.f32.mrf.mxu0 }
 0x1c6   : > { %v6143_v17 = vadd.f32 %v1975_v14, %v1886_v4  ;;  %v5074_v4 = vld [vmem:[#allocation2 + $0x40] sm:$0xf0] }
 0x1c7   : > { %v1888_v22 = vpop.f32.mrf.mxu1  ;;  %2063 = vmatmul.bf16.gmra.mxu3 %v4215_v16  ;;  %v4479_v55 = vor.u32 %v5074_v4, %v4478_v3  ;;  %v4238_v16 = vld [vmem:[#allocation2 + $0xb0] sm:$0xf]  ;;  %v5268_v3 = vld [vmem:[#allocation8 + $0x1d0] sm:$0xff] }
 0x1c8   : > { %2587 = vmatmul.bf16.gmra.mxu0 %v4579_v18  ;;  %v5279_v18 = vld [vmem:[#allocation8 + $0x228] sm:$0xff]  ;;  %v4614_v4 = vld [vmem:[#allocation2 + $0x150] sm:$0xf] }
 0x1c9   : > { %3485 = vmatpush.bf16.msra.mxu1 %v5279_v18 }
 0x1ca   : > { %v2015_v57 = vpop.f32.mrf.mxu3 }
 0x1cb   : > { %v6146_v19 = vadd.f32 %v2015_v57, %v6087_v6  ;;  %v4602_v57 = vld [vmem:[#allocation2 + $0x138] sm:$0xf] }
 0x1cc   : > { %v4603_v25 = vor.u32 %v5106_v12, %v4602_v57  ;;  %v5262_v57 = vld [vmem:[#allocation8 + $0x1a0] sm:$0xff] }
 0x1cd   : > { %v1977_v60 = vpop.f32.mrf.mxu2  ;;  %v6148_v29 = vpop.f32.mrf.mxu0  ;;  %3308 = vmatpush.bf16.msra.mxu3 %v5262_v57  ;;  %v5266_v12 = vld [vmem:[#allocation8 + $0x1c0] sm:$0xff]  ;;  %v4508_v57 = vld [vmem:[#allocation2 + $0x84] sm:$0xf0] }
 0x1ce   : > { %v6150_v23 = vadd.f32 %v1977_v60, %v1888_v22 }
 0x1cf   : > { %v1891_v28 = vpop.f32.mrf.mxu1 }
 0x1d2   : > { %2626 = vmatmul.bf16.gmra.mxu1 %v4463_v31  ;;  %2715 = vmatmul.bf16.gmra.mxu2 %v4467_v34  ;;  %v2017_v39 = vpop.f32.mrf.mxu3  ;;  %v5270_v31 = vld [vmem:[#allocation8 + $0x1e0] sm:$0xff] }
 0x1d3   : > { %v6153_v6 = vadd.f32 %v2017_v39, %v6098_v24  ;;  %v5072_v24 = vld [vmem:[#allocation2 + $0x34] sm:$0xf]  ;;  %3397 = vmatpush.bf16.msra.mxu0 %v5270_v31  ;;  %v4502_v31 = vld [vmem:[#allocation2 + $0x68] sm:$0xf] }
 0x1d4   : > { %v4475_v13 = vor.u32 %v5072_v24, %v4472_v2  ;;  %v5161_v2 = vld [vmem:[#allocation2 + $0xd0] sm:$0xf0] }
 0x1d5   : > { %v1980_v47 = vpop.f32.mrf.mxu2  ;;  %v6157_v58 = vpop.f32.mrf.mxu0 }
 0x1d6   : > { %v6155_v54 = vadd.f32 %v1980_v47, %v1891_v28  ;;  %v5077_v47 = vld [vmem:[#allocation2 + $0x58] sm:$0xf0] }
 0x1d7   : > { %v1893_v51 = vpop.f32.mrf.mxu1  ;;  %2068 = vmatmul.bf16.gmra.mxu3 %v4227_v49 }
 0x1d8   : > { %2592 = vmatmul.bf16.gmra.mxu0 %v4591_v26  ;;  %v5269_v26 = vld [vmem:[#allocation8 + $0x1d8] sm:$0xff] }
 0x1d9   : > { %3398 = vmatpush.bf16.msra.mxu0 %v5269_v26 }
 0x1da   : > { %v2020_v33 = vpop.f32.mrf.mxu3 }
 0x1db   : > { %v6160_v61 = vadd.f32 %v2020_v33, %v6105_v52  ;;  %v5158_v52 = vld [vmem:[#allocation2 + $0xb8] sm:$0xf0]  ;;  %v4491_v33 = vor.u32 %v5077_v47, %v4490_v46 }
 0x1dc   : > { %v4239_v53 = vor.u32 %v5158_v52, %v4238_v16  ;;  %v5267_v52 = vld [vmem:[#allocation8 + $0x1c8] sm:$0xff] }
 0x1dd   : > { %v1982_v62 = vpop.f32.mrf.mxu2  ;;  %v6164_v11 = vpop.f32.mrf.mxu0  ;;  %3399 = vmatpush.bf16.msra.mxu0 %v5268_v3 }
 0x1de   : > { %v6162_v5 = vadd.f32 %v1982_v62, %v1893_v51  ;;  %v4250_v62 = vld [vmem:[#allocation2 + $0xc8] sm:$0xf] }
 0x1df   : > { %v1896_v9 = vpop.f32.mrf.mxu1 }
 0x1e1   : > { %3400 = vmatpush.bf16.msra.mxu0 %v5267_v52 }
 0x1e2   : > { %2631 = vmatmul.bf16.gmra.mxu1 %v4475_v13  ;;  %2720 = vmatmul.bf16.gmra.mxu2 %v4479_v55  ;;  %v2022_v14 = vpop.f32.mrf.mxu3  ;;  %v4251_v55 = vor.u32 %v5161_v2, %v4250_v62  ;;  %v5112_v62 = vld [vmem:[#allocation2 + $0x170] sm:$0xf0] }
 0x1e3   : > { %v6167_v22 = vadd.f32 %v2022_v14, %v6115_v32  ;;  %v5075_v32 = vld [vmem:[#allocation2 + $0x4c] sm:$0xf] }
 0x1e4   : > { %v4487_v44 = vor.u32 %v5075_v32, %v4484_v45 }
 0x1e5   : > { %6831 = vst [vmem:[#allocation18_spill] sm:$0xff] %v6167_v22  ;;  %v1985_v60 = vpop.f32.mrf.mxu2  ;;  %v6171_v34 = vpop.f32.mrf.mxu0  ;;  %3401 = vmatpush.bf16.msra.mxu0 %v5266_v12  ;;  %v4514_v12 = vld [vmem:[#allocation2 + $0x80] sm:$0xf]  ;;  %v4772_v22 = vld [vmem:[#allocation2 + $0x84] sm:$0xf0] }
 0x1e6   : > { %v6169_v43 = vadd.f32 %v1985_v60, %v1896_v9  ;;  %v5109_v9 = vld [vmem:[#allocation2 + $0x158] sm:$0xf0] }
 0x1e7   : > { %v1898_v28 = vpop.f32.mrf.mxu1  ;;  %2073 = vmatmul.bf16.gmra.mxu3 %v4239_v53  ;;  %v4615_v16 = vor.u32 %v5109_v9, %v4614_v4  ;;  %v5078_v53 = vld [vmem:[#allocation2 + $0x64] sm:$0xf] }
 0x1e8   : > { %2597 = vmatmul.bf16.gmra.mxu0 %v4603_v25 }
 0x1ea   : > { %v2025_v39 = vpop.f32.mrf.mxu3 }
 0x1eb   : > { %v6174_v42 = vadd.f32 %v2025_v39, %v6121_v30  ;;  %v5080_v39 = vld [vmem:[#allocation2 + $0x70] sm:$0xf0] }
 0x1ec   : > { %v4503_v47 = vor.u32 %v5080_v39, %v4502_v31 }
 0x1ed   : > { %6832 = vst [vmem:[#allocation19_spill] sm:$0xff] %v6174_v42  ;;  %v1987_v63 = vpop.f32.mrf.mxu2  ;;  %v6181_v10 = vpop.f32.mrf.mxu0  ;;  %v5219_v42 = vld [vmem:[#allocation2 + $0x7c] sm:$0xf] }
 0x1ee   : > { %v6176_v49 = vadd.f32 %v1987_v63, %v1898_v28  ;;  %v4496_v28 = vld [vmem:[#allocation2 + $0x6c] sm:$0xf0] }
 0x1ef   : > { %v1901_v51 = vpop.f32.mrf.mxu1  ;;  %v4499_v46 = vor.u32 %v5078_v53, %v4496_v28 }
 0x1f2   : > { %2636 = vmatmul.bf16.gmra.mxu1 %v4487_v44  ;;  %2725 = vmatmul.bf16.gmra.mxu2 %v4491_v33  ;;  %v2027_v24 = vpop.f32.mrf.mxu3  ;;  %v5164_v44 = vld [vmem:[#allocation2 + $0xe8] sm:$0xf0] }
 0x1f3   : > { %v6179_v30 = vadd.f32 %v2027_v24, %v6127_v41  ;;  %v4626_v24 = vld [vmem:[#allocation2 + $0x168] sm:$0xf] }
 0x1f4   : > { %v4627_v9 = vor.u32 %v5112_v62, %v4626_v24 }
 0x1f5   : > { %6833 = vst [vmem:[#allocation20_spill] sm:$0xff] %v6179_v30  ;;  %v1990_v13 = vpop.f32.mrf.mxu2  ;;  %v6188_v32 = vpop.f32.mrf.mxu0 }
 0x1f6   : > { %v6183_v14 = vadd.f32 %v1990_v13, %v1901_v51  ;;  %v4262_v51 = vld [vmem:[#allocation2 + $0xe0] sm:$0xf] }
 0x1f7   : > { %v1903_v18 = vpop.f32.mrf.mxu1  ;;  %2078 = vmatmul.bf16.gmra.mxu3 %v4251_v55  ;;  %v4263_v3 = vor.u32 %v5164_v44, %v4262_v51  ;;  %v4736_v51 = vld [vmem:[#allocation2 + $0x3c] sm:$0xf0] }
 0x1f8   : > { %2602 = vmatmul.bf16.gmra.mxu0 %v4615_v16 }
 0x1fa   : > { %v2030_v41 = vpop.f32.mrf.mxu3 }
 0x1fb   : > { %v6186_v60 = vadd.f32 %v2030_v41, %v6133_v40  ;;  %v5278_v40 = vld [vmem:[#allocation8 + $0x220] sm:$0xff]  ;;  %v5083_v41 = vld [vmem:[#allocation2 + $0x88] sm:$0xf0] }
 0x1fc   : > { %3486 = vmatpush.bf16.msra.mxu1 %v5278_v40  ;;  %v4515_v31 = vor.u32 %v5083_v41, %v4514_v12  ;;  %v5086_v12 = vld [vmem:[#allocation2 + $0xa0] sm:$0xf0] }
 0x1fd   : > { %6834 = vst [vmem:[#allocation21_spill] sm:$0xff] %v6186_v60  ;;  %v1992_v25 = vpop.f32.mrf.mxu2  ;;  %v6197_v55 = vpop.f32.mrf.mxu0 }
 0x1fe   : > { %v6190_v63 = vadd.f32 %v1992_v25, %v1903_v18  ;;  %v5081_v18 = vld [vmem:[#allocation2 + $0x7c] sm:$0xf] }
 0x1ff   : > { %v1906_v45 = vpop.f32.mrf.mxu1  ;;  %v4511_v28 = vor.u32 %v5081_v18, %v4508_v57  ;;  %v4526_v57 = vld [vmem:[#allocation2 + $0x98] sm:$0xf] }
 0x202   : > { %2641 = vmatmul.bf16.gmra.mxu1 %v4499_v46  ;;  %2730 = vmatmul.bf16.gmra.mxu2 %v4503_v47  ;;  %v2032_v26 = vpop.f32.mrf.mxu3  ;;  %v4274_v46 = vld [vmem:[#allocation2 + $0xf8] sm:$0xf]  ;;  %v5167_v47 = vld [vmem:[#allocation2 + $0x100] sm:$0xf0] }
 0x203   : > { %v6193_v33 = vadd.f32 %v2032_v26, %v6139_v8  ;;  %v5210_v26 = vld [vmem:[#allocation2 + $0x34] sm:$0xf]  ;;  %v4275_v40 = vor.u32 %v5167_v47, %v4274_v46  ;;  %v4286_v46 = vld [vmem:[#allocation2 + $0x110] sm:$0xf]  ;;  %v5170_v47 = vld [vmem:[#allocation2 + $0x118] sm:$0xf0] }
 0x204   : > { %v4739_v62 = vor.u32 %v5210_v26, %v4736_v51  ;;  %v5277_v26 = vld [vmem:[#allocation8 + $0x218] sm:$0xff] }
 0x205   : > { %6835 = vst [vmem:[#allocation22_spill] sm:$0xff] %v6193_v33  ;;  %v1995_v2 = vpop.f32.mrf.mxu2  ;;  %v6204_v39 = vpop.f32.mrf.mxu0  ;;  %v5213_v51 = vld [vmem:[#allocation2 + $0x4c] sm:$0xf]  ;;  %3487 = vmatpush.bf16.msra.mxu1 %v5277_v26 }
 0x206   : > { %v6195_v4 = vadd.f32 %v1995_v2, %v1906_v45 }
 0x207   : > { %v1908_v13 = vpop.f32.mrf.mxu1  ;;  %2083 = vmatmul.bf16.gmra.mxu3 %v4263_v3  ;;  %v5261_v3 = vld [vmem:[#allocation8 + $0x198] sm:$0xff] }
 0x208   : > { %2607 = vmatmul.bf16.gmra.mxu0 %v4627_v9  ;;  %3309 = vmatpush.bf16.msra.mxu3 %v5261_v3 }
 0x20a   : > { %v2044_v16 = vpop.f32.mrf.mxu3 }
 0x20b   : > { %v6200_v52 = vadd.f32 %v2044_v16, %v6084_v48 }
 0x20d   : > { %v1997_v8 = vpop.f32.mrf.mxu2  ;;  %v6214_v16 = vpop.f32.mrf.mxu0 }
 0x20e   : > { %v6202_v53 = vadd.f32 %v1997_v8, %v1908_v13  ;;  %v4520_v8 = vld [vmem:[#allocation2 + $0x9c] sm:$0xf0] }
 0x20f   : > { %v1911_v25 = vpop.f32.mrf.mxu1 }
 0x212   : > { %2646 = vmatmul.bf16.gmra.mxu1 %v4511_v28  ;;  %2735 = vmatmul.bf16.gmra.mxu2 %v4515_v31  ;;  %v2046_v45 = vpop.f32.mrf.mxu3  ;;  %v4527_v31 = vor.u32 %v5086_v12, %v4526_v57  ;;  %v5087_v57 = vld [vmem:[#allocation2 + $0xac] sm:$0xf]  ;;  %v4532_v12 = vld [vmem:[#allocation2 + $0xb4] sm:$0xf0] }
 0x213   : > { %v6207_v48 = vadd.f32 %v2046_v45, %v6089_v7  ;;  %v5084_v7 = vld [vmem:[#allocation2 + $0x94] sm:$0xf] }
 0x214   : > { %v4523_v28 = vor.u32 %v5084_v7, %v4520_v8 }
 0x215   : > { %v2000_v44 = vpop.f32.mrf.mxu2  ;;  %v6221_v3 = vpop.f32.mrf.mxu0 }
 0x216   : > { %v6209_v24 = vadd.f32 %v2000_v44, %v1911_v25  ;;  %v4748_v44 = vld [vmem:[#allocation2 + $0x54] sm:$0xf0] }
 0x217   : > { %v1913_v2 = vpop.f32.mrf.mxu1  ;;  %2088 = vmatmul.bf16.gmra.mxu3 %v4275_v40 }
 0x218   : > { %3402 = vmatmul.bf16.vlgmr.msra.gmra.mxu0 %v4739_v62  ;;  %v4287_v62 = vor.u32 %v5170_v47, %v4286_v46 }
 0x21a   : > { %v2049_v9 = vpop.f32.mrf.mxu3 }
 0x21b   : > { %v6212_v13 = vadd.f32 %v2049_v9, %v6101_v56  ;;  %v4751_v9 = vor.u32 %v5213_v51, %v4748_v44  ;;  %v4298_v44 = vld [vmem:[#allocation2 + $0x128] sm:$0xf] }
 0x21d   : > { %v2002_v18 = vpop.f32.mrf.mxu2  ;;  %v6230_v47 = vpop.f32.mrf.mxu0 }
 0x21e   : > { %v6216_v41 = vadd.f32 %v2002_v18, %v1913_v2 }
 0x21f   : > { %v1916_v25 = vpop.f32.mrf.mxu1 }
 0x222   : > { %2651 = vmatmul.bf16.gmra.mxu1 %v4523_v28  ;;  %2740 = vmatmul.bf16.gmra.mxu2 %v4527_v31  ;;  %v2051_v45 = vpop.f32.mrf.mxu3  ;;  %v4538_v28 = vld [vmem:[#allocation2 + $0xb0] sm:$0xf]  ;;  %v5089_v31 = vld [vmem:[#allocation2 + $0xb8] sm:$0xf0] }
 0x223   : > { %v6219_v56 = vadd.f32 %v2051_v45, %v6107_v15  ;;  %v4539_v26 = vor.u32 %v5089_v31, %v4538_v28 }
 0x225   : > { %v2005_v40 = vpop.f32.mrf.mxu2 }
 0x226   : > { %v6223_v2 = vadd.f32 %v2005_v40, %v1916_v25  ;;  %v4535_v25 = vor.u32 %v5087_v57, %v4532_v12  ;;  %v5173_v40 = vld [vmem:[#allocation2 + $0x130] sm:$0xf0]  ;;  %v5260_v57 = vld [vmem:[#allocation8 + $0x190] sm:$0xff]  ;;  %v6237_v12 = vpop.f32.mrf.mxu0 }
 0x227   : > { %v1918_v7 = vpop.f32.mrf.mxu1  ;;  %2093 = vmatmul.bf16.gmra.mxu3 %v4287_v62  ;;  %v5289_v62 = vld [vmem:[#allocation9 + $0x38] sm:$0xff] }
 0x228   : > { %3407 = vmatmul.bf16.gmra.mxu0 %v4751_v9  ;;  %v5216_v9 = vld [vmem:[#allocation2 + $0x64] sm:$0xf]  ;;  %3756 = vmatpush.bf16.msra.mxu2 %v5289_v62  ;;  %v5092_v62 = vld [vmem:[#allocation2 + $0xd0] sm:$0xf0] }
 0x229   : > { %3310 = vmatpush.bf16.msra.mxu3 %v5260_v57  ;;  %v5276_v57 = vld [vmem:[#allocation8 + $0x210] sm:$0xff] }
 0x22a   : > { %v2054_v18 = vpop.f32.mrf.mxu3  ;;  %3488 = vmatpush.bf16.msra.mxu1 %v5276_v57  ;;  %v5095_v57 = vld [vmem:[#allocation2 + $0xe8] sm:$0xf0] }
 0x22b   : > { %v6226_v8 = vadd.f32 %v2054_v18, %v6117_v27  ;;  %v4760_v18 = vld [vmem:[#allocation2 + $0x6c] sm:$0xf0] }
 0x22c   : > { %v4763_v60 = vor.u32 %v5216_v9, %v4760_v18 }
 0x22d   : > { %v2007_v15 = vpop.f32.mrf.mxu2 }
 0x22e   : > { %v6228_v45 = vadd.f32 %v2007_v15, %v1918_v7  ;;  %v4299_v7 = vor.u32 %v5173_v40, %v4298_v44 }
 0x22f   : > { %v1921_v46 = vpop.f32.mrf.mxu1 }
 0x232   : > { %2656 = vmatmul.bf16.gmra.mxu1 %v4535_v25  ;;  %2745 = vmatmul.bf16.gmra.mxu2 %v4539_v26  ;;  %v2056_v51 = vpop.f32.mrf.mxu3  ;;  %v4544_v26 = vld [vmem:[#allocation2 + $0xcc] sm:$0xf0] }
 0x233   : > { %v6233_v27 = vadd.f32 %v2056_v51, %v6123_v37  ;;  %v5090_v37 = vld [vmem:[#allocation2 + $0xc4] sm:$0xf]  ;;  %v4550_v51 = vld [vmem:[#allocation2 + $0xc8] sm:$0xf] }
 0x234   : > { %v4547_v40 = vor.u32 %v5090_v37, %v4544_v26  ;;  %v4551_v9 = vor.u32 %v5092_v62, %v4550_v51  ;;  %v2536_v37 = vadd.f32 %v6109_v20, %v6207_v48  ;;  %v4775_v26 = vor.u32 %v5219_v42, %v4772_v22 }
 0x235   : > { %v2010_v33 = vpop.f32.mrf.mxu2  ;;  %v2539_v20 = vadd.f32 %v6119_v21, %v6212_v13  ;;  %v2541_v21 = vadd.f32 %v6125_v59, %v6219_v56  ;;  %v2544_v59 = vadd.f32 %v6131_v50, %v6226_v8 }
 0x236   : > { %v6235_v15 = vadd.f32 %v2010_v33, %v1921_v46  ;;  %v2534_v33 = vadd.f32 %v6103_v38, %v6200_v52 }
 0x237   : > { %v1923_v30 = vpop.f32.mrf.mxu1  ;;  %2098 = vmatmul.bf16.gmra.mxu3 %v4299_v7  ;;  %v4310_v7 = vld [vmem:[#allocation2 + $0x140] sm:$0xf] }
 0x238   : > { %3412 = vmatmul.bf16.gmra.mxu0 %v4763_v60 }
 0x23a   : > { %v2059_v28 = vpop.f32.mrf.mxu3 }
 0x23b   : > { %v6240_v31 = vadd.f32 %v2059_v28, %v6129_v36  ;;  %v5176_v36 = vld [vmem:[#allocation2 + $0x148] sm:$0xf0] }
 0x23c   : > { %v4311_v38 = vor.u32 %v5176_v36, %v4310_v7 }
 0x23d   : > { %v2012_v25 = vpop.f32.mrf.mxu2 }
 0x23e   : > { %v6242_v44 = vadd.f32 %v2012_v25, %v1923_v30  ;;  %v6249_v30 = vpop.f32.mrf.mxu0 }
 0x23f   : > { %v2622_v46 = vpop.f32.mrf.mxu1 }
 0x240   : > { %v2623_v60 = vadd.f32 %v2622_v46, %v2534_v33  ;;  %v5093_v46 = vld [vmem:[#allocation2 + $0xdc] sm:$0xf] }
 0x242   : > { %2661 = vmatmul.bf16.gmra.mxu1 %v4547_v40  ;;  %2750 = vmatmul.bf16.gmra.mxu2 %v4551_v9  ;;  %v2061_v18 = vpop.f32.mrf.mxu3  ;;  %v4556_v9 = vld [vmem:[#allocation2 + $0xe4] sm:$0xf0] }
 0x243   : > { %v6247_v28 = vadd.f32 %v2061_v18, %v6135_v0  ;;  %v4562_v18 = vld [vmem:[#allocation2 + $0xe0] sm:$0xf]  ;;  %v4559_v48 = vor.u32 %v5093_v46, %v4556_v9 }
 0x244   : > { %v4563_v36 = vor.u32 %v5095_v57, %v4562_v18  ;;  %v5259_v57 = vld [vmem:[#allocation8 + $0x188] sm:$0xff] }
 0x245   : > { %v2711_v25 = vpop.f32.mrf.mxu2  ;;  %3311 = vmatpush.bf16.msra.mxu3 %v5259_v57 }
 0x246   : > { %v6251_v52 = vadd.f32 %v2711_v25, %v2623_v60  ;;  %v6258_v7 = vpop.f32.mrf.mxu0  ;;  %v4322_v25 = vld [vmem:[#allocation2 + $0x158] sm:$0xf] }
 0x247   : > { %v2624_v51 = vpop.f32.mrf.mxu1  ;;  %2103 = vmatmul.bf16.gmra.mxu3 %v4311_v38  ;;  %v5179_v38 = vld [vmem:[#allocation2 + $0x160] sm:$0xf0] }
 0x248   : > { %v2625_v62 = vadd.f32 %v2624_v51, %v2536_v37  ;;  %3417 = vmatmul.bf16.gmra.mxu0 %v4775_v26  ;;  %v5288_v37 = vld [vmem:[#allocation9 + $0x30] sm:$0xff]  ;;  %v5222_v51 = vld [vmem:[#allocation2 + $0x94] sm:$0xf] }
 0x249   : > { %3757 = vmatpush.bf16.msra.mxu2 %v5288_v37 }
 0x24a   : > { %v2064_v33 = vpop.f32.mrf.mxu3 }
 0x24b   : > { %v6256_v0 = vadd.f32 %v2064_v33, %v6143_v17  ;;  %v4784_v33 = vld [vmem:[#allocation2 + $0x9c] sm:$0xf0] }
 0x24c   : > { %v4787_v13 = vor.u32 %v5222_v51, %v4784_v33 }
 0x24d   : > { %v2713_v40 = vpop.f32.mrf.mxu2 }
 0x24e   : > { %v6260_v60 = vadd.f32 %v2713_v40, %v2625_v62  ;;  %v4323_v40 = vor.u32 %v5179_v38, %v4322_v25  ;;  %v6271_v9 = vpop.f32.mrf.mxu0 }
 0x24f   : > { %v2627_v22 = vpop.f32.mrf.mxu1 }
 0x250   : > { %6836 = vst [vmem:[#allocation23_spill] sm:$0xff] %v6260_v60  ;;  %v2628_v42 = vadd.f32 %v2627_v22, %v2539_v20  ;;  %v5096_v22 = vld [vmem:[#allocation2 + $0xf4] sm:$0xf] }
 0x252   : > { %2666 = vmatmul.bf16.gmra.mxu1 %v4559_v48  ;;  %2755 = vmatmul.bf16.gmra.mxu2 %v4563_v36  ;;  %v2066_v17 = vpop.f32.mrf.mxu3  ;;  %v4574_v36 = vld [vmem:[#allocation2 + $0xf8] sm:$0xf] }
 0x253   : > { %v6265_v26 = vadd.f32 %v2066_v17, %v6150_v23  ;;  %v5098_v17 = vld [vmem:[#allocation2 + $0x100] sm:$0xf0] }
 0x254   : > { %v4575_v51 = vor.u32 %v5098_v17, %v4574_v36 }
 0x255   : > { %v2716_v62 = vpop.f32.mrf.mxu2 }
 0x256   : > { %v6267_v60 = vadd.f32 %v2716_v62, %v2628_v42  ;;  %v4568_v42 = vld [vmem:[#allocation2 + $0xfc] sm:$0xf0]  ;;  %v6280_v33 = vpop.f32.mrf.mxu0  ;;  %v4334_v62 = vld [vmem:[#allocation2 + $0x170] sm:$0xf] }
 0x257   : > { %v2629_v46 = vpop.f32.mrf.mxu1  ;;  %2108 = vmatmul.bf16.gmra.mxu3 %v4323_v40  ;;  %v4571_v37 = vor.u32 %v5096_v22, %v4568_v42  ;;  %v5182_v40 = vld [vmem:[#allocation2 + $0x178] sm:$0xf0] }
 0x258   : > { %v2630_v18 = vadd.f32 %v2629_v46, %v2541_v21  ;;  %3422 = vmatmul.bf16.gmra.mxu0 %v4787_v13  ;;  %v5275_v21 = vld [vmem:[#allocation8 + $0x208] sm:$0xff]  ;;  %v5225_v46 = vld [vmem:[#allocation2 + $0xac] sm:$0xf]  ;;  %v4335_v50 = vor.u32 %v5182_v40, %v4334_v62 }
 0x259   : > { %3489 = vmatpush.bf16.msra.mxu1 %v5275_v21 }
 0x25a   : > { %v2069_v23 = vpop.f32.mrf.mxu3 }
 0x25b   : > { %v6274_v20 = vadd.f32 %v2069_v23, %v6155_v54  ;;  %v2546_v23 = vadd.f32 %v6137_v1, %v6233_v27  ;;  %v2549_v1 = vadd.f32 %v6141_v35, %v6240_v31  ;;  %v2551_v31 = vadd.f32 %v6148_v29, %v6247_v28 }
 0x25d   : > { %v2718_v48 = vpop.f32.mrf.mxu2 }
 0x25e   : > { %v6276_v25 = vadd.f32 %v2718_v48, %v2630_v18  ;;  %v4796_v18 = vld [vmem:[#allocation2 + $0xb4] sm:$0xf0]  ;;  %v5258_v48 = vld [vmem:[#allocation8 + $0x180] sm:$0xff] }
 0x25f   : > { %v2632_v56 = vpop.f32.mrf.mxu1  ;;  %v4799_v22 = vor.u32 %v5225_v46, %v4796_v18  ;;  %3312 = vmatpush.bf16.msra.mxu3 %v5258_v48  ;;  %v4346_v18 = vld [vmem:[#allocation2 + $0x188] sm:$0xf]  ;;  %v4808_v48 = vld [vmem:[#allocation2 + $0xcc] sm:$0xf0] }
 0x260   : > { %v2633_v38 = vadd.f32 %v2632_v56, %v2544_v59  ;;  %v6292_v59 = vpop.f32.mrf.mxu0  ;;  %v5099_v56 = vld [vmem:[#allocation2 + $0x10c] sm:$0xf] }
 0x262   : > { %2671 = vmatmul.bf16.gmra.mxu1 %v4571_v37  ;;  %2760 = vmatmul.bf16.gmra.mxu2 %v4575_v51  ;;  %v2071_v54 = vpop.f32.mrf.mxu3  ;;  %v4586_v51 = vld [vmem:[#allocation2 + $0x110] sm:$0xf] }
 0x263   : > { %v6283_v13 = vadd.f32 %v2071_v54, %v6162_v5  ;;  %v5101_v54 = vld [vmem:[#allocation2 + $0x118] sm:$0xf0] }
 0x264   : > { %v4587_v46 = vor.u32 %v5101_v54, %v4586_v51  ;;  %v5102_v54 = vld [vmem:[#allocation2 + $0x124] sm:$0xf] }
 0x265   : > { %v2721_v57 = vpop.f32.mrf.mxu2 }
 0x266   : > { %v6285_v8 = vadd.f32 %v2721_v57, %v2633_v38  ;;  %v4580_v38 = vld [vmem:[#allocation2 + $0x114] sm:$0xf0]  ;;  %v5185_v57 = vld [vmem:[#allocation2 + $0x190] sm:$0xf0] }
 0x267   : > { %v2634_v42 = vpop.f32.mrf.mxu1  ;;  %2113 = vmatmul.bf16.gmra.mxu3 %v4335_v50  ;;  %v4583_v21 = vor.u32 %v5099_v56, %v4580_v38  ;;  %v5287_v50 = vld [vmem:[#allocation9 + $0x28] sm:$0xff] }
 0x268   : > { %v2635_v36 = vadd.f32 %v2634_v42, %v2546_v23  ;;  %3427 = vmatmul.bf16.gmra.mxu0 %v4799_v22  ;;  %v5228_v22 = vld [vmem:[#allocation2 + $0xc4] sm:$0xf]  ;;  %3758 = vmatpush.bf16.msra.mxu2 %v5287_v50 }
 0x269   : > { %v4811_v56 = vor.u32 %v5228_v22, %v4808_v48  ;;  %v4734_v22 = vld [vmem:[#allocation2 + $0x30] sm:$0xf]  ;;  %v5211_v48 = vld [vmem:[#allocation2 + $0x38] sm:$0xf0] }
 0x26a   : > { %v2074_v17 = vpop.f32.mrf.mxu3 }
 0x26b   : > { %v6290_v5 = vadd.f32 %v2074_v17, %v6169_v43  ;;  %v6301_v17 = vpop.f32.mrf.mxu0 }
 0x26d   : > { %v2723_v37 = vpop.f32.mrf.mxu2 }
 0x26e   : > { %v6294_v62 = vadd.f32 %v2723_v37, %v2635_v36  ;;  %v4347_v36 = vor.u32 %v5185_v57, %v4346_v18 }
 0x26f   : > { %v2637_v27 = vpop.f32.mrf.mxu1 }
 0x270   : > { %v2638_v40 = vadd.f32 %v2637_v27, %v2549_v1  ;;  %v4592_v27 = vld [vmem:[#allocation2 + $0x12c] sm:$0xf0] }
 0x271   : > { %v4595_v57 = vor.u32 %v5102_v54, %v4592_v27 }
 0x272   : > { %2676 = vmatmul.bf16.gmra.mxu1 %v4583_v21  ;;  %2765 = vmatmul.bf16.gmra.mxu2 %v4587_v46  ;;  %v2076_v43 = vpop.f32.mrf.mxu3  ;;  %v4598_v21 = vld [vmem:[#allocation2 + $0x128] sm:$0xf]  ;;  %v5104_v46 = vld [vmem:[#allocation2 + $0x130] sm:$0xf0] }
 0x273   : > { %v6299_v23 = vadd.f32 %v2076_v43, %v6176_v49  ;;  %v6314_v28 = vpop.f32.mrf.mxu0  ;;  %v4599_v50 = vor.u32 %v5104_v46, %v4598_v21  ;;  %v5105_v46 = vld [vmem:[#allocation2 + $0x13c] sm:$0xf] }
 0x275   : > { %v2726_v42 = vpop.f32.mrf.mxu2 }
 0x276   : > { %v6303_v35 = vadd.f32 %v2726_v42, %v2638_v40  ;;  %v2554_v40 = vadd.f32 %v6157_v58, %v6256_v0  ;;  %v5274_v42 = vld [vmem:[#allocation8 + $0x200] sm:$0xff]  ;;  %v4735_v58 = vor.u32 %v5211_v48, %v4734_v22 }
 0x277   : > { %v2639_v37 = vpop.f32.mrf.mxu1  ;;  %2118 = vmatmul.bf16.gmra.mxu3 %v4347_v36  ;;  %3490 = vmatpush.bf16.msra.mxu1 %v5274_v42  ;;  %v4746_v42 = vld [vmem:[#allocation2 + $0x48] sm:$0xf] }
 0x278   : > { %v2640_v38 = vadd.f32 %v2639_v37, %v2551_v31  ;;  %3432 = vmatmul.bf16.gmra.mxu0 %v4811_v56  ;;  %v5231_v31 = vld [vmem:[#allocation2 + $0xdc] sm:$0xf]  ;;  %v4820_v56 = vld [vmem:[#allocation2 + $0xe4] sm:$0xf0] }
 0x27a   : > { %v2079_v51 = vpop.f32.mrf.mxu3 }
 0x27b   : > { %v6308_v49 = vadd.f32 %v2079_v51, %v6183_v14  ;;  %v4823_v51 = vor.u32 %v5231_v31, %v4820_v56  ;;  %v6325_v27 = vpop.f32.mrf.mxu0  ;;  %v5214_v31 = vld [vmem:[#allocation2 + $0x50] sm:$0xf0] }
 0x27d   : > { %v2728_v1 = vpop.f32.mrf.mxu2 }
 0x27e   : > { %v6310_v43 = vadd.f32 %v2728_v1, %v2640_v38  ;;  %v2556_v38 = vadd.f32 %v6164_v11, %v6265_v26  ;;  %v2559_v11 = vadd.f32 %v6171_v34, %v6274_v20  ;;  %v4747_v34 = vor.u32 %v5214_v31, %v4746_v42 }
 0x27f   : > { %v2642_v29 = vpop.f32.mrf.mxu1 }
 0x280   : > { %v2643_v18 = vadd.f32 %v2642_v29, %v2554_v40  ;;  %v4604_v29 = vld [vmem:[#allocation2 + $0x144] sm:$0xf0] }
 0x282   : > { %2681 = vmatmul.bf16.gmra.mxu1 %v4595_v57  ;;  %2770 = vmatmul.bf16.gmra.mxu2 %v4599_v50  ;;  %v2081_v14 = vpop.f32.mrf.mxu3  ;;  %v5107_v57 = vld [vmem:[#allocation2 + $0x148] sm:$0xf0] }
 0x283   : > { %v6317_v36 = vadd.f32 %v2081_v14, %v6190_v63  ;;  %v4607_v14 = vor.u32 %v5105_v46, %v4604_v29 }
 0x285   : > { %v2731_v37 = vpop.f32.mrf.mxu2 }
 0x286   : > { %v6319_v0 = vadd.f32 %v2731_v37, %v2643_v18  ;;  %v4610_v18 = vld [vmem:[#allocation2 + $0x140] sm:$0xf]  ;;  %v5234_v37 = vld [vmem:[#allocation2 + $0xf4] sm:$0xf] }
 0x287   : > { %v2644_v54 = vpop.f32.mrf.mxu1  ;;  %3313 = vmatmul.bf16.vlgmr.msra.gmra.mxu3 %v4735_v58  ;;  %v4611_v22 = vor.u32 %v5107_v57, %v4610_v18  ;;  %v4832_v58 = vld [vmem:[#allocation2 + $0xfc] sm:$0xf0]  ;;  %v5108_v57 = vld [vmem:[#allocation2 + $0x154] sm:$0xf] }
 0x288   : > { %v6323_v1 = vadd.f32 %v2644_v54, %v2556_v38  ;;  %3437 = vmatmul.bf16.gmra.mxu0 %v4823_v51  ;;  %v6337_v38 = vpop.f32.mrf.mxu0  ;;  %v2561_v54 = vadd.f32 %v6181_v10, %v6283_v13  ;;  %v2564_v10 = vadd.f32 %v6188_v32, %v6290_v5  ;;  %v2566_v32 = vadd.f32 %v6197_v55, %v6299_v23 }
 0x289   : > { %v2569_v55 = vadd.f32 %v6204_v39, %v6308_v49 }
 0x28a   : > { %v2084_v63 = vpop.f32.mrf.mxu3 }
 0x28b   : > { %v6328_v21 = vadd.f32 %v2084_v63, %v6195_v4  ;;  %v5286_v4 = vld [vmem:[#allocation9 + $0x20] sm:$0xff]  ;;  %v4835_v63 = vor.u32 %v5234_v37, %v4832_v58  ;;  %v5217_v37 = vld [vmem:[#allocation2 + $0x68] sm:$0xf0] }
 0x28c   : > { %3759 = vmatpush.bf16.msra.mxu2 %v5286_v4 }
 0x28d   : > { %v6330_v40 = vpop.f32.mrf.mxu2 }
 0x28f   : > { %v2647_v26 = vpop.f32.mrf.mxu1 }
 0x290   : > { %v2648_v50 = vadd.f32 %v2647_v26, %v2559_v11  ;;  %v4616_v26 = vld [vmem:[#allocation2 + $0x15c] sm:$0xf0] }
 0x291   : > { %v4619_v42 = vor.u32 %v5108_v57, %v4616_v26 }
 0x292   : > { %2686 = vmatmul.bf16.gmra.mxu1 %v4607_v14  ;;  %2775 = vmatmul.bf16.gmra.mxu2 %v4611_v22  ;;  %v2086_v48 = vpop.f32.mrf.mxu3  ;;  %v4622_v14 = vld [vmem:[#allocation2 + $0x158] sm:$0xf]  ;;  %v6350_v22 = vpop.f32.mrf.mxu0 }
 0x293   : > { %v6335_v56 = vadd.f32 %v2086_v48, %v6202_v53 }
 0x295   : > { %v2736_v51 = vpop.f32.mrf.mxu2 }
 0x296   : > { %v6339_v20 = vadd.f32 %v2736_v51, %v2648_v50  ;;  %v5110_v50 = vld [vmem:[#allocation2 + $0x160] sm:$0xf0]  ;;  %v5237_v51 = vld [vmem:[#allocation2 + $0x10c] sm:$0xf] }
 0x297   : > { %v2649_v46 = vpop.f32.mrf.mxu1  ;;  %3318 = vmatmul.bf16.gmra.mxu3 %v4747_v34  ;;  %v4623_v31 = vor.u32 %v5110_v50, %v4622_v14  ;;  %v4844_v34 = vld [vmem:[#allocation2 + $0x114] sm:$0xf0]  ;;  %v5111_v50 = vld [vmem:[#allocation2 + $0x16c] sm:$0xf] }
 0x298   : > { %v6343_v29 = vadd.f32 %v2649_v46, %v2561_v54  ;;  %3442 = vmatmul.bf16.gmra.mxu0 %v4835_v63  ;;  %v4847_v5 = vor.u32 %v5237_v51, %v4844_v34  ;;  %v5220_v34 = vld [vmem:[#allocation2 + $0x80] sm:$0xf0] }
 0x29a   : > { %v2089_v53 = vpop.f32.mrf.mxu3  ;;  %v6361_v57 = vpop.f32.mrf.mxu0 }
 0x29b   : > { %v6346_v18 = vadd.f32 %v2089_v53, %v6209_v24  ;;  %v4758_v24 = vld [vmem:[#allocation2 + $0x60] sm:$0xf] }
 0x29c   : > { %v4759_v63 = vor.u32 %v5217_v37, %v4758_v24 }
 0x29d   : > { %v6348_v11 = vpop.f32.mrf.mxu2 }
 0x29f   : > { %v2652_v13 = vpop.f32.mrf.mxu1 }
 0x2a0   : > { %v2653_v48 = vadd.f32 %v2652_v13, %v2564_v10  ;;  %v4628_v13 = vld [vmem:[#allocation2 + $0x174] sm:$0xf0] }
 0x2a2   : > { %2691 = vmatmul.bf16.gmra.mxu1 %v4619_v42  ;;  %2780 = vmatmul.bf16.gmra.mxu2 %v4623_v31  ;;  %v2091_v4 = vpop.f32.mrf.mxu3  ;;  %v5113_v42 = vld [vmem:[#allocation2 + $0x178] sm:$0xf0]  ;;  %v6372_v37 = vpop.f32.mrf.mxu0 }
 0x2a3   : > { %v6355_v58 = vadd.f32 %v2091_v4, %v6216_v41  ;;  %v4631_v4 = vor.u32 %v5111_v50, %v4628_v13 }
 0x2a5   : > { %v2741_v54 = vpop.f32.mrf.mxu2 }
 0x2a6   : > { %v6357_v46 = vadd.f32 %v2741_v54, %v2653_v48  ;;  %v4634_v48 = vld [vmem:[#allocation2 + $0x170] sm:$0xf]  ;;  %v5285_v54 = vld [vmem:[#allocation9 + $0x18] sm:$0xff] }
 0x2a7   : > { %v2654_v53 = vpop.f32.mrf.mxu1  ;;  %3323 = vmatmul.bf16.gmra.mxu3 %v4759_v63  ;;  %v4635_v24 = vor.u32 %v5113_v42, %v4634_v48  ;;  %3760 = vmatpush.bf16.msra.mxu2 %v5285_v54  ;;  %v5223_v54 = vld [vmem:[#allocation2 + $0x98] sm:$0xf0] }
 0x2a8   : > { %v6363_v26 = vadd.f32 %v2654_v53, %v2566_v32  ;;  %3447 = vmatmul.bf16.gmra.mxu0 %v4847_v5  ;;  %v5240_v32 = vld [vmem:[#allocation2 + $0x124] sm:$0xf]  ;;  %v4856_v5 = vld [vmem:[#allocation2 + $0x12c] sm:$0xf0] }
 0x2a9   : > { %v4859_v50 = vor.u32 %v5240_v32, %v4856_v5  ;;  %v4868_v5 = vld [vmem:[#allocation2 + $0x144] sm:$0xf0] }
 0x2aa   : > { %v2094_v14 = vpop.f32.mrf.mxu3 }
 0x2ab   : > { %v6366_v41 = vadd.f32 %v2094_v14, %v6223_v2  ;;  %v4770_v2 = vld [vmem:[#allocation2 + $0x78] sm:$0xf]  ;;  %v2571_v14 = vadd.f32 %v6214_v16, %v6317_v36 }
 0x2ac   : > { %v4771_v39 = vor.u32 %v5220_v34, %v4770_v2  ;;  %v4782_v34 = vld [vmem:[#allocation2 + $0x90] sm:$0xf] }
 0x2ad   : > { %v6368_v10 = vpop.f32.mrf.mxu2 }
 0x2af   : > { %v2657_v23 = vpop.f32.mrf.mxu1 }
 0x2b0   : > { %v2658_v31 = vadd.f32 %v2657_v23, %v2569_v55  ;;  %v6386_v55 = vpop.f32.mrf.mxu0 }
 0x2b2   : > { %2696 = vmatmul.bf16.gmra.mxu1 %v4631_v4  ;;  %2785 = vmatmul.bf16.gmra.mxu2 %v4635_v24  ;;  %v2096_v51 = vpop.f32.mrf.mxu3  ;;  %v4742_v4 = vld [vmem:[#allocation2 + $0x38] sm:$0xf]  ;;  %v2574_v24 = vadd.f32 %v6221_v3, %v6328_v21  ;;  %v2576_v3 = vadd.f32 %v6230_v47, %v6335_v56 }
 0x2b3   : > { %v6375_v63 = vadd.f32 %v2096_v51, %v6228_v45 }
 0x2b5   : > { %v2746_v53 = vpop.f32.mrf.mxu2 }
 0x2b6   : > { %v6377_v49 = vadd.f32 %v2746_v53, %v2658_v31  ;;  %v5212_v31 = vld [vmem:[#allocation2 + $0x40] sm:$0xf0] }
 0x2b7   : > { %v2659_v13 = vpop.f32.mrf.mxu1  ;;  %3328 = vmatmul.bf16.gmra.mxu3 %v4771_v39  ;;  %v4743_v51 = vor.u32 %v5212_v31, %v4742_v4  ;;  %v4783_v39 = vor.u32 %v5223_v54, %v4782_v34  ;;  %v4794_v54 = vld [vmem:[#allocation2 + $0xa8] sm:$0xf] }
 0x2b8   : > { %v6381_v48 = vadd.f32 %v2659_v13, %v2571_v14  ;;  %3452 = vmatmul.bf16.gmra.mxu0 %v4859_v50  ;;  %v6395_v14 = vpop.f32.mrf.mxu0 }
 0x2ba   : > { %v2099_v42 = vpop.f32.mrf.mxu3 }
 0x2bb   : > { %v6384_v45 = vadd.f32 %v2099_v42, %v6235_v15  ;;  %v5243_v15 = vld [vmem:[#allocation2 + $0x13c] sm:$0xf] }
 0x2bc   : > { %v4871_v21 = vor.u32 %v5243_v15, %v4868_v5  ;;  %v5226_v15 = vld [vmem:[#allocation2 + $0xb0] sm:$0xf0]  ;;  %v5284_v5 = vld [vmem:[#allocation9 + $0x10] sm:$0xff] }
 0x2bd   : > { %v6388_v23 = vpop.f32.mrf.mxu2  ;;  %3761 = vmatpush.bf16.msra.mxu2 %v5284_v5  ;;  %v4806_v5 = vld [vmem:[#allocation2 + $0xc0] sm:$0xf] }
 0x2bf   : > { %v2662_v16 = vpop.f32.mrf.mxu1 }
 0x2c0   : > { %v2663_v36 = vadd.f32 %v2662_v16, %v2574_v24  ;;  %v4754_v24 = vld [vmem:[#allocation2 + $0x50] sm:$0xf]  ;;  %v5215_v16 = vld [vmem:[#allocation2 + $0x58] sm:$0xf0] }
 0x2c1   : > { %v4755_v56 = vor.u32 %v5215_v16, %v4754_v24 }
 0x2c2   : > { %3491 = vmatmul.bf16.vlgmr.msra.gmra.mxu1 %v4743_v51  ;;  %v2101_v2 = vpop.f32.mrf.mxu3 }
 0x2c3   : > { %v6393_v32 = vadd.f32 %v2101_v2, %v6242_v44  ;;  %v6410_v2 = vpop.f32.mrf.mxu0 }
 0x2c5   : > { %v2751_v53 = vpop.f32.mrf.mxu2 }
 0x2c6   : > { %v6397_v50 = vadd.f32 %v2751_v53, %v2663_v36  ;;  %v2579_v36 = vadd.f32 %v6237_v12, %v6346_v18  ;;  %v5246_v53 = vld [vmem:[#allocation2 + $0x154] sm:$0xf]  ;;  %v2581_v12 = vadd.f32 %v6249_v30, %v6355_v58 }
 0x2c7   : > { %v2664_v13 = vpop.f32.mrf.mxu1  ;;  %3333 = vmatmul.bf16.gmra.mxu3 %v4783_v39  ;;  %v4880_v39 = vld [vmem:[#allocation2 + $0x15c] sm:$0xf0] }
 0x2c8   : > { %v6401_v42 = vadd.f32 %v2664_v13, %v2576_v3  ;;  %3457 = vmatmul.bf16.gmra.mxu0 %v4871_v21  ;;  %v4795_v21 = vor.u32 %v5226_v15, %v4794_v54  ;;  %v4883_v18 = vor.u32 %v5246_v53, %v4880_v39  ;;  %v5229_v53 = vld [vmem:[#allocation2 + $0xc8] sm:$0xf0]  ;;  %v6838_v39 = vld [vmem:[#allocation18_spill] sm:$0xff] }
 0x2ca   : > { %v2104_v4 = vpop.f32.mrf.mxu3 }
 0x2cb   : > { %v6404_v44 = vadd.f32 %v2104_v4, %v6146_v19  ;;  %v6421_v16 = vpop.f32.mrf.mxu0 }
 0x2cd   : > { %v6406_v31 = vpop.f32.mrf.mxu2 }
 0x2cf   : > { %v2667_v51 = vpop.f32.mrf.mxu1 }
 0x2d0   : > { %v2668_v47 = vadd.f32 %v2667_v51, %v2579_v36 }
 0x2d2   : > { %3496 = vmatmul.bf16.gmra.mxu1 %v4755_v56  ;;  %v2106_v34 = vpop.f32.mrf.mxu3  ;;  %v4766_v56 = vld [vmem:[#allocation2 + $0x68] sm:$0xf] }
 0x2d3   : > { %v6413_v19 = vadd.f32 %v2106_v34, %v6153_v6  ;;  %v2584_v34 = vadd.f32 %v6258_v7, %v6366_v41  ;;  %v2586_v7 = vadd.f32 %v6271_v9, %v6375_v63 }
 0x2d5   : > { %v2756_v3 = vpop.f32.mrf.mxu2 }
 0x2d6   : > { %v6415_v13 = vadd.f32 %v2756_v3, %v2668_v47  ;;  %v5218_v47 = vld [vmem:[#allocation2 + $0x70] sm:$0xf0] }
 0x2d7   : > { %v2669_v4 = vpop.f32.mrf.mxu1  ;;  %3338 = vmatmul.bf16.gmra.mxu3 %v4795_v21  ;;  %v4767_v54 = vor.u32 %v5218_v47, %v4766_v56  ;;  %v5249_v21 = vld [vmem:[#allocation2 + $0x16c] sm:$0xf] }
 0x2d8   : > { %v6419_v24 = vadd.f32 %v2669_v4, %v2581_v12  ;;  %3462 = vmatmul.bf16.gmra.mxu0 %v4883_v18  ;;  %v6433_v12 = vpop.f32.mrf.mxu0  ;;  %v4807_v4 = vor.u32 %v5229_v53, %v4806_v5 }
 0x2da   : > { %v2109_v6 = vpop.f32.mrf.mxu3 }
 0x2db   : > { %v6424_v36 = vadd.f32 %v2109_v6, %v6160_v61  ;;  %v4892_v61 = vld [vmem:[#allocation2 + $0x174] sm:$0xf0] }
 0x2dc   : > { %v4895_v41 = vor.u32 %v5249_v21, %v4892_v61  ;;  %v4818_v61 = vld [vmem:[#allocation2 + $0xd8] sm:$0xf] }
 0x2dd   : > { %v6426_v51 = vpop.f32.mrf.mxu2 }
 0x2de   : > { %6837 = vst [vmem:[#allocation24_spill] sm:$0xff] %v6426_v51  ;;  %v5221_v51 = vld [vmem:[#allocation2 + $0x88] sm:$0xf0] }
 0x2df   : > { %v2672_v30 = vpop.f32.mrf.mxu1 }
 0x2e0   : > { %v2673_v58 = vadd.f32 %v2672_v30, %v2584_v34  ;;  %v6840_v30 = vld [vmem:[#allocation19_spill] sm:$0xff]  ;;  %v6446_v5 = vpop.f32.mrf.mxu0 }
 0x2e2   : > { %3501 = vmatmul.bf16.gmra.mxu1 %v4767_v54  ;;  %v2111_v15 = vpop.f32.mrf.mxu3 }
 0x2e3   : > { %v6431_v3 = vadd.f32 %v2111_v15, %v6838_v39  ;;  %v4778_v39 = vld [vmem:[#allocation2 + $0x80] sm:$0xf] }
 0x2e4   : > { %v4779_v53 = vor.u32 %v5221_v51, %v4778_v39 }
 0x2e5   : > { %v2761_v18 = vpop.f32.mrf.mxu2 }
 0x2e6   : > { %v6435_v6 = vadd.f32 %v2761_v18, %v2673_v58  ;;  %v2589_v58 = vadd.f32 %v6280_v33, %v6384_v45  ;;  %v5232_v18 = vld [vmem:[#allocation2 + $0xe0] sm:$0xf0]  ;;  %v2591_v33 = vadd.f32 %v6292_v59, %v6393_v32 }
 0x2e7   : > { %v2674_v56 = vpop.f32.mrf.mxu1  ;;  %3343 = vmatmul.bf16.gmra.mxu3 %v4807_v4  ;;  %v5283_v4 = vld [vmem:[#allocation9 + $0x8] sm:$0xff] }
 0x2e8   : > { %v6439_v47 = vadd.f32 %v2674_v56, %v2586_v7  ;;  %3467 = vmatmul.bf16.gmra.mxu0 %v4895_v41  ;;  %v6842_v7 = vld [vmem:[#allocation20_spill] sm:$0xff]  ;;  %3762 = vmatpush.bf16.msra.mxu2 %v5283_v4  ;;  %v6457_v39 = vpop.f32.mrf.mxu0 }
 0x2e9   : > { %v5252_v56 = vld [vmem:[#allocation2 + $0x184] sm:$0xf] }
 0x2ea   : > { %6839 = vst [vmem:[#allocation18_spill] sm:$0xff] %v6439_v47  ;;  %v2114_v34 = vpop.f32.mrf.mxu3 }
 0x2eb   : > { %v6442_v54 = vadd.f32 %v2114_v34, %v6840_v30  ;;  %v4904_v34 = vld [vmem:[#allocation2 + $0x18c] sm:$0xf0] }
 0x2ec   : > { %v4907_v45 = vor.u32 %v5252_v56, %v4904_v34  ;;  %v4830_v56 = vld [vmem:[#allocation2 + $0xf0] sm:$0xf]  ;;  %v5235_v34 = vld [vmem:[#allocation2 + $0xf8] sm:$0xf0] }
 0x2ed   : > { %v6444_v15 = vpop.f32.mrf.mxu2 }
 0x2ee   : > { %6841 = vst [vmem:[#allocation19_spill] sm:$0xff] %v6444_v15  ;;  %v4819_v15 = vor.u32 %v5232_v18, %v4818_v61  ;;  %v4790_v61 = vld [vmem:[#allocation2 + $0x98] sm:$0xf]  ;;  %v2594_v18 = vadd.f32 %v6301_v17, %v6404_v44 }
 0x2ef   : > { %v2677_v9 = vpop.f32.mrf.mxu1 }
 0x2f0   : > { %v2678_v63 = vadd.f32 %v2677_v9, %v2589_v58 }
 0x2f2   : > { %3506 = vmatmul.bf16.gmra.mxu1 %v4779_v53  ;;  %v2116_v21 = vpop.f32.mrf.mxu3  ;;  %v6843_v53 = vld [vmem:[#allocation21_spill] sm:$0xff] }
 0x2f3   : > { %v6451_v41 = vadd.f32 %v2116_v21, %v6842_v7 }
 0x2f5   : > { %v2766_v30 = vpop.f32.mrf.mxu2 }
 0x2f6   : > { %v6453_v47 = vadd.f32 %v2766_v30, %v2678_v63  ;;  %v5224_v63 = vld [vmem:[#allocation2 + $0xa0] sm:$0xf0]  ;;  %v6845_v30 = vld [vmem:[#allocation22_spill] sm:$0xff] }
 0x2f7   : > { %v2679_v51 = vpop.f32.mrf.mxu1  ;;  %3348 = vmatmul.bf16.gmra.mxu3 %v4819_v15  ;;  %v4791_v7 = vor.u32 %v5224_v63, %v4790_v61  ;;  %v4802_v63 = vld [vmem:[#allocation2 + $0xb0] sm:$0xf] }
 0x2f8   : > { %v6459_v58 = vadd.f32 %v2679_v51, %v2591_v33  ;;  %3472 = vmatmul.bf16.gmra.mxu0 %v4907_v45  ;;  %v4831_v51 = vor.u32 %v5235_v34, %v4830_v56  ;;  %v5282_v34 = vld [vmem:[#allocation9] sm:$0xff] }
 0x2f9   : > { %3763 = vmatpush.bf16.msra.mxu2 %v5282_v34 }
 0x2fa   : > { %v2119_v9 = vpop.f32.mrf.mxu3 }
 0x2fb   : > { %v6462_v21 = vadd.f32 %v2119_v9, %v6843_v53  ;;  %v2596_v53 = vadd.f32 %v6314_v28, %v6413_v19  ;;  %v4842_v28 = vld [vmem:[#allocation2 + $0x108] sm:$0xf]  ;;  %v5238_v19 = vld [vmem:[#allocation2 + $0x110] sm:$0xf0] }
 0x2fd   : > { %v6464_v4 = vpop.f32.mrf.mxu2 }
 0x2fe   : > { %6844 = vst [vmem:[#allocation20_spill] sm:$0xff] %v6464_v4 }
 0x2ff   : > { %v2682_v59 = vpop.f32.mrf.mxu1 }
 0x300   : > { %v2683_v32 = vadd.f32 %v2682_v59, %v2594_v18  ;;  %v5227_v18 = vld [vmem:[#allocation2 + $0xb8] sm:$0xf0]  ;;  %v2599_v59 = vadd.f32 %v6325_v27, %v6424_v36 }
 0x302   : > { %3511 = vmatmul.bf16.gmra.mxu1 %v4791_v7  ;;  %v2121_v15 = vpop.f32.mrf.mxu3 }
 0x303   : > { %v6469_v33 = vadd.f32 %v2121_v15, %v6845_v30  ;;  %v4843_v30 = vor.u32 %v5238_v19, %v4842_v28 }
 0x305   : > { %v2771_v45 = vpop.f32.mrf.mxu2 }
 0x306   : > { %v6471_v9 = vadd.f32 %v2771_v45, %v2683_v32  ;;  %v4803_v32 = vor.u32 %v5227_v18, %v4802_v63  ;;  %v4814_v18 = vld [vmem:[#allocation2 + $0xc8] sm:$0xf] }
 0x307   : > { %v2684_v4 = vpop.f32.mrf.mxu1  ;;  %3353 = vmatmul.bf16.gmra.mxu3 %v4831_v51  ;;  %v2601_v51 = vadd.f32 %v6337_v38, %v6431_v3  ;;  %v4854_v38 = vld [vmem:[#allocation2 + $0x120] sm:$0xf]  ;;  %v5241_v3 = vld [vmem:[#allocation2 + $0x128] sm:$0xf0] }
 0x308   : > { %v6475_v17 = vadd.f32 %v2684_v4, %v2596_v53 }
 0x30a   : > { %v6477_v44 = vpop.f32.mrf.mxu3 }
 0x30d   : > { %v6479_v61 = vpop.f32.mrf.mxu2 }
 0x30f   : > { %v2687_v7 = vpop.f32.mrf.mxu1 }
 0x310   : > { %v2688_v15 = vadd.f32 %v2687_v7, %v2599_v59  ;;  %v5230_v59 = vld [vmem:[#allocation2 + $0xd0] sm:$0xf0]  ;;  %v2604_v7 = vadd.f32 %v6350_v22, %v6442_v54 }
 0x312   : > { %3516 = vmatmul.bf16.gmra.mxu1 %v4803_v32  ;;  %v6483_v56 = vpop.f32.mrf.mxu3 }
 0x315   : > { %v2776_v4 = vpop.f32.mrf.mxu2 }
 0x316   : > { %v6485_v45 = vadd.f32 %v2776_v4, %v2688_v15  ;;  %v4815_v15 = vor.u32 %v5230_v59, %v4814_v18  ;;  %v4855_v4 = vor.u32 %v5241_v3, %v4854_v38  ;;  %v4826_v18 = vld [vmem:[#allocation2 + $0xe0] sm:$0xf]  ;;  %v5233_v59 = vld [vmem:[#allocation2 + $0xe8] sm:$0xf0] }
 0x317   : > { %v2689_v53 = vpop.f32.mrf.mxu1  ;;  %3358 = vmatmul.bf16.gmra.mxu3 %v4843_v30 }
 0x318   : > { %v6489_v27 = vadd.f32 %v2689_v53, %v2601_v51  ;;  %v2606_v51 = vadd.f32 %v6361_v57, %v6451_v41  ;;  %v4866_v57 = vld [vmem:[#allocation2 + $0x138] sm:$0xf]  ;;  %v5244_v41 = vld [vmem:[#allocation2 + $0x140] sm:$0xf0] }
 0x31a   : > { %v6491_v36 = vpop.f32.mrf.mxu3 }
 0x31d   : > { %v6493_v63 = vpop.f32.mrf.mxu2 }
 0x31e   : > { %6846 = vst [vmem:[#allocation21_spill] sm:$0xff] %v6493_v63 }
 0x31f   : > { %v2692_v32 = vpop.f32.mrf.mxu1 }
 0x320   : > { %v2693_v28 = vadd.f32 %v2692_v32, %v2604_v7  ;;  %v2609_v7 = vadd.f32 %v6372_v37, %v6462_v21  ;;  %v6519_v37 = vpop.f32.mrf.mxu0 }
 0x322   : > { %3521 = vmatmul.bf16.gmra.mxu1 %v4815_v15  ;;  %v6497_v19 = vpop.f32.mrf.mxu3 }
 0x325   : > { %v2781_v34 = vpop.f32.mrf.mxu2 }
 0x326   : > { %v6499_v30 = vadd.f32 %v2781_v34, %v2693_v28  ;;  %v4827_v28 = vor.u32 %v5233_v59, %v4826_v18  ;;  %v4867_v34 = vor.u32 %v5244_v41, %v4866_v57  ;;  %v4838_v18 = vld [vmem:[#allocation2 + $0xf8] sm:$0xf]  ;;  %v5236_v59 = vld [vmem:[#allocation2 + $0x100] sm:$0xf0]  ;;  %v4878_v57 = vld [vmem:[#allocation2 + $0x150] sm:$0xf] }
 0x327   : > { %v2694_v53 = vpop.f32.mrf.mxu1  ;;  %3363 = vmatmul.bf16.gmra.mxu3 %v4855_v4  ;;  %v5247_v41 = vld [vmem:[#allocation2 + $0x158] sm:$0xf0] }
 0x328   : > { %6847 = vst [vmem:[#allocation22_spill] sm:$0xff] %v6499_v30  ;;  %v6503_v63 = vadd.f32 %v2694_v53, %v2606_v51  ;;  %v2611_v51 = vadd.f32 %v6386_v55, %v6469_v33  ;;  %v6525_v55 = vpop.f32.mrf.mxu0 }
 0x32a   : > { %6848 = vst [vmem:[#allocation25_spill] sm:$0xff] %v6503_v63  ;;  %v6505_v22 = vpop.f32.mrf.mxu3 }
 0x32d   : > { %v6507_v54 = vpop.f32.mrf.mxu2 }
 0x32e   : > { %6849 = vst [vmem:[#allocation26_spill] sm:$0xff] %v6507_v54 }
 0x32f   : > { %v2697_v32 = vpop.f32.mrf.mxu1 }
 0x330   : > { %v2698_v15 = vadd.f32 %v2697_v32, %v2609_v7  ;;  %v3404_v32 = vadd.f32 %v6395_v14, %v6477_v44 }
 0x332   : > { %3526 = vmatmul.bf16.gmra.mxu1 %v4827_v28  ;;  %v6511_v38 = vpop.f32.mrf.mxu3  ;;  %v4839_v28 = vor.u32 %v5236_v59, %v4838_v18  ;;  %v6852_v59 = vld [vmem:[#allocation23_spill] sm:$0xff] }
 0x335   : > { %v2786_v3 = vpop.f32.mrf.mxu2 }
 0x336   : > { %v6513_v4 = vadd.f32 %v2786_v3, %v2698_v15  ;;  %v4879_v3 = vor.u32 %v5247_v41, %v4878_v57  ;;  %v5239_v57 = vld [vmem:[#allocation2 + $0x118] sm:$0xf0]  ;;  %v6540_v41 = vpop.f32.mrf.mxu0 }
 0x337   : > { %v2699_v53 = vpop.f32.mrf.mxu1  ;;  %3368 = vmatmul.bf16.gmra.mxu3 %v4867_v34  ;;  %v3406_v34 = vadd.f32 %v6410_v2, %v6483_v56 }
 0x338   : > { %6850 = vst [vmem:[#allocation27_spill] sm:$0xff] %v6513_v4  ;;  %v6517_v54 = vadd.f32 %v2699_v53, %v2611_v51  ;;  %v6535_v53 = vld [vmem:[%s6804_s4] ss:$0 sm:$0xff] }
 0x33a   : > { %6851 = vst [vmem:[#allocation28_spill] sm:$0xff] %v6517_v54  ;;  %v6521_v21 = vpop.f32.mrf.mxu3  ;;  %v3409_v54 = vadd.f32 %v6421_v16, %v6491_v36 }
 0x33e   : > { %v6549_v4 = vpop.f32.mrf.mxu0 }
 0x33f   : > { %v3492_v7 = vpop.f32.mrf.mxu1 }
 0x340   : > { %v3493_v15 = vadd.f32 %v3492_v7, %v3404_v32 }
 0x342   : > { %3531 = vmatmul.bf16.gmra.mxu1 %v4839_v28  ;;  %v6527_v33 = vpop.f32.mrf.mxu3  ;;  %v3572_v51 = vadd.f32 %v3493_v15, %v6251_v52  ;;  %v4850_v28 = vld [vmem:[#allocation2 + $0x110] sm:$0xf] }
 0x344   : > { %v3608_v18 = vadd.f32 %v6535_v53, %v3572_v51  ;;  %v4890_v51 = vld [vmem:[#allocation2 + $0x168] sm:$0xf] }
 0x346   : > { %v3640_v2 = vmax.f32 %v3608_v18, 0.0 }
 0x347   : > { %v3494_v14 = vpop.f32.mrf.mxu1  ;;  %3373 = vmatmul.bf16.gmra.mxu3 %v4879_v3 }
 0x348   : > { %v3495_v44 = vadd.f32 %v3494_v14, %v3406_v34  ;;  %v4851_v34 = vor.u32 %v5239_v57, %v4850_v28  ;;  %v4862_v28 = vld [vmem:[#allocation2 + $0x128] sm:$0xf]  ;;  %v5242_v57 = vld [vmem:[#allocation2 + $0x130] sm:$0xf0] }
 0x34a   : > { %v3573_v7 = vadd.f32 %v3495_v44, %v6852_v59  ;;  %v6542_v56 = vpop.f32.mrf.mxu3  ;;  %v5250_v44 = vld [vmem:[#allocation2 + $0x170] sm:$0xf0] }
 0x34b   : > { %v4891_v59 = vor.u32 %v5250_v44, %v4890_v51  ;;  %v5253_v51 = vld [vmem:[#allocation2 + $0x188] sm:$0xf0]  ;;  %v3416_v44 = vadd.f32 %v6457_v39, %v6511_v38 }
 0x34c   : > { %v3609_v32 = vadd.f32 %v6535_v53, %v3573_v7  ;;  %v3411_v7 = vadd.f32 %v6433_v12, %v6497_v19  ;;  %v4863_v19 = vor.u32 %v5242_v57, %v4862_v28  ;;  %v5245_v28 = vld [vmem:[#allocation2 + $0x148] sm:$0xf0] }
 0x34e   : > { %v3641_v52 = vmax.f32 %v3609_v32, 0.0 }
 0x34f   : > { %v3497_v15 = vpop.f32.mrf.mxu1 }
 0x350   : > { %v3672_v3 = vpack.c.bf16 %v3641_v52, %v3640_v2  ;;  %v3498_v14 = vadd.f32 %v3497_v15, %v3409_v54 }
 0x352   : > { %3536 = vmatmul.bf16.gmra.mxu1 %v4851_v34  ;;  %3764 = vmatmul.bf16.vlgmr.msra.gmra.mxu2 %v3672_v3  ;;  %v3574_v18 = vadd.f32 %v3498_v14, %v6267_v60  ;;  %v6551_v30 = vpop.f32.mrf.mxu3  ;;  %v3414_v60 = vadd.f32 %v6446_v5, %v6505_v22  ;;  %v6558_v3 = vpop.f32.mrf.mxu0  ;;  %v4902_v14 = vld [vmem:[#allocation2 + $0x180] sm:$0xf] }
 0x354   : > { %v3610_v16 = vadd.f32 %v6535_v53, %v3574_v18 }
 0x356   : > { %v3642_v2 = vmax.f32 %v3610_v16, 0.0 }
 0x357   : > { %v3499_v32 = vpop.f32.mrf.mxu1  ;;  %3378 = vmatmul.bf16.gmra.mxu3 %v4891_v59 }
 0x358   : > { %v3500_v63 = vadd.f32 %v3499_v32, %v3411_v7 }
 0x35a   : > { %v3575_v36 = vadd.f32 %v3500_v63, %v6276_v25  ;;  %v6560_v25 = vpop.f32.mrf.mxu3  ;;  %v4903_v63 = vor.u32 %v5253_v51, %v4902_v14  ;;  %v6567_v32 = vpop.f32.mrf.mxu0 }
 0x35c   : > { %v3611_v54 = vadd.f32 %v6535_v53, %v3575_v36 }
 0x35e   : > { %v3643_v52 = vmax.f32 %v3611_v54, 0.0  ;;  %v4874_v54 = vld [vmem:[#allocation2 + $0x140] sm:$0xf] }
 0x35f   : > { %v3502_v12 = vpop.f32.mrf.mxu1  ;;  %v4875_v38 = vor.u32 %v5245_v28, %v4874_v54  ;;  %v4914_v28 = vld [vmem:[#allocation2 + $0x198] sm:$0xf] }
 0x360   : > { %v3673_v15 = vpack.c.bf16 %v3643_v52, %v3642_v2  ;;  %v3503_v34 = vadd.f32 %v3502_v12, %v3414_v60  ;;  %v3421_v60 = vadd.f32 %v6525_v55, %v6527_v33  ;;  %v3424_v55 = vadd.f32 %v6540_v41, %v6542_v56 }
 0x362   : > { %3541 = vmatmul.bf16.gmra.mxu1 %v4863_v19  ;;  %3769 = vmatmul.bf16.gmra.mxu2 %v3673_v15  ;;  %v3576_v59 = vadd.f32 %v3503_v34, %v6285_v8  ;;  %v6570_v36 = vpop.f32.mrf.mxu3  ;;  %v3419_v8 = vadd.f32 %v6519_v37, %v6521_v21 }
 0x364   : > { %v3612_v22 = vadd.f32 %v6535_v53, %v3576_v59 }
 0x366   : > { %v3644_v57 = vmax.f32 %v3612_v22, 0.0 }
 0x367   : > { %v3504_v7 = vpop.f32.mrf.mxu1  ;;  %3383 = vmatmul.bf16.gmra.mxu3 %v4903_v63  ;;  %v4886_v63 = vld [vmem:[#allocation2 + $0x158] sm:$0xf] }
 0x368   : > { %v3505_v5 = vadd.f32 %v3504_v7, %v3416_v44  ;;  %v5248_v44 = vld [vmem:[#allocation2 + $0x160] sm:$0xf0] }
 0x36a   : > { %v3577_v18 = vadd.f32 %v3505_v5, %v6294_v62  ;;  %v6574_v62 = vpop.f32.mrf.mxu0  ;;  %v6579_v15 = vpop.f32.mrf.mxu3 }
 0x36c   : > { %v3613_v16 = vadd.f32 %v6535_v53, %v3577_v18 }
 0x36e   : > { %v3645_v2 = vmax.f32 %v3613_v16, 0.0 }
 0x36f   : > { %v3507_v39 = vpop.f32.mrf.mxu1 }
 0x370   : > { %v3674_v52 = vpack.c.bf16 %v3645_v2, %v3644_v57  ;;  %v3508_v12 = vadd.f32 %v3507_v39, %v3419_v8  ;;  %v5256_v57 = vld [vmem:[#allocation2 + $0x1a0] sm:$0xf0]  ;;  %v2734_v8 = vadd.f32 %v6330_v40, %v6323_v1  ;;  %v3429_v1 = vadd.f32 %v6558_v3, %v6560_v25 }
 0x371   : > { %v4915_v39 = vor.u32 %v5256_v57, %v4914_v28 }
 0x372   : > { %3546 = vmatmul.bf16.gmra.mxu1 %v4875_v38  ;;  %3774 = vmatmul.bf16.gmra.mxu2 %v3674_v52  ;;  %v3578_v19 = vadd.f32 %v3508_v12, %v6303_v35  ;;  %v3435_v22 = vpop.f32.mrf.mxu0  ;;  %v4887_v35 = vor.u32 %v5248_v44, %v4886_v63  ;;  %v3346_v18 = vpop.f32.mrf.mxu3 }
 0x374   : > { %v3614_v51 = vadd.f32 %v6535_v53, %v3578_v19  ;;  %v4898_v19 = vld [vmem:[#allocation2 + $0x170] sm:$0xf] }
 0x376   : > { %v3646_v59 = vmax.f32 %v3614_v51, 0.0 }
 0x377   : > { %v3509_v34 = vpop.f32.mrf.mxu1  ;;  %3388 = vmatmul.bf16.gmra.mxu3 %v4915_v39 }
 0x378   : > { %v3510_v14 = vadd.f32 %v3509_v34, %v3421_v60  ;;  %v5255_v34 = vld [vmem:[#allocation2 + $0x19c] sm:$0xf] }
 0x37a   : > { %v3579_v37 = vadd.f32 %v3510_v14, %v6310_v43  ;;  %v3426_v43 = vadd.f32 %v6549_v4, %v6551_v30  ;;  %v3438_v41 = vpop.f32.mrf.mxu0  ;;  %v3349_v12 = vpop.f32.mrf.mxu3  ;;  %v5251_v30 = vld [vmem:[#allocation2 + $0x178] sm:$0xf0]  ;;  %v4916_v14 = vld [vmem:[#allocation2 + $0x1a4] sm:$0xf0] }
 0x37b   : > { %v4899_v40 = vor.u32 %v5251_v30, %v4898_v19 }
 0x37c   : > { %v3615_v21 = vadd.f32 %v6535_v53, %v3579_v37  ;;  %v4919_v37 = vor.u32 %v5255_v34, %v4916_v14  ;;  %v4922_v34 = vld [vmem:[#allocation2 + $0x1a0] sm:$0xf] }
 0x37e   : > { %v3647_v7 = vmax.f32 %v3615_v21, 0.0  ;;  %3477 = vmatmul.bf16.gmra.mxu0 %v4919_v37 }
 0x37f   : > { %v3512_v5 = vpop.f32.mrf.mxu1 }
 0x380   : > { %v3675_v33 = vpack.c.bf16 %v3647_v7, %v3646_v59  ;;  %v3513_v16 = vadd.f32 %v3512_v5, %v3424_v55  ;;  %v3431_v7 = vadd.f32 %v6567_v32, %v6570_v36 }
 0x382   : > { %3551 = vmatmul.bf16.gmra.mxu1 %v4887_v35  ;;  %3779 = vmatmul.bf16.gmra.mxu2 %v3675_v33  ;;  %v3580_v54 = vadd.f32 %v3513_v16, %v6319_v0  ;;  %v3440_v44 = vpop.f32.mrf.mxu0  ;;  %v3351_v59 = vpop.f32.mrf.mxu3  ;;  %v2739_v35 = vadd.f32 %v6348_v11, %v6343_v29  ;;  %v3436_v29 = vadd.f32 %v3435_v22, %v3346_v18 }
 0x383   : > { %v3439_v18 = vadd.f32 %v3438_v41, %v3349_v12 }
 0x384   : > { %v3616_v56 = vadd.f32 %v6535_v53, %v3580_v54  ;;  %v5254_v54 = vld [vmem:[#allocation2 + $0x190] sm:$0xf0] }
 0x386   : > { %v3648_v4 = vmax.f32 %v3616_v56, 0.0 }
 0x387   : > { %v3514_v2 = vpop.f32.mrf.mxu1 }
 0x388   : > { %v3515_v38 = vadd.f32 %v3514_v2, %v3426_v43  ;;  %v4910_v43 = vld [vmem:[#allocation2 + $0x188] sm:$0xf] }
 0x389   : > { %v4911_v32 = vor.u32 %v5254_v54, %v4910_v43 }
 0x38a   : > { %v3581_v52 = vadd.f32 %v3515_v38, %v2734_v8  ;;  %v3443_v28 = vpop.f32.mrf.mxu0  ;;  %v3354_v39 = vpop.f32.mrf.mxu3 }
 0x38b   : > { %v3444_v43 = vadd.f32 %v3443_v28, %v3354_v39  ;;  %v6619_v28 = vpop.f32.mrf.mxu2 }
 0x38c   : > { %v3617_v60 = vadd.f32 %v6535_v53, %v3581_v52  ;;  %v2744_v52 = vadd.f32 %v6368_v10, %v6363_v26  ;;  %v3441_v10 = vadd.f32 %v3440_v44, %v3351_v59 }
 0x38e   : > { %v3649_v0 = vmax.f32 %v3617_v60, 0.0 }
 0x38f   : > { %v3517_v51 = vpop.f32.mrf.mxu1 }
 0x390   : > { %v3676_v21 = vpack.c.bf16 %v3649_v0, %v3648_v4  ;;  %v3518_v63 = vadd.f32 %v3517_v51, %v3429_v1 }
 0x392   : > { %3556 = vmatmul.bf16.gmra.mxu1 %v4899_v40  ;;  %3784 = vmatmul.bf16.gmra.mxu2 %v3676_v21  ;;  %v3582_v5 = vadd.f32 %v3518_v63, %v6339_v20  ;;  %v3434_v20 = vadd.f32 %v6574_v62, %v6579_v15  ;;  %v3445_v60 = vpop.f32.mrf.mxu0  ;;  %v3356_v30 = vpop.f32.mrf.mxu3  ;;  %v5257_v62 = vld [vmem:[#allocation2 + $0x1a8] sm:$0xf0] }
 0x393   : > { %v4923_v37 = vor.u32 %v5257_v62, %v4922_v34  ;;  %v3446_v59 = vadd.f32 %v3445_v60, %v3356_v30  ;;  %v6853_v62 = vld [vmem:[#allocation24_spill] sm:$0xff] }
 0x394   : > { %v3618_v3 = vadd.f32 %v6535_v53, %v3582_v5 }
 0x396   : > { %v3650_v57 = vmax.f32 %v3618_v3, 0.0 }
 0x397   : > { %v3519_v55 = vpop.f32.mrf.mxu1 }
 0x398   : > { %v3520_v33 = vadd.f32 %v3519_v55, %v3431_v7  ;;  %v2749_v7 = vadd.f32 %v6388_v23, %v6381_v48 }
 0x39a   : > { %v3583_v25 = vadd.f32 %v3520_v33, %v2739_v35  ;;  %v3448_v1 = vpop.f32.mrf.mxu0  ;;  %v3359_v26 = vpop.f32.mrf.mxu3 }
 0x39c   : > { %v3619_v16 = vadd.f32 %v6535_v53, %v3583_v25 }
 0x39e   : > { %v3651_v2 = vmax.f32 %v3619_v16, 0.0 }
 0x39f   : > { %v3522_v8 = vpop.f32.mrf.mxu1 }
 0x3a0   : > { %v3677_v36 = vpack.c.bf16 %v3651_v2, %v3650_v57  ;;  %v3523_v38 = vadd.f32 %v3522_v8, %v3434_v20  ;;  %v2754_v2 = vadd.f32 %v6406_v31, %v6401_v42  ;;  %v6624_v42 = vld [vmem:[%s6806_s6] ss:$0 sm:$0xff] }
 0x3a2   : > { %3561 = vmatmul.bf16.gmra.mxu1 %v4911_v32  ;;  %3789 = vmatmul.bf16.gmra.mxu2 %v3677_v36  ;;  %v3584_v11 = vadd.f32 %v3523_v38, %v6357_v46  ;;  %v3450_v33 = vpop.f32.mrf.mxu0  ;;  %v3361_v12 = vpop.f32.mrf.mxu3 }
 0x3a3   : > { %v3451_v30 = vadd.f32 %v3450_v33, %v3361_v12 }
 0x3a4   : > { %v3620_v4 = vadd.f32 %v6535_v53, %v3584_v11 }
 0x3a6   : > { %v3652_v14 = vmax.f32 %v3620_v4, 0.0 }
 0x3a7   : > { %v3524_v56 = vpop.f32.mrf.mxu1 }
 0x3a8   : > { %v3525_v19 = vadd.f32 %v3524_v56, %v3436_v29  ;;  %v3449_v56 = vadd.f32 %v3448_v1, %v3359_v26  ;;  %v3846_v26 = vld [vmem:[%s5802_s13 + $0x8] sm:$0xff] }
 0x3aa   : > { %v3585_v0 = vadd.f32 %v3525_v19, %v2744_v52  ;;  %v3364_v48 = vpop.f32.mrf.mxu3  ;;  %v3845_v19 = vld [vmem:[%s5802_s13] sm:$0xff] }
 0x3ac   : > { %v3621_v15 = vadd.f32 %v6535_v53, %v3585_v0 }
 0x3ae   : > { %v3653_v51 = vmax.f32 %v3621_v15, 0.0  ;;  %v2759_v15 = vadd.f32 %v6853_v62, %v6419_v24 }
 0x3af   : > { %v3527_v22 = vpop.f32.mrf.mxu1 }
 0x3b0   : > { %v3678_v46 = vpack.c.bf16 %v3653_v51, %v3652_v14  ;;  %v3528_v40 = vadd.f32 %v3527_v22, %v3439_v18 }
 0x3b2   : > { %3566 = vmatmul.bf16.gmra.mxu1 %v4923_v37  ;;  %3794 = vmatmul.bf16.gmra.mxu2 %v3678_v46  ;;  %v3586_v21 = vadd.f32 %v3528_v40, %v6377_v49  ;;  %v3453_v49 = vpop.f32.mrf.mxu0  ;;  %v3366_v52 = vpop.f32.mrf.mxu3 }
 0x3b4   : > { %v3622_v55 = vadd.f32 %v6535_v53, %v3586_v21 }
 0x3b6   : > { %v3654_v3 = vmax.f32 %v3622_v55, 0.0 }
 0x3b7   : > { %v3529_v63 = vpop.f32.mrf.mxu1 }
 0x3b8   : > { %v3530_v5 = vadd.f32 %v3529_v63, %v3441_v10 }
 0x3ba   : > { %v3587_v35 = vadd.f32 %v3530_v5, %v2749_v7  ;;  %v3455_v11 = vpop.f32.mrf.mxu0  ;;  %v3369_v1 = vpop.f32.mrf.mxu3  ;;  %v3454_v7 = vadd.f32 %v3453_v49, %v3364_v48  ;;  %v6855_v49 = vld [vmem:[#allocation19_spill] sm:$0xff] }
 0x3bc   : > { %v3623_v41 = vadd.f32 %v6535_v53, %v3587_v35 }
 0x3be   : > { %v3655_v25 = vmax.f32 %v3623_v41, 0.0 }
 0x3bf   : > { %v3532_v16 = vpop.f32.mrf.mxu1 }
 0x3c0   : > { %v3679_v54 = vpack.c.bf16 %v3655_v25, %v3654_v3  ;;  %v3533_v44 = vadd.f32 %v3532_v16, %v3444_v43  ;;  %v3847_v25 = vld [vmem:[%s5802_s13 + $0x10] sm:$0xff]  ;;  %v3456_v16 = vadd.f32 %v3455_v11, %v3366_v52 }
 0x3c2   : > { %3799 = vmatmul.bf16.gmra.mxu2 %v3679_v54  ;;  %v3588_v57 = vadd.f32 %v3533_v44, %v6397_v50  ;;  %v3458_v37 = vpop.f32.mrf.mxu0  ;;  %v3371_v12 = vpop.f32.mrf.mxu3 }
 0x3c3   : > { %v3459_v52 = vadd.f32 %v3458_v37, %v3369_v1 }
 0x3c4   : > { %v3624_v20 = vadd.f32 %v6535_v53, %v3588_v57 }
 0x3c6   : > { %v3656_v39 = vmax.f32 %v3624_v20, 0.0 }
 0x3c7   : > { %v3534_v23 = vpop.f32.mrf.mxu1 }
 0x3c8   : > { %v3535_v8 = vadd.f32 %v3534_v23, %v3446_v59  ;;  %v6854_v59 = vld [vmem:[#allocation18_spill] sm:$0xff] }
 0x3c9   : > { %v2764_v57 = vadd.f32 %v6855_v49, %v6854_v59  ;;  %v2774_v49 = vadd.f32 %v6479_v61, %v6475_v17 }
 0x3ca   : > { %v3589_v32 = vadd.f32 %v3535_v8, %v2754_v2  ;;  %v3460_v41 = vpop.f32.mrf.mxu0 }
 0x3cc   : > { %v3625_v36 = vadd.f32 %v6535_v53, %v3589_v32 }
 0x3ce   : > { %v3657_v38 = vmax.f32 %v3625_v36, 0.0 }
 0x3cf   : > { %v3537_v29 = vpop.f32.mrf.mxu1 }
 0x3d0   : > { %v3680_v50 = vpack.c.bf16 %v3657_v38, %v3656_v39  ;;  %v3538_v60 = vadd.f32 %v3537_v29, %v3449_v56  ;;  %v3848_v39 = vld [vmem:[%s5802_s13 + $0x18] sm:$0xff]  ;;  %v3374_v56 = vpop.f32.mrf.mxu3 }
 0x3d2   : > { %3804 = vmatmul.bf16.gmra.mxu2 %v3680_v50  ;;  %v3590_v4 = vadd.f32 %v3538_v60, %v6415_v13 }
 0x3d4   : > { %v3626_v22 = vadd.f32 %v6535_v53, %v3590_v4 }
 0x3d5   : > { %v3765_v31 = vpop.f32.mrf.mxu2 }
 0x3d6   : > { %v3766_v0 = vadd.f32 %v6624_v42, %v3765_v31  ;;  %v3658_v24 = vmax.f32 %v3626_v22, 0.0 }
 0x3d7   : > { %v3539_v34 = vpop.f32.mrf.mxu1 }
 0x3d8   : > { %v3877_v14 = vadd.f32 %v3845_v19, %v3766_v0  ;;  %v3540_v51 = vadd.f32 %v3539_v34, %v3451_v30  ;;  %v3849_v0 = vld [vmem:[%s5802_s13 + $0x20] sm:$0xff]  ;;  %v3461_v34 = vadd.f32 %v3460_v41, %v3371_v12  ;;  %v3376_v1 = vpop.f32.mrf.mxu3 }
 0x3da   : > { %v3909_v18 = vmax.f32 %v3877_v14, 0.0  ;;  %v3591_v46 = vadd.f32 %v3540_v51, %v2759_v15  ;;  %v6856_v51 = vld [vmem:[#allocation20_spill] sm:$0xff] }
 0x3db   : > { %v2769_v22 = vadd.f32 %v6856_v51, %v6459_v58 }
 0x3dc   : > { %3941 = vst [vmem:[%s6634_s1] sm:$0xff] %v3909_v18  ;;  %v3627_v13 = vadd.f32 %v6535_v53, %v3591_v46 }
 0x3dd   : > { %v3767_v40 = vpop.f32.mrf.mxu2 }
 0x3de   : > { %v3659_v10 = vmax.f32 %v3627_v13, 0.0  ;;  %v3768_v21 = vadd.f32 %v6624_v42, %v3767_v40 }
 0x3df   : > { %v3542_v63 = vpop.f32.mrf.mxu1 }
 0x3e0   : > { %v3878_v5 = vadd.f32 %v3846_v26, %v3768_v21  ;;  %v3681_v55 = vpack.c.bf16 %v3659_v10, %v3658_v24  ;;  %v3543_v33 = vadd.f32 %v3542_v63, %v3454_v7 }
 0x3e2   : > { %v3910_v35 = vmax.f32 %v3878_v5, 0.0  ;;  %3809 = vmatmul.bf16.gmra.mxu2 %v3681_v55  ;;  %v3592_v43 = vadd.f32 %v3543_v33, %v6435_v6  ;;  %v3463_v6 = vpop.f32.mrf.mxu0 }
 0x3e3   : > { %v3464_v5 = vadd.f32 %v3463_v6, %v3374_v56 }
 0x3e4   : > { %3942 = vst [vmem:[%s6634_s1 + $0x8] sm:$0xff] %v3910_v35  ;;  %v3628_v2 = vadd.f32 %v6535_v53, %v3592_v43 }
 0x3e5   : > { %v3770_v3 = vpop.f32.mrf.mxu2 }
 0x3e6   : > { %v3771_v54 = vadd.f32 %v6624_v42, %v3770_v3  ;;  %v3660_v38 = vmax.f32 %v3628_v2, 0.0  ;;  %v3379_v3 = vpop.f32.mrf.mxu3 }
 0x3e7   : > { %v3544_v44 = vpop.f32.mrf.mxu1 }
 0x3e8   : > { %v3879_v48 = vadd.f32 %v3847_v25, %v3771_v54  ;;  %v3545_v23 = vadd.f32 %v3544_v44, %v3456_v16  ;;  %v3851_v16 = vld [vmem:[%s5802_s13 + $0x30] sm:$0xff] }
 0x3ea   : > { %v3911_v8 = vmax.f32 %v3879_v48, 0.0  ;;  %v3593_v20 = vadd.f32 %v3545_v23, %v2764_v57  ;;  %v3465_v37 = vpop.f32.mrf.mxu0 }
 0x3eb   : > { %v3466_v43 = vadd.f32 %v3465_v37, %v3376_v1 }
 0x3ec   : > { %3943 = vst [vmem:[%s6634_s1 + $0x10] sm:$0xff] %v3911_v8  ;;  %v3629_v32 = vadd.f32 %v6535_v53, %v3593_v20 }
 0x3ed   : > { %v3772_v36 = vpop.f32.mrf.mxu2 }
 0x3ee   : > { %v3661_v29 = vmax.f32 %v3629_v32, 0.0  ;;  %v3773_v11 = vadd.f32 %v6624_v42, %v3772_v36  ;;  %v3381_v36 = vpop.f32.mrf.mxu3 }
 0x3ef   : > { %v3547_v50 = vpop.f32.mrf.mxu1 }
 0x3f0   : > { %v3880_v60 = vadd.f32 %v3848_v39, %v3773_v11  ;;  %v3682_v31 = vpack.c.bf16 %v3661_v29, %v3660_v38  ;;  %v3548_v30 = vadd.f32 %v3547_v50, %v3459_v52  ;;  %v3852_v39 = vld [vmem:[%s5802_s13 + $0x38] sm:$0xff] }
 0x3f2   : > { %v3912_v19 = vmax.f32 %v3880_v60, 0.0  ;;  %3814 = vmatmul.bf16.gmra.mxu2 %v3682_v31  ;;  %v3594_v62 = vadd.f32 %v3548_v30, %v6453_v47  ;;  %v3850_v47 = vld [vmem:[%s5802_s13 + $0x28] sm:$0xff]  ;;  %v3468_v33 = vpop.f32.mrf.mxu0  ;;  %v3853_v31 = vld [vmem:[%s5802_s13 + $0x40] sm:$0xff] }
 0x3f3   : > { %v3469_v61 = vadd.f32 %v3468_v33, %v3379_v3 }
 0x3f4   : > { %3944 = vst [vmem:[%s6634_s1 + $0x18] sm:$0xff] %v3912_v19  ;;  %v3630_v13 = vadd.f32 %v6535_v53, %v3594_v62 }
 0x3f5   : > { %v3775_v4 = vpop.f32.mrf.mxu2 }
 0x3f6   : > { %v3776_v15 = vadd.f32 %v6624_v42, %v3775_v4  ;;  %v3662_v21 = vmax.f32 %v3630_v13, 0.0 }
 0x3f7   : > { %v3549_v14 = vpop.f32.mrf.mxu1 }
 0x3f8   : > { %v3881_v18 = vadd.f32 %v3849_v0, %v3776_v15  ;;  %v3550_v46 = vadd.f32 %v3549_v14, %v3461_v34  ;;  %v3384_v34 = vpop.f32.mrf.mxu3  ;;  %v6857_v15 = vld [vmem:[#allocation21_spill] sm:$0xff] }
 0x3f9   : > { %v2779_v14 = vadd.f32 %v6857_v15, %v6489_v27 }
 0x3fa   : > { %v3913_v40 = vmax.f32 %v3881_v18, 0.0  ;;  %v3595_v26 = vadd.f32 %v3550_v46, %v2769_v22  ;;  %v3470_v20 = vpop.f32.mrf.mxu0 }
 0x3fb   : > { %v3471_v30 = vadd.f32 %v3470_v20, %v3381_v36 }
 0x3fc   : > { %3945 = vst [vmem:[%s6634_s1 + $0x20] sm:$0xff] %v3913_v40  ;;  %v3631_v24 = vadd.f32 %v6535_v53, %v3595_v26 }
 0x3fd   : > { %v3777_v10 = vpop.f32.mrf.mxu2 }
 0x3fe   : > { %v3663_v63 = vmax.f32 %v3631_v24, 0.0  ;;  %v3778_v7 = vadd.f32 %v6624_v42, %v3777_v10 }
 0x3ff   : > { %v3552_v58 = vpop.f32.mrf.mxu1 }
 0x400   : > { %v3882_v55 = vadd.f32 %v3850_v47, %v3778_v7  ;;  %v3683_v35 = vpack.c.bf16 %v3663_v63, %v3662_v21  ;;  %v3553_v12 = vadd.f32 %v3552_v58, %v3464_v5  ;;  %v3386_v7 = vpop.f32.mrf.mxu3 }
 0x402   : > { %v3914_v41 = vmax.f32 %v3882_v55, 0.0  ;;  %3819 = vmatmul.bf16.gmra.mxu2 %v3683_v35  ;;  %v3596_v54 = vadd.f32 %v3553_v12, %v6471_v9  ;;  %v3473_v19 = vpop.f32.mrf.mxu0  ;;  %v3855_v35 = vld [vmem:[%s5802_s13 + $0x50] sm:$0xff] }
 0x403   : > { %v3474_v47 = vadd.f32 %v3473_v19, %v3384_v34  ;;  %v6861_v19 = vld [vmem:[#allocation27_spill] sm:$0xff]  ;;  %v6862_v34 = vld [vmem:[#allocation28_spill] sm:$0xff] }
 0x404   : > { %3946 = vst [vmem:[%s6634_s1 + $0x28] sm:$0xff] %v3914_v41  ;;  %v3632_v23 = vadd.f32 %v6535_v53, %v3596_v54  ;;  %v6858_v41 = vld [vmem:[#allocation22_spill] sm:$0xff] }
 0x405   : > { %v3780_v25 = vpop.f32.mrf.mxu2 }
 0x406   : > { %v3781_v44 = vadd.f32 %v6624_v42, %v3780_v25  ;;  %v3664_v6 = vmax.f32 %v3632_v23, 0.0 }
 0x407   : > { %v3554_v59 = vpop.f32.mrf.mxu1 }
 0x408   : > { %v3883_v57 = vadd.f32 %v3851_v16, %v3781_v44  ;;  %v3555_v48 = vadd.f32 %v3554_v59, %v3466_v43  ;;  %v6859_v16 = vld [vmem:[#allocation25_spill] sm:$0xff]  ;;  %v6860_v43 = vld [vmem:[#allocation26_spill] sm:$0xff] }
 0x409   : > { %v2784_v54 = vadd.f32 %v6860_v43, %v6859_v16  ;;  %v3862_v16 = vld [vmem:[%s5802_s13 + $0x88] sm:$0xff] }
 0x40a   : > { %v3915_v2 = vmax.f32 %v3883_v57, 0.0  ;;  %v3597_v8 = vadd.f32 %v3555_v48, %v2774_v49  ;;  %v3475_v63 = vpop.f32.mrf.mxu0  ;;  %v3389_v49 = vpop.f32.mrf.mxu3 }
 0x40b   : > { %v3476_v33 = vadd.f32 %v3475_v63, %v3386_v7  ;;  %v3860_v7 = vld [vmem:[%s5802_s13 + $0x78] sm:$0xff] }
 0x40c   : > { %3947 = vst [vmem:[%s6634_s1 + $0x30] sm:$0xff] %v3915_v2  ;;  %v3633_v32 = vadd.f32 %v6535_v53, %v3597_v8 }
 0x40d   : > { %v3782_v9 = vpop.f32.mrf.mxu2 }
 0x40e   : > { %v3665_v38 = vmax.f32 %v3633_v32, 0.0  ;;  %v3783_v29 = vadd.f32 %v6624_v42, %v3782_v9  ;;  %v3856_v32 = vld [vmem:[%s5802_s13 + $0x58] sm:$0xff] }
 0x40f   : > { %v3557_v17 = vpop.f32.mrf.mxu1 }
 0x410   : > { %v3884_v11 = vadd.f32 %v3852_v39, %v3783_v29  ;;  %v3684_v56 = vpack.c.bf16 %v3665_v38, %v3664_v6  ;;  %v3558_v52 = vadd.f32 %v3557_v17, %v3469_v61 }
 0x412   : > { %v3916_v50 = vmax.f32 %v3884_v11, 0.0  ;;  %3824 = vmatmul.bf16.gmra.mxu2 %v3684_v56  ;;  %v3598_v4 = vadd.f32 %v3558_v52, %v6485_v45  ;;  %v3854_v45 = vld [vmem:[%s5802_s13 + $0x48] sm:$0xff]  ;;  %v3478_v57 = vpop.f32.mrf.mxu0  ;;  %v3391_v56 = vpop.f32.mrf.mxu3 }
 0x413   : > { %v3479_v9 = vadd.f32 %v3478_v57, %v3389_v49  ;;  %v3863_v49 = vld [vmem:[%s5802_s13 + $0x90] sm:$0xff] }
 0x414   : > { %3948 = vst [vmem:[%s6634_s1 + $0x38] sm:$0xff] %v3916_v50  ;;  %v3634_v37 = vadd.f32 %v6535_v53, %v3598_v4 }
 0x415   : > { %v3785_v60 = vpop.f32.mrf.mxu2 }
 0x416   : > { %v3786_v0 = vadd.f32 %v6624_v42, %v3785_v60  ;;  %v3666_v40 = vmax.f32 %v3634_v37, 0.0  ;;  %v3857_v60 = vld [vmem:[%s5802_s13 + $0x60] sm:$0xff] }
 0x417   : > { %v3559_v62 = vpop.f32.mrf.mxu1 }
 0x418   : > { %v3885_v51 = vadd.f32 %v3853_v31, %v3786_v0  ;;  %v3560_v22 = vadd.f32 %v3559_v62, %v3471_v30  ;;  %v2789_v62 = vadd.f32 %v6619_v28, %v6862_v34 }
 0x41a   : > { %v3917_v18 = vmax.f32 %v3885_v51, 0.0  ;;  %v3599_v46 = vadd.f32 %v3560_v22, %v2779_v14  ;;  %v3480_v50 = vpop.f32.mrf.mxu0 }
 0x41b   : > { %v3481_v31 = vadd.f32 %v3480_v50, %v3391_v56 }
 0x41c   : > { %3949 = vst [vmem:[%s6634_s1 + $0x40] sm:$0xff] %v3917_v18  ;;  %v3635_v1 = vadd.f32 %v6535_v53, %v3599_v46 }
 0x41d   : > { %v3787_v13 = vpop.f32.mrf.mxu2 }
 0x41e   : > { %v3667_v26 = vmax.f32 %v3635_v1, 0.0  ;;  %v3788_v24 = vadd.f32 %v6624_v42, %v3787_v13  ;;  %v3858_v1 = vld [vmem:[%s5802_s13 + $0x68] sm:$0xff] }
 0x41f   : > { %v3562_v10 = vpop.f32.mrf.mxu1 }
 0x420   : > { %v3886_v27 = vadd.f32 %v3854_v45, %v3788_v24  ;;  %v3685_v21 = vpack.c.bf16 %v3667_v26, %v3666_v40  ;;  %v3563_v5 = vadd.f32 %v3562_v10, %v3474_v47  ;;  %v3859_v47 = vld [vmem:[%s5802_s13 + $0x70] sm:$0xff] }
 0x422   : > { %v3918_v58 = vmax.f32 %v3886_v27, 0.0  ;;  %3829 = vmatmul.bf16.gmra.mxu2 %v3685_v21  ;;  %v3600_v12 = vadd.f32 %v3563_v5, %v6858_v41 }
 0x424   : > { %3950 = vst [vmem:[%s6634_s1 + $0x48] sm:$0xff] %v3918_v58  ;;  %v3636_v48 = vadd.f32 %v6535_v53, %v3600_v12 }
 0x425   : > { %v3790_v55 = vpop.f32.mrf.mxu2 }
 0x426   : > { %v3791_v3 = vadd.f32 %v6624_v42, %v3790_v55  ;;  %v3668_v36 = vmax.f32 %v3636_v48, 0.0 }
 0x427   : > { %v3564_v25 = vpop.f32.mrf.mxu1 }
 0x428   : > { %v3887_v44 = vadd.f32 %v3855_v35, %v3791_v3  ;;  %v3565_v59 = vadd.f32 %v3564_v25, %v3476_v33  ;;  %v3861_v33 = vld [vmem:[%s5802_s13 + $0x80] sm:$0xff] }
 0x42a   : > { %v3919_v23 = vmax.f32 %v3887_v44, 0.0  ;;  %v3601_v2 = vadd.f32 %v3565_v59, %v2784_v54 }
 0x42c   : > { %3951 = vst [vmem:[%s6634_s1 + $0x50] sm:$0xff] %v3919_v23  ;;  %v3637_v8 = vadd.f32 %v6535_v53, %v3601_v2 }
 0x42d   : > { %v3792_v20 = vpop.f32.mrf.mxu2 }
 0x42e   : > { %v3669_v39 = vmax.f32 %v3637_v8, 0.0  ;;  %v3793_v6 = vadd.f32 %v6624_v42, %v3792_v20  ;;  %v3864_v8 = vld [vmem:[%s5802_s13 + $0x98] sm:$0xff] }
 0x42f   : > { %v3567_v38 = vpop.f32.mrf.mxu1 }
 0x430   : > { %v3888_v29 = vadd.f32 %v3856_v32, %v3793_v6  ;;  %v3686_v17 = vpack.c.bf16 %v3669_v39, %v3668_v36  ;;  %v3568_v11 = vadd.f32 %v3567_v38, %v3479_v9  ;;  %v3865_v39 = vld [vmem:[%s5802_s13 + $0xa0] sm:$0xff] }
 0x432   : > { %v3920_v61 = vmax.f32 %v3888_v29, 0.0  ;;  %3834 = vmatmul.bf16.gmra.mxu2 %v3686_v17  ;;  %v3602_v30 = vadd.f32 %v3568_v11, %v6861_v19 }
 0x434   : > { %3952 = vst [vmem:[%s6634_s1 + $0x58] sm:$0xff] %v3920_v61  ;;  %v3638_v51 = vadd.f32 %v6535_v53, %v3602_v30  ;;  %v3866_v61 = vld [vmem:[%s5802_s13 + $0xa8] sm:$0xff] }
 0x435   : > { %v3795_v52 = vpop.f32.mrf.mxu2 }
 0x436   : > { %v3796_v4 = vadd.f32 %v6624_v42, %v3795_v52  ;;  %v3670_v13 = vmax.f32 %v3638_v51, 0.0  ;;  %v3869_v51 = vld [vmem:[%s5802_s13 + $0xc0] sm:$0xff] }
 0x437   : > { %v3569_v0 = vpop.f32.mrf.mxu1 }
 0x438   : > { %v3889_v15 = vadd.f32 %v3857_v60, %v3796_v4  ;;  %v3570_v14 = vadd.f32 %v3569_v0, %v3481_v31  ;;  %v3867_v60 = vld [vmem:[%s5802_s13 + $0xb0] sm:$0xff]  ;;  %v3868_v0 = vld [vmem:[%s5802_s13 + $0xb8] sm:$0xff] }
 0x43a   : > { %v3921_v22 = vmax.f32 %v3889_v15, 0.0  ;;  %v3603_v37 = vadd.f32 %v3570_v14, %v2789_v62 }
 0x43c   : > { %3953 = vst [vmem:[%s6634_s1 + $0x60] sm:$0xff] %v3921_v22  ;;  %v3639_v18 = vadd.f32 %v6535_v53, %v3603_v37 }
 0x43d   : > { %v3797_v46 = vpop.f32.mrf.mxu2 }
 0x43e   : > { %v3671_v45 = vmax.f32 %v3639_v18, 0.0  ;;  %v3798_v40 = vadd.f32 %v6624_v42, %v3797_v46 }
 0x440   : > { %v3890_v28 = vadd.f32 %v3858_v1, %v3798_v40  ;;  %v3687_v26 = vpack.c.bf16 %v3671_v45, %v3670_v13  ;;  %v3870_v1 = vld [vmem:[%s5802_s13 + $0xc8] sm:$0xff] }
 0x442   : > { %v3922_v24 = vmax.f32 %v3890_v28, 0.0  ;;  %3839 = vmatmul.bf16.gmra.mxu2 %v3687_v26  ;;  %v3871_v26 = vld [vmem:[%s5802_s13 + $0xd0] sm:$0xff] }
 0x444   : > { %3954 = vst [vmem:[%s6634_s1 + $0x68] sm:$0xff] %v3922_v24 }
 0x445   : > { %v3800_v10 = vpop.f32.mrf.mxu2 }
 0x446   : > { %v3801_v53 = vadd.f32 %v6624_v42, %v3800_v10 }
 0x448   : > { %v3891_v27 = vadd.f32 %v3859_v47, %v3801_v53 }
 0x44a   : > { %v3923_v21 = vmax.f32 %v3891_v27, 0.0  ;;  %v3872_v27 = vld [vmem:[%s5802_s13 + $0xd8] sm:$0xff] }
 0x44c   : > { %3955 = vst [vmem:[%s6634_s1 + $0x70] sm:$0xff] %v3923_v21 }
 0x44d   : > { %v3802_v63 = vpop.f32.mrf.mxu2 }
 0x44e   : > { %v3803_v58 = vadd.f32 %v6624_v42, %v3802_v63 }
 0x450   : > { %v3892_v5 = vadd.f32 %v3860_v7, %v3803_v58 }
 0x452   : > { %v3924_v55 = vmax.f32 %v3892_v5, 0.0  ;;  %v3873_v5 = vld [vmem:[%s5802_s13 + $0xe0] sm:$0xff] }
 0x454   : > { %3956 = vst [vmem:[%s6634_s1 + $0x78] sm:$0xff] %v3924_v55 }
 0x455   : > { %v3805_v35 = vpop.f32.mrf.mxu2 }
 0x456   : > { %v3806_v41 = vadd.f32 %v6624_v42, %v3805_v35 }
 0x458   : > { %v3893_v12 = vadd.f32 %v3861_v33, %v3806_v41 }
 0x45a   : > { %v3925_v3 = vmax.f32 %v3893_v12, 0.0  ;;  %v3874_v12 = vld [vmem:[%s5802_s13 + $0xe8] sm:$0xff] }
 0x45c   : > { %3957 = vst [vmem:[%s6634_s1 + $0x80] sm:$0xff] %v3925_v3 }
 0x45d   : > { %v3807_v25 = vpop.f32.mrf.mxu2 }
 0x45e   : > { %v3808_v43 = vadd.f32 %v6624_v42, %v3807_v25 }
 0x460   : > { %v3894_v54 = vadd.f32 %v3862_v16, %v3808_v43 }
 0x462   : > { %v3926_v44 = vmax.f32 %v3894_v54, 0.0  ;;  %v3875_v54 = vld [vmem:[%s5802_s13 + $0xf0] sm:$0xff] }
 0x464   : > { %3958 = vst [vmem:[%s6634_s1 + $0x88] sm:$0xff] %v3926_v44 }
 0x465   : > { %v3810_v59 = vpop.f32.mrf.mxu2 }
 0x466   : > { %v3811_v57 = vadd.f32 %v6624_v42, %v3810_v59 }
 0x468   : > { %v3895_v48 = vadd.f32 %v3863_v49, %v3811_v57 }
 0x46a   : > { %v3927_v23 = vmax.f32 %v3895_v48, 0.0  ;;  %v3876_v48 = vld [vmem:[%s5802_s13 + $0xf8] sm:$0xff]  ;;  %s5559_s13 = scalar_lea.hbm %s6807_s7, 512 }
 0x46b   : > { %p5561_p12 = scmp.lt.s32.totalorder %s5559_s13, %s5555_s3 }
 0x46c   : > { %3959 = vst [vmem:[%s6634_s1 + $0x90] sm:$0xff] %v3927_v23 }
 0x46d   : > { %v3812_v2 = vpop.f32.mrf.mxu2  ;;  %p5562_p13 = por %p5561_p12, %p5560_p10 }
 0x46e   : > { %v3813_v20 = vadd.f32 %v6624_v42, %v3812_v2 }
 0x46f   : > { %p5563_p0 = pnand %p5562_p13, %p5558_p8 }
 0x470   : > { %v3896_v32 = vadd.f32 %v3864_v8, %v3813_v20 }
 0x472   : > { %v3928_v36 = vmax.f32 %v3896_v32, 0.0 }
 0x474   : > { %3960 = vst [vmem:[%s6634_s1 + $0x98] sm:$0xff] %v3928_v36 }
 0x475   : > { %v3815_v9 = vpop.f32.mrf.mxu2 }
 0x476   : > { %v3816_v6 = vadd.f32 %v6624_v42, %v3815_v9 }
 0x478   : > { %v3897_v38 = vadd.f32 %v3865_v39, %v3816_v6 }
 0x47a   : > { %v3929_v29 = vmax.f32 %v3897_v38, 0.0 }
 0x47c   : > { %3961 = vst [vmem:[%s6634_s1 + $0xa0] sm:$0xff] %v3929_v29 }
 0x47d   : > { %v3817_v17 = vpop.f32.mrf.mxu2 }
 0x47e   : > { %v3818_v11 = vadd.f32 %v6624_v42, %v3817_v17 }
 0x480   : > { %v3898_v56 = vadd.f32 %v3866_v61, %v3818_v11 }
 0x482   : > { %v3930_v50 = vmax.f32 %v3898_v56, 0.0 }
 0x484   : > { %3962 = vst [vmem:[%s6634_s1 + $0xa8] sm:$0xff] %v3930_v50 }
 0x485   : > { %v3820_v52 = vpop.f32.mrf.mxu2 }
 0x486   : > { %v3821_v31 = vadd.f32 %v6624_v42, %v3820_v52 }
 0x488   : > { %v3899_v19 = vadd.f32 %v3867_v60, %v3821_v31 }
 0x48a   : > { %v3931_v30 = vmax.f32 %v3899_v19, 0.0 }
 0x48c   : > { %3963 = vst [vmem:[%s6634_s1 + $0xb0] sm:$0xff] %v3931_v30 }
 0x48d   : > { %v3822_v4 = vpop.f32.mrf.mxu2 }
 0x48e   : > { %v3823_v34 = vadd.f32 %v6624_v42, %v3822_v4 }
 0x490   : > { %v3900_v62 = vadd.f32 %v3868_v0, %v3823_v34 }
 0x492   : > { %v3932_v15 = vmax.f32 %v3900_v62, 0.0 }
 0x494   : > { %3964 = vst [vmem:[%s6634_s1 + $0xb8] sm:$0xff] %v3932_v15 }
 0x495   : > { %v3825_v14 = vpop.f32.mrf.mxu2 }
 0x496   : > { %v3826_v22 = vadd.f32 %v6624_v42, %v3825_v14 }
 0x498   : > { %v3901_v37 = vadd.f32 %v3869_v51, %v3826_v22 }
 0x49a   : > { %v3933_v18 = vmax.f32 %v3901_v37, 0.0 }
 0x49c   : > { %3965 = vst [vmem:[%s6634_s1 + $0xc0] sm:$0xff] %v3933_v18 }
 0x49d   : > { %v3827_v46 = vpop.f32.mrf.mxu2 }
 0x49e   : > { %v3828_v13 = vadd.f32 %v6624_v42, %v3827_v46 }
 0x4a0   : > { %v3902_v45 = vadd.f32 %v3870_v1, %v3828_v13 }
 0x4a2   : > { %v3934_v40 = vmax.f32 %v3902_v45, 0.0 }
 0x4a4   : > { %3966 = vst [vmem:[%s6634_s1 + $0xc8] sm:$0xff] %v3934_v40 }
 0x4a5   : > { %v3830_v28 = vpop.f32.mrf.mxu2 }
 0x4a6   : > { %v3831_v24 = vadd.f32 %v6624_v42, %v3830_v28 }
 0x4a8   : > { %v3903_v10 = vadd.f32 %v3871_v26, %v3831_v24 }
 0x4aa   : > { %v3935_v47 = vmax.f32 %v3903_v10, 0.0 }
 0x4ac   : > { %3967 = vst [vmem:[%s6634_s1 + $0xd0] sm:$0xff] %v3935_v47 }
 0x4ad   : > { %v3832_v53 = vpop.f32.mrf.mxu2 }
 0x4ae   : > { %v3833_v21 = vadd.f32 %v6624_v42, %v3832_v53 }
 0x4b0   : > { %v3904_v63 = vadd.f32 %v3872_v27, %v3833_v21 }
 0x4b2   : > { %v3936_v7 = vmax.f32 %v3904_v63, 0.0 }
 0x4b4   : > { %3968 = vst [vmem:[%s6634_s1 + $0xd8] sm:$0xff] %v3936_v7 }
 0x4b5   : > { %v3835_v58 = vpop.f32.mrf.mxu2 }
 0x4b6   : > { %v3836_v55 = vadd.f32 %v6624_v42, %v3835_v58 }
 0x4b8   : > { %v3905_v35 = vadd.f32 %v3873_v5, %v3836_v55 }
 0x4ba   : > { %v3937_v33 = vmax.f32 %v3905_v35, 0.0 }
 0x4bc   : > { %3969 = vst [vmem:[%s6634_s1 + $0xe0] sm:$0xff] %v3937_v33 }
 0x4bd   : > { %v3837_v41 = vpop.f32.mrf.mxu2 }
 0x4be   : > { %v3838_v3 = vadd.f32 %v6624_v42, %v3837_v41 }
 0x4c0   : > { %v3906_v25 = vadd.f32 %v3874_v12, %v3838_v3 }
 0x4c2   : > { %v3938_v16 = vmax.f32 %v3906_v25, 0.0 }
 0x4c4   : > { %3970 = vst [vmem:[%s6634_s1 + $0xe8] sm:$0xff] %v3938_v16 }
 0x4c5   : > { %v3840_v43 = vpop.f32.mrf.mxu2 }
 0x4c6   : > { %v3841_v44 = vadd.f32 %v6624_v42, %v3840_v43 }
 0x4c8   : > { %v3907_v59 = vadd.f32 %v3875_v54, %v3841_v44 }
 0x4ca   : > { %v3939_v49 = vmax.f32 %v3907_v59, 0.0 }
 0x4cc   : > { %3971 = vst [vmem:[%s6634_s1 + $0xf0] sm:$0xff] %v3939_v49 }
 0x4cd   : > { %v3842_v57 = vpop.f32.mrf.mxu2 }
 0x4ce   : > { %v3843_v23 = vadd.f32 %v6624_v42, %v3842_v57 }
 0x4d0   : > { %v3908_v2 = vadd.f32 %v3876_v48, %v3843_v23 }
 0x4d2   : > { %v3940_v8 = vmax.f32 %v3908_v2, 0.0 }
 0x4d4   : > { %3972 = vst [vmem:[%s6634_s1 + $0xf8] sm:$0xff] %v3940_v8 }
 0x4d5   : > { %5566 = shalt.err (!%p5563_p0)
}
 0x4d6   : > { %s5639_s18 = smov 128   ;;  %s5640_s16 = smov 8  }
 0x4d7   : > { %5329 = dma.vmem_to_hbm [thread:$0]  (%p5776_p5), %s3990_s10, 4096, %s3992_s19, %s3974_s23, %s5639_s18, %s5639_s18, %s5640_s16  }
 0x4d8 PF: > { %s6863_s15 = sld [smem:[#allocation16_spill]]  ;;  %s4006_s8 = sand.u32 1, %s5609_s24  }
 0x4d9   : > { %p5346_p3 = pnand %p4114_p11, %p5730_p6  ;;  %s4007_s1 = scalar_lea.sflag [#allocation5], %s4006_s8 }
 0x4db   : > { %p5347_p7 = pneg %p5346_p3 }
 0x4dd   : > { %5604 = dma.done.wait (%p5347_p7), %s4007_s1, 4096  }
 0x4de   : > { %5606 = vsyncadd (%p5347_p7), %s4007_s1, 4294963200  ;;  %s25_s29 = sadd.s32 1, %s6863_s15   ;;  %s6864_s22 = sld [smem:[#allocation17_spill]] }
 0x4df   : > { %p22_p9 = scmp.ge.s32.totalorder %s25_s29, 4   ;;  %s6865_s24 = smov %s5613_s25 }
 0x4e0   : > { %s6866_s25 = smov %s5617_s26  ;;  %s6867_s26 = smov %s5785_s30 }
 0x4e1   : > { %s6868_s27 = smov %s5625_s28  ;;  %24 = sbr.rel (!%p22_p9) target bundleno = 12 (0xc), region = 110 }
 0x4e4   : > { %s6869_s28 = smov %s6864_s22 }
 0x4e6   :  { %4013 = vsyncpa [#allocation4], 1 }
 0x4e7   :  { %4015 = vsyncpa [#allocation4 + $0x1], 1 }
 0x4e8   :  { %4016 = vsyncpa [#allocation7], 1 }
 0x4e9   :  { %4017 = vsyncpa [#allocation10], 1 }
 0x4ea   :  { %4018 = vsyncpa [#allocation5], 1 }
 0x4eb   :  { %4020 = vsyncpa [#allocation5 + $0x1], 1 }

</bundles_post_ra>
